<compile_context>
chip_gen: v6e
topology: v6e:2x2x1
jax: 0.10.0
libtpu: 0.0.40
codegen_flags: <defaults>
</compile_context>

<pallas_src>
import jax
import jax.numpy as jnp
from jax import lax
from jax.experimental import pallas as pl
from jax.experimental.pallas import tpu as pltpu


def _im2col_3x3(v):
    """3x3 / pad=1 / stride=1 im2col of an (H, W, C) value -> (H*W, 9*C).

    Column ordering is (kh, kw, c), matching an HWIO weight tensor reshaped to
    (9*C, Cout) in the wrapper.
    """
    H, W, C = v.shape
    zr = jnp.zeros((1, W, C), v.dtype)
    vp = jnp.concatenate([zr, v, zr], axis=0)            # (H+2, W,   C)
    zc = jnp.zeros((H + 2, 1, C), v.dtype)
    vp = jnp.concatenate([zc, vp, zc], axis=1)           # (H+2, W+2, C)
    taps = [vp[kh:kh + H, kw:kw + W, :] for kh in range(3) for kw in range(3)]
    return jnp.concatenate(taps, axis=-1).reshape(H * W, 9 * C)


def _basic_block_kernel(x_ref, w1_ref, s1_ref, b1_ref, w2_ref, s2_ref, b2_ref,
                        out_ref):
    """One grid step = one batch image.

    x_ref:   (1, H, W, Cin)     unpadded NHWC input (f32)
    w1_ref:  (9*Cin,  Cout)     conv1 weights, HWIO flattened, bf16
    s1_ref:  (1, Cout)          folded BN1 scale (f32)
    b1_ref:  (1, Cout)          folded BN1 bias  (f32)
    w2_ref:  (9*Cout, Cout)     conv2 weights, HWIO flattened, bf16
    s2_ref:  (1, Cout)          folded BN2 scale
    b2_ref:  (1, Cout)          folded BN2 bias
    out_ref: (1, H*W, Cout)     output slab (f32)
    """
    _, H, W, Cin = x_ref.shape
    Cout = out_ref.shape[-1]

    x = x_ref[0]                                          # (H, W, Cin) f32, read once

    # ---- conv1: single big-K matmul, bf16 operands, f32 accumulation --------
    p1 = _im2col_3x3(x).astype(jnp.bfloat16)              # (H*W, 9*Cin)
    acc1 = jnp.dot(p1, w1_ref[...], preferred_element_type=jnp.float32)

    # ---- bn1 (folded affine) + relu -----------------------------------------
    mid = jnp.maximum(acc1 * s1_ref[...] + b1_ref[...], 0.0)       # (H*W, Cout) f32

    # ---- conv2: single big-K matmul ------------------------------------------
    p2 = _im2col_3x3(mid.reshape(H, W, Cout)).astype(jnp.bfloat16)  # (H*W, 9*Cout)
    acc2 = jnp.dot(p2, w2_ref[...], preferred_element_type=jnp.float32)

    # ---- bn2 + residual add + relu (identity reuses the same x read) --------
    identity = x.reshape(H * W, Cin)
    out = jnp.maximum(acc2 * s2_ref[...] + b2_ref[...] + identity, 0.0)
    out_ref[0] = out.astype(out_ref.dtype)


def basic_block_pallas(x_nchw, w1_oihw, bn1, w2_oihw, bn2, eps=1e-5):
    """x_nchw: (N, C, H, W) f32. bn{1,2} = (gamma, beta, running_mean, running_var)."""
    N, Cin, H, W = x_nchw.shape
    Cout = w1_oihw.shape[0]
    assert Cin == Cout, \
        "default BasicBlock (stride=1, downsample=None) requires inplanes == planes"

    # Layout conversion only (no HBM padding pass): NCHW -> NHWC.
    x = jnp.transpose(x_nchw, (0, 2, 3, 1)).astype(jnp.float32)

    def fold(bn):
        g, b, m, v = bn
        scale = g / jnp.sqrt(v + eps)
        bias = b - m * scale
        return (scale.reshape(1, -1).astype(jnp.float32),
                bias.reshape(1, -1).astype(jnp.float32))

    s1, b1 = fold(bn1)
    s2, b2 = fold(bn2)

    # OIHW -> HWIO, then flatten (kh, kw, cin) into one contraction axis of
    # size 9*Cin; cast to bf16 once here (single-pass MXU operands).
    w1 = jnp.transpose(w1_oihw, (2, 3, 1, 0)).reshape(9 * Cin, Cout).astype(jnp.bfloat16)
    w2 = jnp.transpose(w2_oihw, (2, 3, 1, 0)).reshape(9 * Cout, Cout).astype(jnp.bfloat16)

    out_flat = pl.pallas_call(
        _basic_block_kernel,
        out_shape=jax.ShapeDtypeStruct((N, H * W, Cout), jnp.float32),
        grid_spec=pltpu.PrefetchScalarGridSpec(
            num_scalar_prefetch=0,
            grid=(N,),
            in_specs=[
                pl.BlockSpec((1, H, W, Cin), lambda n: (n, 0, 0, 0)),
                pl.BlockSpec((9 * Cin, Cout), lambda n: (0, 0)),    # weights stay resident
                pl.BlockSpec((1, Cout), lambda n: (0, 0)),
                pl.BlockSpec((1, Cout), lambda n: (0, 0)),
                pl.BlockSpec((9 * Cout, Cout), lambda n: (0, 0)),
                pl.BlockSpec((1, Cout), lambda n: (0, 0)),
                pl.BlockSpec((1, Cout), lambda n: (0, 0)),
            ],
            out_specs=pl.BlockSpec((1, H * W, Cout), lambda n: (n, 0, 0)),
        ),
        compiler_params=pltpu.CompilerParams(
            dimension_semantics=("parallel",),
            vmem_limit_bytes=32 * 1024 * 1024,
        ),
    )(x, w1, s1, b1, w2, s2, b2)

    # (N, H*W, Cout) -> NHWC -> NCHW to match PyTorch.
    return jnp.transpose(out_flat.reshape(N, H, W, Cout), (0, 3, 1, 2))


def _reference(x_nchw, w1, bn1, w2, bn2, eps=1e-5):
    """Pure-JAX (f32) reference mirroring the PyTorch forward (BN eval mode)."""
    def conv(x, w):
        return lax.conv_general_dilated(x, w, window_strides=(1, 1),
                                        padding=((1, 1), (1, 1)),
                                        dimension_numbers=("NCHW", "OIHW", "NCHW"))

    def bn(x, p):
        g, b, m, v = p
        g, b, m, v = (a.reshape(1, -1, 1, 1) for a in (g, b, m, v))
        return (x - m) / jnp.sqrt(v + eps) * g + b

    out = jax.nn.relu(bn(conv(x_nchw, w1), bn1))
    out = bn(conv(out, w2), bn2)
    return jax.nn.relu(out + x_nchw)


if __name__ == "__main__":
    key = jax.random.PRNGKey(0)
    N, C, H, W = 2, 4, 16, 16   # inplanes = planes = 4, stride = 1

    ks = jax.random.split(key, 7)
    x = jax.random.normal(ks[0], (N, C, H, W), dtype=jnp.float32)
    w1 = jax.random.normal(ks[1], (C, C, 3, 3), dtype=jnp.float32) * 0.1
    w2 = jax.random.normal(ks[2], (C, C, 3, 3), dtype=jnp.float32) * 0.1
    bn1 = (1.0 + 0.1 * jax.random.normal(ks[3], (C,), dtype=jnp.float32),  # gamma
           0.1 * jax.random.normal(ks[4], (C,), dtype=jnp.float32),        # beta
           0.05 * jnp.arange(C, dtype=jnp.float32),                        # running_mean
           1.0 + 0.1 * jnp.arange(C, dtype=jnp.float32))                   # running_var
    bn2 = (1.0 - 0.05 * jnp.arange(C, dtype=jnp.float32),
           0.1 * jax.random.normal(ks[5], (C,), dtype=jnp.float32),
           0.02 * jax.random.normal(ks[6], (C,), dtype=jnp.float32),
           1.0 + 0.05 * jnp.arange(C, dtype=jnp.float32))

    out = jax.block_until_ready(basic_block_pallas(x, w1, bn1, w2, bn2))
    ref = jax.block_until_ready(_reference(x, w1, bn1, w2, bn2))

    assert out.shape == (N, C, H, W)
    # bf16 matmul operands (f32 accumulate) -> relaxed tolerance vs the f32 reference.
    max_err = float(jnp.max(jnp.abs(out - ref)))
    assert max_err < 5e-2, f"max abs err {max_err}"

    print("KERNEL_OK")
</pallas_src>

<mosaic_0001>
module attributes {stable_mosaic.version = 11 : i64} {
  func.func @_basic_block_kernel(%arg0: i32, %arg1: memref<1x16x16x4xf32, #tpu.memory_space<vmem>>, %arg2: memref<36x4xbf16, #tpu.memory_space<vmem>>, %arg3: memref<1x4xf32, #tpu.memory_space<vmem>>, %arg4: memref<1x4xf32, #tpu.memory_space<vmem>>, %arg5: memref<36x4xbf16, #tpu.memory_space<vmem>>, %arg6: memref<1x4xf32, #tpu.memory_space<vmem>>, %arg7: memref<1x4xf32, #tpu.memory_space<vmem>>, %arg8: memref<1x256x4xf32, #tpu.memory_space<vmem>>) attributes {dimension_semantics = [#tpu.dimension_semantics<parallel>], iteration_bounds = array<i64: 2>, scalar_prefetch = 0 : i64, scratch_operands = 0 : i64, tpu.core_type = #tpu.core_type<tc>, window_params = [{transform_indices = @transform_0, window_bounds = array<i64: 1, 16, 16, 4>}, {pipeline_mode = #tpu.pipeline_mode<synchronous>, transform_indices = @transform_1, window_bounds = array<i64: 36, 4>}, {pipeline_mode = #tpu.pipeline_mode<synchronous>, transform_indices = @transform_2, window_bounds = array<i64: 1, 4>}, {pipeline_mode = #tpu.pipeline_mode<synchronous>, transform_indices = @transform_3, window_bounds = array<i64: 1, 4>}, {pipeline_mode = #tpu.pipeline_mode<synchronous>, transform_indices = @transform_4, window_bounds = array<i64: 36, 4>}, {pipeline_mode = #tpu.pipeline_mode<synchronous>, transform_indices = @transform_5, window_bounds = array<i64: 1, 4>}, {pipeline_mode = #tpu.pipeline_mode<synchronous>, transform_indices = @transform_6, window_bounds = array<i64: 1, 4>}, {transform_indices = @transform_7, window_bounds = array<i64: 1, 256, 4>}]} {
    %c0 = arith.constant 0 : index
    %c0_0 = arith.constant 0 : index
    %c0_1 = arith.constant 0 : index
    %c0_2 = arith.constant 0 : index
    %0 = vector.load %arg1[%c0, %c0_0, %c0_1, %c0_2] : memref<1x16x16x4xf32, #tpu.memory_space<vmem>>, vector<1x16x16x4xf32>
    %1 = vector.shape_cast %0 : vector<1x16x16x4xf32> to vector<16x16x4xf32>
    %cst = arith.constant 0.000000e+00 : f32
    %2 = vector.broadcast %cst : f32 to vector<1x16x4xf32>
    %3 = tpu.concatenate %2, %1, %2 in 0 : vector<1x16x4xf32>, vector<16x16x4xf32>, vector<1x16x4xf32> -> vector<18x16x4xf32>
    %cst_3 = arith.constant 0.000000e+00 : f32
    %4 = vector.broadcast %cst_3 : f32 to vector<18x1x4xf32>
    %5 = tpu.concatenate %4, %3, %4 in 1 : vector<18x1x4xf32>, vector<18x16x4xf32>, vector<18x1x4xf32> -> vector<18x18x4xf32>
    %6 = vector.extract_strided_slice %5 {offsets = [0, 0, 0], sizes = [16, 16, 4], strides = [1, 1, 1]} : vector<18x18x4xf32> to vector<16x16x4xf32>
    %7 = vector.extract_strided_slice %5 {offsets = [0, 1, 0], sizes = [16, 16, 4], strides = [1, 1, 1]} : vector<18x18x4xf32> to vector<16x16x4xf32>
    %8 = vector.extract_strided_slice %5 {offsets = [0, 2, 0], sizes = [16, 16, 4], strides = [1, 1, 1]} : vector<18x18x4xf32> to vector<16x16x4xf32>
    %9 = vector.extract_strided_slice %5 {offsets = [1, 0, 0], sizes = [16, 16, 4], strides = [1, 1, 1]} : vector<18x18x4xf32> to vector<16x16x4xf32>
    %10 = vector.extract_strided_slice %5 {offsets = [1, 1, 0], sizes = [16, 16, 4], strides = [1, 1, 1]} : vector<18x18x4xf32> to vector<16x16x4xf32>
    %11 = vector.extract_strided_slice %5 {offsets = [1, 2, 0], sizes = [16, 16, 4], strides = [1, 1, 1]} : vector<18x18x4xf32> to vector<16x16x4xf32>
    %12 = vector.extract_strided_slice %5 {offsets = [2, 0, 0], sizes = [16, 16, 4], strides = [1, 1, 1]} : vector<18x18x4xf32> to vector<16x16x4xf32>
    %13 = vector.extract_strided_slice %5 {offsets = [2, 1, 0], sizes = [16, 16, 4], strides = [1, 1, 1]} : vector<18x18x4xf32> to vector<16x16x4xf32>
    %14 = vector.extract_strided_slice %5 {offsets = [2, 2, 0], sizes = [16, 16, 4], strides = [1, 1, 1]} : vector<18x18x4xf32> to vector<16x16x4xf32>
    %15 = tpu.concatenate %6, %7, %8, %9, %10, %11, %12, %13, %14 in 2 : vector<16x16x4xf32>, vector<16x16x4xf32>, vector<16x16x4xf32>, vector<16x16x4xf32>, vector<16x16x4xf32>, vector<16x16x4xf32>, vector<16x16x4xf32>, vector<16x16x4xf32>, vector<16x16x4xf32> -> vector<16x16x36xf32>
    %16 = vector.shape_cast %15 : vector<16x16x36xf32> to vector<256x36xf32>
    %17 = arith.truncf %16 : vector<256x36xf32> to vector<256x36xbf16>
    %c0_4 = arith.constant 0 : index
    %c0_5 = arith.constant 0 : index
    %18 = vector.load %arg2[%c0_4, %c0_5] : memref<36x4xbf16, #tpu.memory_space<vmem>>, vector<36x4xbf16>
    %cst_6 = arith.constant dense<0.000000e+00> : vector<256x4xf32>
    %19 = tpu.matmul %17, %18, %cst_6 {dimension_numbers = #tpu.dot_dimension_numbers<[1], [0], [0], [1], [0, 0, 1, 1], [], []>} : vector<256x36xbf16>, vector<36x4xbf16>, vector<256x4xf32> -> vector<256x4xf32>
    %c0_7 = arith.constant 0 : index
    %c0_8 = arith.constant 0 : index
    %20 = vector.load %arg3[%c0_7, %c0_8] : memref<1x4xf32, #tpu.memory_space<vmem>>, vector<1x4xf32>
    %21 = vector.broadcast %20 : vector<1x4xf32> to vector<256x4xf32>
    %22 = arith.mulf %19, %21 : vector<256x4xf32>
    %c0_9 = arith.constant 0 : index
    %c0_10 = arith.constant 0 : index
    %23 = vector.load %arg4[%c0_9, %c0_10] : memref<1x4xf32, #tpu.memory_space<vmem>>, vector<1x4xf32>
    %24 = vector.broadcast %23 : vector<1x4xf32> to vector<256x4xf32>
    %25 = arith.addf %22, %24 : vector<256x4xf32>
    %cst_11 = arith.constant 0.000000e+00 : f32
    %26 = vector.broadcast %cst_11 : f32 to vector<256x4xf32>
    %27 = arith.maximumf %25, %26 : vector<256x4xf32>
    %28 = vector.shape_cast %27 : vector<256x4xf32> to vector<16x16x4xf32>
    %cst_12 = arith.constant 0.000000e+00 : f32
    %29 = vector.broadcast %cst_12 : f32 to vector<1x16x4xf32>
    %30 = tpu.concatenate %29, %28, %29 in 0 : vector<1x16x4xf32>, vector<16x16x4xf32>, vector<1x16x4xf32> -> vector<18x16x4xf32>
    %cst_13 = arith.constant 0.000000e+00 : f32
    %31 = vector.broadcast %cst_13 : f32 to vector<18x1x4xf32>
    %32 = tpu.concatenate %31, %30, %31 in 1 : vector<18x1x4xf32>, vector<18x16x4xf32>, vector<18x1x4xf32> -> vector<18x18x4xf32>
    %33 = vector.extract_strided_slice %32 {offsets = [0, 0, 0], sizes = [16, 16, 4], strides = [1, 1, 1]} : vector<18x18x4xf32> to vector<16x16x4xf32>
    %34 = vector.extract_strided_slice %32 {offsets = [0, 1, 0], sizes = [16, 16, 4], strides = [1, 1, 1]} : vector<18x18x4xf32> to vector<16x16x4xf32>
    %35 = vector.extract_strided_slice %32 {offsets = [0, 2, 0], sizes = [16, 16, 4], strides = [1, 1, 1]} : vector<18x18x4xf32> to vector<16x16x4xf32>
    %36 = vector.extract_strided_slice %32 {offsets = [1, 0, 0], sizes = [16, 16, 4], strides = [1, 1, 1]} : vector<18x18x4xf32> to vector<16x16x4xf32>
    %37 = vector.extract_strided_slice %32 {offsets = [1, 1, 0], sizes = [16, 16, 4], strides = [1, 1, 1]} : vector<18x18x4xf32> to vector<16x16x4xf32>
    %38 = vector.extract_strided_slice %32 {offsets = [1, 2, 0], sizes = [16, 16, 4], strides = [1, 1, 1]} : vector<18x18x4xf32> to vector<16x16x4xf32>
    %39 = vector.extract_strided_slice %32 {offsets = [2, 0, 0], sizes = [16, 16, 4], strides = [1, 1, 1]} : vector<18x18x4xf32> to vector<16x16x4xf32>
    %40 = vector.extract_strided_slice %32 {offsets = [2, 1, 0], sizes = [16, 16, 4], strides = [1, 1, 1]} : vector<18x18x4xf32> to vector<16x16x4xf32>
    %41 = vector.extract_strided_slice %32 {offsets = [2, 2, 0], sizes = [16, 16, 4], strides = [1, 1, 1]} : vector<18x18x4xf32> to vector<16x16x4xf32>
    %42 = tpu.concatenate %33, %34, %35, %36, %37, %38, %39, %40, %41 in 2 : vector<16x16x4xf32>, vector<16x16x4xf32>, vector<16x16x4xf32>, vector<16x16x4xf32>, vector<16x16x4xf32>, vector<16x16x4xf32>, vector<16x16x4xf32>, vector<16x16x4xf32>, vector<16x16x4xf32> -> vector<16x16x36xf32>
    %43 = vector.shape_cast %42 : vector<16x16x36xf32> to vector<256x36xf32>
    %44 = arith.truncf %43 : vector<256x36xf32> to vector<256x36xbf16>
    %c0_14 = arith.constant 0 : index
    %c0_15 = arith.constant 0 : index
    %45 = vector.load %arg5[%c0_14, %c0_15] : memref<36x4xbf16, #tpu.memory_space<vmem>>, vector<36x4xbf16>
    %cst_16 = arith.constant dense<0.000000e+00> : vector<256x4xf32>
    %46 = tpu.matmul %44, %45, %cst_16 {dimension_numbers = #tpu.dot_dimension_numbers<[1], [0], [0], [1], [0, 0, 1, 1], [], []>} : vector<256x36xbf16>, vector<36x4xbf16>, vector<256x4xf32> -> vector<256x4xf32>
    %47 = vector.shape_cast %1 : vector<16x16x4xf32> to vector<256x4xf32>
    %c0_17 = arith.constant 0 : index
    %c0_18 = arith.constant 0 : index
    %48 = vector.load %arg6[%c0_17, %c0_18] : memref<1x4xf32, #tpu.memory_space<vmem>>, vector<1x4xf32>
    %49 = vector.broadcast %48 : vector<1x4xf32> to vector<256x4xf32>
    %50 = arith.mulf %46, %49 : vector<256x4xf32>
    %c0_19 = arith.constant 0 : index
    %c0_20 = arith.constant 0 : index
    %51 = vector.load %arg7[%c0_19, %c0_20] : memref<1x4xf32, #tpu.memory_space<vmem>>, vector<1x4xf32>
    %52 = vector.broadcast %51 : vector<1x4xf32> to vector<256x4xf32>
    %53 = arith.addf %50, %52 : vector<256x4xf32>
    %54 = arith.addf %53, %47 : vector<256x4xf32>
    %cst_21 = arith.constant 0.000000e+00 : f32
    %55 = vector.broadcast %cst_21 : f32 to vector<256x4xf32>
    %56 = arith.maximumf %54, %55 : vector<256x4xf32>
    %c0_22 = arith.constant 0 : index
    %c0_23 = arith.constant 0 : index
    %c0_24 = arith.constant 0 : index
    %57 = vector.load %arg8[%c0_22, %c0_23, %c0_24] : memref<1x256x4xf32, #tpu.memory_space<vmem>>, vector<1x256x4xf32>
    %58 = vector.shape_cast %57 : vector<1x256x4xf32> to vector<256x4xf32>
    %59 = vector.shape_cast %56 : vector<256x4xf32> to vector<1x256x4xf32>
    tpu.vector_store %arg8[%c0_22, %c0_23, %c0_24], %59 {strides = array<i32>} : memref<1x256x4xf32, #tpu.memory_space<vmem>>, vector<1x256x4xf32>,
    return
  }
  func.func @transform_0(%arg0: i32) -> (i32, i32, i32, i32) {
    %c0_i32 = arith.constant 0 : i32
    %c0_i32_0 = arith.constant 0 : i32
    %c0_i32_1 = arith.constant 0 : i32
    %c0_i32_2 = arith.constant 0 : i32
    return %arg0, %c0_i32, %c0_i32_0, %c0_i32_1 : i32, i32, i32, i32
  }
  func.func @transform_1(%arg0: i32) -> (i32, i32) {
    %c0_i32 = arith.constant 0 : i32
    %c0_i32_0 = arith.constant 0 : i32
    %c0_i32_1 = arith.constant 0 : i32
    return %c0_i32, %c0_i32_0 : i32, i32
  }
  func.func @transform_2(%arg0: i32) -> (i32, i32) {
    %c0_i32 = arith.constant 0 : i32
    %c0_i32_0 = arith.constant 0 : i32
    %c0_i32_1 = arith.constant 0 : i32
    return %c0_i32, %c0_i32_0 : i32, i32
  }
  func.func @transform_3(%arg0: i32) -> (i32, i32) {
    %c0_i32 = arith.constant 0 : i32
    %c0_i32_0 = arith.constant 0 : i32
    %c0_i32_1 = arith.constant 0 : i32
    return %c0_i32, %c0_i32_0 : i32, i32
  }
  func.func @transform_4(%arg0: i32) -> (i32, i32) {
    %c0_i32 = arith.constant 0 : i32
    %c0_i32_0 = arith.constant 0 : i32
    %c0_i32_1 = arith.constant 0 : i32
    return %c0_i32, %c0_i32_0 : i32, i32
  }
  func.func @transform_5(%arg0: i32) -> (i32, i32) {
    %c0_i32 = arith.constant 0 : i32
    %c0_i32_0 = arith.constant 0 : i32
    %c0_i32_1 = arith.constant 0 : i32
    return %c0_i32, %c0_i32_0 : i32, i32
  }
  func.func @transform_6(%arg0: i32) -> (i32, i32) {
    %c0_i32 = arith.constant 0 : i32
    %c0_i32_0 = arith.constant 0 : i32
    %c0_i32_1 = arith.constant 0 : i32
    return %c0_i32, %c0_i32_0 : i32, i32
  }
  func.func @transform_7(%arg0: i32) -> (i32, i32, i32) {
    %c0_i32 = arith.constant 0 : i32
    %c0_i32_0 = arith.constant 0 : i32
    %c0_i32_1 = arith.constant 0 : i32
    return %arg0, %c0_i32, %c0_i32_0 : i32, i32, i32
  }
}

</mosaic_0001>

<bundles_post_ra>
// kernel: tpu_custom_call.1
= control target key start
LH: loop header
LB: loop body
LE: loop exit
PB: predicated region body
PF: predicated region fallthrough
CT: control target
= control target key end

     0   :  { %s5433_s24 = smov 0   ;;  %s8776_s0 = inlined_call_operand.vmem [shape: f32[2,16,16,4], index: 0, kind: input, shape index: {}]   ;;  %s8777_s1 = inlined_call_operand.vmem [shape: bf16[36,4], index: 1, kind: input, shape index: {}]   ;;  %s8778_s2 = inlined_call_operand.vmem [shape: f32[1,4], index: 2, kind: input, shape index: {}]   ;;  %s8779_s3 = inlined_call_operand.vmem [shape: f32[1,4], index: 3, kind: input, shape index: {}]   ;;  %s8780_s4 = inlined_call_operand.vmem [shape: bf16[36,4], index: 4, kind: input, shape index: {}]   ;;  %s8781_s5 = inlined_call_operand.vmem [shape: f32[1,4], index: 5, kind: input, shape index: {}]   ;;  %s8782_s6 = inlined_call_operand.vmem [shape: f32[1,4], index: 6, kind: input, shape index: {}]   ;;  %s8783_s7 = inlined_call_operand.vmem [shape: f32[2,256,4], index: 7, kind: output, shape index: {}]  }
   0x1 LB: > { %s3895_s25 = sadd.s32 4294967295, %s5382_s24   ;;  %p3899_p0 = scmp.ge.s32.totalorder %s5382_s24, 1  ;;  %s5382_s24 = sphi %s5433_s24, %s17_s24  }
   0x2   : > { %p237_p1 = scmp.lt.s32.totalorder %s5382_s24, 3 }
   0x4   : > { %p238_p2 = pnand %p3899_p0, %p237_p1 }
   0x6   : > { %241 = sbr.rel (%p238_p2) target bundleno = 1140 (0x474), region = 48 }
   0xb   : > { %vm345_vm0 = vcmask 1040384   ;;  %p269_p3 = scmp.lt.s32.totalorder %s3895_s25, 1  ;;  %v5384_v0 = vmov 0.0   ;;  %vm511_vm1 = vcmask 1046528   ;;  %vm688_vm2 = vcmask 1045504   ;;  %s5385_s30 = smov 4  }
   0xc   : > { %v5441_v1 = vrot.slane %v5384_v0, 7  ;;  %s5386_s8 = smov 8   ;;  %s5387_s9 = smov 12   ;;  %vm1802_vm3 = vcmask 1041408   ;;  %vm1453_vm4 = vcmask 31744   ;;  %vm1486_vm5 = vcmask 64512  }
   0xd   : > { %s9225_s25 = smov (!%p269_p3, %s3895_s25), 1  ;;  %s5388_s10 = smov 16   ;;  %vm1519_vm6 = vcmask 97280   ;;  %vm1552_vm7 = vcmask 130048   ;;  %vm1585_vm8 = vcmask 162816   ;;  %vm1618_vm9 = vcmask 195584  }
   0xe   : > { %8936 = vst [vmem:[#allocation2_spill] sm:$0xff] %v5441_v1  ;;  %v5447_v2 = vsel %vm345_vm0, 0.0, %v5441_v1  ;;  %v462_v3 = vsel %vm345_vm0, %v5441_v1, 0.0  ;;  %v513_v4 = vrot.slane %v5441_v1, 1  ;;  %v690_v5 = vrot.slane %v5441_v1, 2  ;;  %s3948_s26 = sshll.u32 %s9225_s25, 8 }
   0xf   : > { %8937 = vst [vmem:[#allocation3_spill] sm:$0xff] %v5447_v2  ;;  %v512_v6 = vrot.slane %v5447_v2, 1  ;;  %v515_v7 = vrot.slane %v462_v3, 1  ;;  %v692_v8 = vrot.slane %v462_v3, 2  ;;  %v689_v9 = vrot.slane %v5447_v2, 2  ;;  %s5461_s29 = scalar_lea.vmem %s8776_s0, %s3948_s26  ;;  %s5389_s11 = smov 20  }
  0x10   : > { %v282_v12 = vld [vmem:[%s5461_s29 + $0x10] sm:$0xff]  ;;  %v283_v13 = vld [vmem:[%s5461_s29 + $0x18] sm:$0xff]  ;;  %v280_v14 = vld [vmem:[%s5461_s29] sm:$0xff]  ;;  %s5390_s12 = smov 24   ;;  %s5391_s19 = smov 28   ;;  %vm1651_vm10 = vcmask 228352  }
  0x11   : > { %v514_v10 = vsel %vm511_vm1, %v512_v6, %v513_v4  ;;  %v516_v11 = vsel %vm511_vm1, %v513_v4, %v515_v7  ;;  %v5469_v15 = vsel %vm688_vm2, %v689_v9, %v690_v5  ;;  %v5472_v16 = vsel %vm688_vm2, %v690_v5, %v692_v8  ;;  %v281_v20 = vld [vmem:[%s5461_s29 + $0x8] sm:$0xff]  ;;  %v284_v21 = vld [vmem:[%s5461_s29 + $0x20] sm:$0xff]  ;;  %v286_v27 = vld [vmem:[%s5461_s29 + $0x30] sm:$0xff]  ;;  %s5392_s20 = smov 32   ;;  %s8617_s18 = scalar_lea.vmem %s8783_s7, %s3948_s26 }
  0x12   : > { %v5474_v17 = vpack.i.bf16 %v516_v11, %v514_v10  ;;  %v351_v18 = vrot.slane %v282_v12, 7  ;;  %v352_v19 = vrot.slane %v283_v13, 7  ;;  %v285_v22 = vld [vmem:[%s5461_s29 + $0x28] sm:$0xff]  ;;  %v348_v23 = vrot.slane %v280_v14, 7  ;;  %v287_v44 = vld [vmem:[%s5461_s29 + $0x38] sm:$0xff]  ;;  %v288_v45 = vld [vmem:[%s5461_s29 + $0x40] sm:$0xff] }
  0x13   : > { %v349_v24 = vrot.slane %v281_v20, 7  ;;  %v354_v25 = vrot.slane %v284_v21, 7  ;;  %v355_v26 = vrot.slane %v285_v22, 7  ;;  %v357_v31 = vrot.slane %v286_v27, 7  ;;  %v289_v54 = vld [vmem:[%s5461_s29 + $0x48] sm:$0xff]  ;;  %v290_v59 = vld [vmem:[%s5461_s29 + $0x50] sm:$0xff] }
  0x14   : > { %8938 = vst [vmem:[#allocation4_spill] sm:$0xff] %v5474_v17  ;;  %4084 = vrot.lane.b32.xlu0 %v5474_v17, %s5385_s30  ;;  %v5483_v28 = vsel %vm345_vm0, %v351_v18, %v352_v19  ;;  %v5486_v29 = vsel %vm345_vm0, 0.0, %v351_v18  ;;  %v5489_v30 = vsel %vm345_vm0, %v352_v19, 0.0  ;;  %v5499_v37 = vsel %vm345_vm0, 0.0, %v348_v23  ;;  %v291_v0 = vld [vmem:[%s5461_s29 + $0x58] sm:$0xff]  ;;  %v292_v22 = vld [vmem:[%s5461_s29 + $0x60] sm:$0xff] }
  0x15   : > { %v522_v32 = vrot.slane %v5486_v29, 1  ;;  %v523_v33 = vrot.slane %v5483_v28, 1  ;;  %v525_v34 = vrot.slane %v5489_v30, 1  ;;  %v5496_v36 = vsel %vm345_vm0, %v348_v23, %v349_v24  ;;  %v293_v23 = vld [vmem:[%s5461_s29 + $0x68] sm:$0xff] }
  0x16   : > { %v5502_v38 = vsel %vm345_vm0, %v349_v24, 0.0  ;;  %v5505_v39 = vsel %vm345_vm0, %v354_v25, %v355_v26  ;;  %v517_v42 = vrot.slane %v5499_v37, 1  ;;  %v518_v43 = vrot.slane %v5496_v36, 1 }
  0x17   : > { %v524_v40 = vsel %vm511_vm1, %v522_v32, %v523_v33  ;;  %v526_v41 = vsel %vm511_vm1, %v523_v33, %v525_v34  ;;  %v520_v47 = vrot.slane %v5502_v38, 1  ;;  %v5517_v48 = vsel %vm345_vm0, 0.0, %v354_v25  ;;  %v295_v32 = vld [vmem:[%s5461_s29 + $0x78] sm:$0xff]  ;;  %v296_v33 = vld [vmem:[%s5461_s29 + $0x80] sm:$0xff] }
  0x18   : > { %v5513_v46 = vpack.i.bf16 %v526_v41, %v524_v40  ;;  %v5520_v49 = vsel %vm345_vm0, %v355_v26, 0.0  ;;  %v519_v50 = vsel %vm511_vm1, %v517_v42, %v518_v43  ;;  %v527_v51 = vrot.slane %v5517_v48, 1 }
  0x19   : > { %v528_v52 = vrot.slane %v5505_v39, 1  ;;  %v530_v53 = vrot.slane %v5520_v49, 1  ;;  %v521_v55 = vsel %vm511_vm1, %v518_v43, %v520_v47  ;;  %v358_v56 = vrot.slane %v287_v44, 7 }
  0x1a   : > { %8939 = vst [vmem:[#allocation5_spill] sm:$0xff] %v5513_v46  ;;  %4094 = vrot.lane.b32.xlu1 %v5513_v46, %s5385_s30  ;;  %v5531_v57 = vsel %vm345_vm0, 0.0, %v357_v31  ;;  %v360_v58 = vrot.slane %v288_v45, 7  ;;  %v5534_v60 = vpack.i.bf16 %v521_v55, %v519_v50  ;;  %v361_v6 = vrot.slane %v289_v54, 7 }
  0x1b   : > { %8940 = vst [vmem:[#allocation6_spill] sm:$0xff] %v5531_v57  ;;  %v529_v61 = vsel %vm511_vm1, %v527_v51, %v528_v52  ;;  %v531_v62 = vsel %vm511_vm1, %v528_v52, %v530_v53  ;;  %v532_v63 = vrot.slane %v5531_v57, 1  ;;  %v5543_v4 = vsel %vm345_vm0, %v357_v31, %v358_v56  ;;  %v294_v31 = vld [vmem:[%s5461_s29 + $0x70] sm:$0xff]  ;;  %v297_v53 = vld [vmem:[%s5461_s29 + $0x88] sm:$0xff] }
  0x1c   : > { %v5540_v3 = vpack.i.bf16 %v531_v62, %v529_v61  ;;  %v5546_v5 = vsel %vm345_vm0, %v358_v56, 0.0  ;;  %4089 = vrot.lane.b32.xlu0 %v5534_v60, %s5385_s30  ;;  %v533_v7 = vrot.slane %v5543_v4, 1  ;;  %v5553_v9 = vsel %vm345_vm0, 0.0, %v360_v58 }
  0x1d   : > { %v535_v8 = vrot.slane %v5546_v5, 1  ;;  %8942 = vst [vmem:[#allocation8_spill] sm:$0xff] %v5553_v9  ;;  %v363_v10 = vrot.slane %v290_v59, 7  ;;  %v5558_v11 = vsel %vm345_vm0, %v360_v58, %v361_v6  ;;  %v5561_v12 = vsel %vm345_vm0, %v361_v6, 0.0 }
  0x1e   : > { %8941 = vst [vmem:[#allocation7_spill] sm:$0xff] %v5540_v3  ;;  %4099 = vrot.lane.b32.xlu1 %v5540_v3, %s5385_s30  ;;  %8943 = vst [vmem:[#allocation9_spill] sm:$0xff] %v5558_v11  ;;  %v537_v13 = vrot.slane %v5553_v9, 1  ;;  %v364_v14 = vrot.slane %v291_v0, 7  ;;  %v534_v18 = vsel %vm511_vm1, %v532_v63, %v533_v7  ;;  %v538_v20 = vrot.slane %v5558_v11, 1 }
  0x1f   : > { %v536_v19 = vsel %vm511_vm1, %v533_v7, %v535_v8  ;;  %v540_v21 = vrot.slane %v5561_v12, 1  ;;  %v5576_v26 = vsel %vm345_vm0, 0.0, %v363_v10  ;;  %v366_v45 = vrot.slane %v292_v22, 7 }
  0x20   : > { %v5570_v24 = vpack.i.bf16 %v536_v19, %v534_v18  ;;  %v5573_v25 = vsel %vm345_vm0, %v363_v10, %v364_v14  ;;  %8946 = vst [vmem:[#allocation12_spill] sm:$0xff] %v5576_v26  ;;  %v5579_v27 = vsel %vm345_vm0, %v364_v14, 0.0  ;;  %v539_v34 = vsel %vm511_vm1, %v537_v13, %v538_v20 }
  0x21   : > { %8945 = vst [vmem:[#allocation11_spill] sm:$0xff] %v5573_v25  ;;  %v541_v40 = vsel %vm511_vm1, %v538_v20, %v540_v21  ;;  %v542_v41 = vrot.slane %v5576_v26, 1  ;;  %v543_v42 = vrot.slane %v5573_v25, 1  ;;  %v545_v44 = vrot.slane %v5579_v27, 1  ;;  %v298_v20 = vld [vmem:[%s5461_s29 + $0x90] sm:$0xff]  ;;  %v299_v21 = vld [vmem:[%s5461_s29 + $0x98] sm:$0xff] }
  0x22   : > { %8944 = vst [vmem:[#allocation10_spill] sm:$0xff] %v5570_v24  ;;  %4104 = vrot.lane.b32.xlu0 %v5570_v24, %s5385_s30  ;;  %v5590_v43 = vpack.i.bf16 %v541_v40, %v539_v34  ;;  %v367_v47 = vrot.slane %v293_v23, 7  ;;  %v369_v51 = vrot.slane %v294_v31, 7  ;;  %v370_v52 = vrot.slane %v295_v32, 7  ;;  %v301_v34 = vld [vmem:[%s5461_s29 + $0xa8] sm:$0xff] }
  0x23   : > { %v544_v50 = vsel %vm511_vm1, %v542_v41, %v543_v42  ;;  %v372_v54 = vrot.slane %v296_v33, 7  ;;  %v546_v55 = vsel %vm511_vm1, %v543_v42, %v545_v44  ;;  %v5602_v58 = vsel %vm345_vm0, 0.0, %v366_v45  ;;  %v300_v33 = vld [vmem:[%s5461_s29 + $0xa0] sm:$0xff] }
  0x24   : > { %8947 = vst [vmem:[#allocation13_spill] sm:$0xff] %v5590_v43  ;;  %4109 = vrot.lane.b32.xlu1 %v5590_v43, %s5385_s30  ;;  %v5599_v56 = vsel %vm345_vm0, %v366_v45, %v367_v47  ;;  %8949 = vst [vmem:[#allocation15_spill] sm:$0xff] %v5602_v58  ;;  %v5605_v59 = vsel %vm345_vm0, %v367_v47, 0.0  ;;  %v5607_v61 = vpack.i.bf16 %v546_v55, %v544_v50  ;;  %v547_v62 = vrot.slane %v5602_v58, 1 }
  0x25   : > { %8948 = vst [vmem:[#allocation14_spill] sm:$0xff] %v5599_v56  ;;  %v548_v63 = vrot.slane %v5599_v56, 1  ;;  %v550_v0 = vrot.slane %v5605_v59, 1  ;;  %v5613_v6 = vsel %vm345_vm0, %v369_v51, %v370_v52  ;;  %v5616_v7 = vsel %vm345_vm0, 0.0, %v369_v51 }
  0x26   : > { %8950 = vst [vmem:[#allocation16_spill] sm:$0xff] %v5607_v61  ;;  %8951 = vst [vmem:[#allocation17_spill] sm:$0xff] %v5613_v6  ;;  %v5619_v8 = vsel %vm345_vm0, %v370_v52, 0.0  ;;  %v373_v10 = vrot.slane %v297_v53, 7  ;;  %4114 = vrot.lane.b32.xlu0 %v5607_v61, %s5385_s30  ;;  %v552_v18 = vrot.slane %v5616_v7, 1  ;;  %v553_v19 = vrot.slane %v5613_v6, 1 }
  0x27   : > { %8952 = vst [vmem:[#allocation18_spill] sm:$0xff] %v5616_v7  ;;  %v549_v13 = vsel %vm511_vm1, %v547_v62, %v548_v63  ;;  %v551_v14 = vsel %vm511_vm1, %v548_v63, %v550_v0  ;;  %v555_v23 = vrot.slane %v5619_v8, 1  ;;  %v5636_v32 = vsel %vm345_vm0, 0.0, %v372_v54  ;;  %v302_v62 = vld [vmem:[%s5461_s29 + $0xb0] sm:$0xff] }
  0x28   : > { %v5629_v22 = vpack.i.bf16 %v551_v14, %v549_v13  ;;  %v5633_v31 = vsel %vm345_vm0, %v372_v54, %v373_v10  ;;  %8955 = vst [vmem:[#allocation21_spill] sm:$0xff] %v5636_v32  ;;  %v554_v40 = vsel %vm511_vm1, %v552_v18, %v553_v19  ;;  %v5642_v41 = vsel %vm345_vm0, %v373_v10, 0.0 }
  0x29   : > { %8954 = vst [vmem:[#allocation20_spill] sm:$0xff] %v5633_v31  ;;  %v557_v42 = vrot.slane %v5636_v32, 1  ;;  %v558_v44 = vrot.slane %v5633_v31, 1  ;;  %v556_v45 = vsel %vm511_vm1, %v553_v19, %v555_v23  ;;  %v560_v47 = vrot.slane %v5642_v41, 1 }
  0x2a   : > { %8953 = vst [vmem:[#allocation19_spill] sm:$0xff] %v5629_v22  ;;  %4119 = vrot.lane.b32.xlu1 %v5629_v22, %s5385_s30  ;;  %v375_v50 = vrot.slane %v298_v20, 7  ;;  %v376_v51 = vrot.slane %v299_v21, 7  ;;  %v5650_v52 = vpack.i.bf16 %v556_v45, %v554_v40  ;;  %v378_v54 = vrot.slane %v300_v33, 7  ;;  %v303_v21 = vld [vmem:[%s5461_s29 + $0xb8] sm:$0xff] }
  0x2b   : > { %v559_v53 = vsel %vm511_vm1, %v557_v42, %v558_v44  ;;  %v379_v55 = vrot.slane %v301_v34, 7  ;;  %v561_v63 = vsel %vm511_vm1, %v558_v44, %v560_v47  ;;  %v381_v40 = vrot.slane %v302_v62, 7  ;;  %v304_v42 = vld [vmem:[%s5461_s29 + $0xc0] sm:$0xff]  ;;  %v305_v44 = vld [vmem:[%s5461_s29 + $0xc8] sm:$0xff] }
  0x2c   : > { %8956 = vst [vmem:[#allocation22_spill] sm:$0xff] %v5650_v52  ;;  %v5656_v0 = vsel %vm345_vm0, %v375_v50, %v376_v51  ;;  %v5659_v10 = vsel %vm345_vm0, 0.0, %v375_v50  ;;  %v5662_v13 = vsel %vm345_vm0, %v376_v51, 0.0  ;;  %4124 = vrot.lane.b32.xlu0 %v5650_v52, %s5385_s30  ;;  %v5666_v14 = vpack.i.bf16 %v561_v63, %v559_v53  ;;  %v306_v53 = vld [vmem:[%s5461_s29 + $0xd0] sm:$0xff] }
  0x2d   : > { %8957 = vst [vmem:[#allocation23_spill] sm:$0xff] %v5656_v0  ;;  %8958 = vst [vmem:[#allocation24_spill] sm:$0xff] %v5659_v10  ;;  %v562_v18 = vrot.slane %v5659_v10, 1  ;;  %v563_v19 = vrot.slane %v5656_v0, 1  ;;  %v565_v20 = vrot.slane %v5662_v13, 1  ;;  %v5673_v23 = vsel %vm345_vm0, %v378_v54, %v379_v55 }
  0x2e   : > { %8959 = vst [vmem:[#allocation25_spill] sm:$0xff] %v5666_v14  ;;  %8960 = vst [vmem:[#allocation26_spill] sm:$0xff] %v5673_v23  ;;  %v5676_v33 = vsel %vm345_vm0, 0.0, %v378_v54  ;;  %v5679_v34 = vsel %vm345_vm0, %v379_v55, 0.0  ;;  %4129 = vrot.lane.b32.xlu1 %v5666_v14, %s5385_s30  ;;  %v568_v51 = vrot.slane %v5673_v23, 1  ;;  %v382_v62 = vrot.slane %v303_v21, 7 }
  0x2f   : > { %8961 = vst [vmem:[#allocation27_spill] sm:$0xff] %v5676_v33  ;;  %v564_v45 = vsel %vm511_vm1, %v562_v18, %v563_v19  ;;  %v566_v47 = vsel %vm511_vm1, %v563_v19, %v565_v20  ;;  %v567_v50 = vrot.slane %v5676_v33, 1  ;;  %v570_v55 = vrot.slane %v5679_v34, 1  ;;  %v307_v19 = vld [vmem:[%s5461_s29 + $0xd8] sm:$0xff]  ;;  %v308_v14 = vld [vmem:[%s5461_s29 + $0xe0] sm:$0xff] }
  0x30   : > { %v5690_v54 = vpack.i.bf16 %v566_v47, %v564_v45  ;;  %v5694_v63 = vsel %vm345_vm0, 0.0, %v381_v40  ;;  %v384_v18 = vrot.slane %v304_v42, 7  ;;  %v385_v1 = vrot.slane %v305_v44, 7 }
  0x31   : > { %8963 = vst [vmem:[#allocation29_spill] sm:$0xff] %v5694_v63  ;;  %v569_v35 = vsel %vm511_vm1, %v567_v50, %v568_v51  ;;  %v572_v17 = vrot.slane %v5694_v63, 1  ;;  %v571_v20 = vsel %vm511_vm1, %v568_v51, %v570_v55  ;;  %v5703_v45 = vsel %vm345_vm0, %v381_v40, %v382_v62 }
  0x32   : > { %8962 = vst [vmem:[#allocation28_spill] sm:$0xff] %v5690_v54  ;;  %4134 = vrot.lane.b32.xlu0 %v5690_v54, %s5385_s30  ;;  %8964 = vst [vmem:[#allocation30_spill] sm:$0xff] %v5703_v45  ;;  %v5706_v21 = vsel %vm345_vm0, %v382_v62, 0.0  ;;  %v387_v47 = vrot.slane %v306_v53, 7  ;;  %v5708_v50 = vpack.i.bf16 %v571_v20, %v569_v35  ;;  %v573_v42 = vrot.slane %v5703_v45, 1 }
  0x33   : > { %v575_v44 = vrot.slane %v5706_v21, 1  ;;  %v5713_v2 = vsel %vm345_vm0, %v384_v18, %v385_v1  ;;  %v5716_v51 = vsel %vm345_vm0, 0.0, %v384_v18  ;;  %v5719_v40 = vsel %vm345_vm0, %v385_v1, 0.0  ;;  %v309_v18 = vld [vmem:[%s5461_s29 + $0xe8] sm:$0xff] }
  0x34   : > { %8965 = vst [vmem:[#allocation31_spill] sm:$0xff] %v5708_v50  ;;  %8966 = vst [vmem:[#allocation32_spill] sm:$0xff] %v5713_v2  ;;  %v578_v55 = vrot.slane %v5713_v2, 1  ;;  %v388_v62 = vrot.slane %v307_v19, 7  ;;  %4139 = vrot.lane.b32.xlu1 %v5708_v50, %s5385_s30  ;;  %v574_v35 = vsel %vm511_vm1, %v572_v17, %v573_v42  ;;  %v577_v20 = vrot.slane %v5716_v51, 1 }
  0x35   : > { %8967 = vst [vmem:[#allocation33_spill] sm:$0xff] %v5716_v51  ;;  %v576_v53 = vsel %vm511_vm1, %v573_v42, %v575_v44  ;;  %v580_v54 = vrot.slane %v5719_v40, 1  ;;  %v5736_v19 = vsel %vm345_vm0, 0.0, %v387_v47  ;;  %v391_v61 = vrot.slane %v309_v18, 7 }
  0x36   : > { %v5730_v52 = vpack.i.bf16 %v576_v53, %v574_v35  ;;  %v5733_v1 = vsel %vm345_vm0, %v387_v47, %v388_v62  ;;  %8970 = vst [vmem:[#allocation36_spill] sm:$0xff] %v5736_v19  ;;  %v5739_v50 = vsel %vm345_vm0, %v388_v62, 0.0  ;;  %v579_v17 = vsel %vm511_vm1, %v577_v20, %v578_v55 }
  0x37   : > { %8969 = vst [vmem:[#allocation35_spill] sm:$0xff] %v5733_v1  ;;  %v581_v42 = vsel %vm511_vm1, %v578_v55, %v580_v54  ;;  %v582_v44 = vrot.slane %v5736_v19, 1  ;;  %v583_v22 = vrot.slane %v5733_v1, 1  ;;  %v585_v53 = vrot.slane %v5739_v50, 1 }
  0x38   : > { %8968 = vst [vmem:[#allocation34_spill] sm:$0xff] %v5730_v52  ;;  %4144 = vrot.lane.b32.xlu0 %v5730_v52, %s5385_s30  ;;  %v5747_v35 = vpack.i.bf16 %v581_v42, %v579_v17  ;;  %v390_v47 = vrot.slane %v308_v14, 7  ;;  %v5753_v20 = vpack.i.bf16 %v5472_v16, %v5469_v15  ;;  %v694_v54 = vrot.slane %v5499_v37, 2 }
  0x39   : > { %v584_v62 = vsel %vm511_vm1, %v582_v44, %v583_v22  ;;  %v586_v55 = vsel %vm511_vm1, %v583_v22, %v585_v53  ;;  %v5766_v14 = vsel %vm345_vm0, %v391_v61, 0.0  ;;  %v697_v22 = vrot.slane %v5502_v38, 2 }
  0x3a   : > { %8971 = vst [vmem:[#allocation37_spill] sm:$0xff] %v5747_v35  ;;  %8972 = vst [vmem:[#allocation38_spill] sm:$0xff] %v5753_v20  ;;  %4149 = vrot.lane.b32.xlu1 %v5747_v35, %s5385_s30  ;;  %v5760_v17 = vsel %vm345_vm0, %v390_v47, %v391_v61  ;;  %v5763_v42 = vsel %vm345_vm0, 0.0, %v390_v47  ;;  %v5768_v18 = vpack.i.bf16 %v586_v55, %v584_v62  ;;  %v590_v44 = vrot.slane %v5766_v14, 1 }
  0x3b   : > { %8973 = vst [vmem:[#allocation39_spill] sm:$0xff] %v5760_v17  ;;  %8974 = vst [vmem:[#allocation40_spill] sm:$0xff] %v5763_v42  ;;  %v587_v15 = vrot.slane %v5763_v42, 1  ;;  %v588_v16 = vrot.slane %v5760_v17, 1  ;;  %v695_v35 = vrot.slane %v5496_v36, 2  ;;  %v699_v53 = vrot.slane %v5486_v29, 2 }
  0x3c   : > { %8975 = vst [vmem:[#allocation41_spill] sm:$0xff] %v5768_v18  ;;  %v700_v47 = vrot.slane %v5483_v28, 2  ;;  %4154 = vrot.lane.b32.xlu0 %v5768_v18, %s5385_s30  ;;  %v704_v55 = vrot.slane %v5517_v48, 2  ;;  %v705_v52 = vrot.slane %v5505_v39, 2  ;;  %v8976_v18 = vrot.slane %v5489_v30, 2 }
  0x3d   : > { %v589_v61 = vsel %vm511_vm1, %v587_v15, %v588_v16  ;;  %v591_v62 = vsel %vm511_vm1, %v588_v16, %v590_v44  ;;  %v696_v24 = vsel %vm688_vm2, %v694_v54, %v695_v35  ;;  %v698_v38 = vsel %vm688_vm2, %v695_v35, %v697_v22 }
  0x3e   : > { %v5783_v43 = vpack.i.bf16 %v591_v62, %v589_v61  ;;  %v701_v3 = vsel %vm688_vm2, %v699_v53, %v700_v47  ;;  %v5788_v46 = vpack.i.bf16 %v698_v38, %v696_v24  ;;  %v703_v15 = vsel %vm688_vm2, %v700_v47, %v8976_v18 }
  0x3f   : > { %v706_v16 = vsel %vm688_vm2, %v704_v55, %v705_v52  ;;  %v707_v44 = vrot.slane %v5520_v49, 2  ;;  %v5797_v61 = vpack.i.bf16 %v703_v15, %v701_v3  ;;  %v709_v54 = vrot.slane %v5531_v57, 2 }
  0x40   : > { %4159 = vrot.lane.b32.xlu1 %v5783_v43, %s5385_s30  ;;  %v710_v35 = vrot.slane %v5543_v4, 2  ;;  %v712_v24 = vrot.slane %v5546_v5, 2  ;;  %4164 = vrot.lane.b32.xlu0 %v5753_v20, %s5386_s8  ;;  %v714_v18 = vrot.slane %v5553_v9, 2  ;;  %v715_v49 = vrot.slane %v5558_v11, 2 }
  0x41   : > { %v708_v30 = vsel %vm688_vm2, %v705_v52, %v707_v44  ;;  %v717_v22 = vrot.slane %v5561_v12, 2  ;;  %v719_v47 = vrot.slane %v5576_v26, 2  ;;  %v720_v55 = vrot.slane %v5573_v25, 2 }
  0x42   : > { %v711_v3 = vsel %vm688_vm2, %v709_v54, %v710_v35  ;;  %v713_v53 = vsel %vm688_vm2, %v710_v35, %v712_v24  ;;  %v5811_v62 = vpack.i.bf16 %v708_v30, %v706_v16  ;;  %v716_v5 = vsel %vm688_vm2, %v714_v18, %v715_v49 }
  0x43   : > { %v718_v52 = vsel %vm688_vm2, %v715_v49, %v717_v22  ;;  %v722_v38 = vrot.slane %v5579_v27, 2  ;;  %v724_v12 = vrot.slane %v5602_v58, 2  ;;  %v725_v15 = vrot.slane %v5599_v56, 2 }
  0x44   : > { %4169 = vrot.lane.b32.xlu1 %v5788_v46, %s5386_s8  ;;  %4174 = vrot.lane.b32.xlu0 %v5797_v61, %s5386_s8  ;;  %v5823_v16 = vpack.i.bf16 %v713_v53, %v711_v3  ;;  %v727_v44 = vrot.slane %v5605_v59, 2  ;;  %v729_v54 = vrot.slane %v5616_v7, 2  ;;  %v730_v35 = vrot.slane %v5613_v6, 2 }
  0x45   : > { %v721_v24 = vsel %vm688_vm2, %v719_v47, %v720_v55  ;;  %v723_v30 = vsel %vm688_vm2, %v720_v55, %v722_v38  ;;  %v732_v27 = vrot.slane %v5619_v8, 2  ;;  %v5831_v18 = vpack.i.bf16 %v718_v52, %v716_v5 }
  0x46   : > { %v726_v49 = vsel %vm688_vm2, %v724_v12, %v725_v15  ;;  %v734_v22 = vrot.slane %v5636_v32, 2  ;;  %v735_v3 = vrot.slane %v5633_v31, 2  ;;  %v728_v59 = vsel %vm688_vm2, %v725_v15, %v727_v44 }
  0x47   : > { %v731_v53 = vsel %vm688_vm2, %v729_v54, %v730_v35  ;;  %v733_v47 = vsel %vm688_vm2, %v730_v35, %v732_v27  ;;  %v737_v55 = vrot.slane %v5642_v41, 2  ;;  %v5844_v8 = vpack.i.bf16 %v723_v30, %v721_v24 }
  0x48   : > { %4179 = vrot.lane.b32.xlu1 %v5811_v62, %s5386_s8  ;;  %4184 = vrot.lane.b32.xlu0 %v5823_v16, %s5386_s8  ;;  %v739_v5 = vrot.slane %v5659_v10, 2  ;;  %v740_v52 = vrot.slane %v5656_v0, 2  ;;  %v742_v38 = vrot.slane %v5662_v13, 2  ;;  %v5849_v12 = vpack.i.bf16 %v728_v59, %v726_v49 }
  0x49   : > { %v5851_v15 = vpack.i.bf16 %v733_v47, %v731_v53  ;;  %v736_v44 = vsel %vm688_vm2, %v734_v22, %v735_v3  ;;  %v738_v41 = vsel %vm688_vm2, %v735_v3, %v737_v55  ;;  %v744_v54 = vrot.slane %v5676_v33, 2 }
  0x4a   : > { %v745_v35 = vrot.slane %v5673_v23, 2  ;;  %v747_v24 = vrot.slane %v5679_v34, 2  ;;  %v741_v13 = vsel %vm688_vm2, %v739_v5, %v740_v52  ;;  %v743_v30 = vsel %vm688_vm2, %v740_v52, %v742_v38 }
  0x4b   : > { %v749_v27 = vrot.slane %v5694_v63, 2  ;;  %v750_v49 = vrot.slane %v5703_v45, 2  ;;  %v752_v22 = vrot.slane %v5706_v21, 2  ;;  %v5869_v3 = vpack.i.bf16 %v738_v41, %v736_v44 }
  0x4c   : > { %4189 = vrot.lane.b32.xlu1 %v5831_v18, %s5386_s8  ;;  %4194 = vrot.lane.b32.xlu0 %v5844_v8, %s5386_s8  ;;  %v5871_v59 = vpack.i.bf16 %v743_v30, %v741_v13  ;;  %v746_v34 = vsel %vm688_vm2, %v744_v54, %v745_v35  ;;  %v748_v53 = vsel %vm688_vm2, %v745_v35, %v747_v24  ;;  %v754_v21 = vrot.slane %v5716_v51, 2  ;;  %v311_v30 = vld [vmem:[%s5461_s29 + $0xf8] sm:$0xff] }
  0x4d   : > { %8977 = vst [vmem:[#allocation42_spill] sm:$0xff] %v5869_v3  ;;  %v751_v47 = vsel %vm688_vm2, %v749_v27, %v750_v49  ;;  %v755_v55 = vrot.slane %v5713_v2, 2  ;;  %v757_v5 = vrot.slane %v5719_v40, 2  ;;  %v753_v52 = vsel %vm688_vm2, %v750_v49, %v752_v22  ;;  %v310_v40 = vld [vmem:[%s5461_s29 + $0xf0] sm:$0xff] }
  0x4e   : > { %v759_v38 = vrot.slane %v5736_v19, 2  ;;  %v760_v44 = vrot.slane %v5733_v1, 2  ;;  %v762_v41 = vrot.slane %v5739_v50, 2  ;;  %v5887_v54 = vpack.i.bf16 %v748_v53, %v746_v34 }
  0x4f   : > { %v764_v35 = vrot.slane %v5763_v42, 2  ;;  %v765_v24 = vrot.slane %v5760_v17, 2  ;;  %v767_v13 = vrot.slane %v5766_v14, 2  ;;  %v5896_v27 = vpack.i.bf16 %v753_v52, %v751_v47 }
  0x50   : > { %4199 = vrot.lane.b32.xlu1 %v5849_v12, %s5386_s8  ;;  %4204 = vrot.lane.b32.xlu0 %v5851_v15, %s5386_s8  ;;  %v756_v50 = vsel %vm688_vm2, %v754_v21, %v755_v55  ;;  %v758_v49 = vsel %vm688_vm2, %v755_v55, %v757_v5  ;;  %v761_v22 = vsel %vm688_vm2, %v759_v38, %v760_v44  ;;  %v393_v53 = vrot.slane %v310_v40, 7 }
  0x51   : > { %v763_v34 = vsel %vm688_vm2, %v760_v44, %v762_v41  ;;  %v394_v20 = vrot.slane %v311_v30, 7  ;;  %v5904_v14 = vpack.i.bf16 %v758_v49, %v756_v50  ;;  %v768_v47 = vsel %vm688_vm2, %v765_v24, %v767_v13 }
  0x52   : > { %v5910_v21 = vpack.i.bf16 %v763_v34, %v761_v22  ;;  %v4243_v55 = vpack.i.bf16 %v5496_v36, %v5499_v37  ;;  %v461_v38 = vsel %vm345_vm0, 0.0, %v393_v53  ;;  %v5936_v30 = vpack.i.bf16 %v5505_v39, %v5517_v48 }
  0x53   : > { %v395_v52 = vsel %vm345_vm0, %v393_v53, %v394_v20  ;;  %v478_v44 = vsel %vm345_vm0, %v394_v20, 0.0  ;;  %v963_v41 = vrot.slane %v461_v38, 1  ;;  %v5931_v20 = vpack.i.bf16 %v5483_v28, %v5486_v29 }
  0x54   : > { %4209 = vrot.lane.b32.xlu1 %v5869_v3, %s5386_s8  ;;  %4214 = vrot.lane.b32.xlu0 %v5871_v59, %s5386_s8  ;;  %v766_v3 = vsel %vm688_vm2, %v764_v35, %v765_v24  ;;  %v964_v35 = vrot.slane %v395_v52, 1  ;;  %v966_v24 = vrot.slane %v478_v44, 1  ;;  %v1064_v50 = vrot.slane %v461_v38, 2 }
  0x55   : > { %v5914_v5 = vpack.i.bf16 %v768_v47, %v766_v3  ;;  %v1065_v49 = vrot.slane %v395_v52, 2  ;;  %v1067_v22 = vrot.slane %v478_v44, 2  ;;  %v5942_v34 = vpack.i.bf16 %v5543_v4, %v5531_v57 }
  0x56   : > { %v965_v13 = vsel %vm511_vm1, %v963_v41, %v964_v35  ;;  %v967_v3 = vsel %vm511_vm1, %v964_v35, %v966_v24  ;;  %v5954_v44 = vpack.i.bf16 %v395_v52, %v461_v38  ;;  %v5960_v35 = vpack.i.bf16 %v5573_v25, %v5576_v26 }
  0x57   : > { %v5925_v40 = vpack.i.bf16 %v967_v3, %v965_v13  ;;  %v1066_v53 = vsel %vm688_vm2, %v1064_v50, %v1065_v49  ;;  %v1068_v47 = vsel %vm688_vm2, %v1065_v49, %v1067_v22  ;;  %v5966_v24 = vpack.i.bf16 %v5599_v56, %v5602_v58  ;;  %v8991_v56 = vld [vmem:[#allocation41_spill] sm:$0xff] }
  0x58   : > { %4219 = vrot.lane.b32.xlu1 %v5887_v54, %s5386_s8  ;;  %4224 = vrot.lane.b32.xlu0 %v5896_v27, %s5386_s8  ;;  %v5952_v41 = vpack.i.bf16 %v1068_v47, %v1066_v53  ;;  %v5972_v52 = vpack.i.bf16 %v5613_v6, %v5616_v7  ;;  %v5978_v38 = vpack.i.bf16 %v5633_v31, %v5636_v32  ;;  %v8979_v47 = vld [vmem:[#allocation5_spill] sm:$0xff]  ;;  %v8988_v32 = vld [vmem:[#allocation31_spill] sm:$0xff]  ;;  %v8989_v7 = vld [vmem:[#allocation34_spill] sm:$0xff]  ;;  %vm1684_vm11 = vcmask 261120  }
  0x59   : > { %8978 = vst [vmem:[#allocation43_spill] sm:$0xff] %v5925_v40  ;;  %v5984_v13 = vpack.i.bf16 %v5656_v0, %v5659_v10  ;;  %v5990_v3 = vpack.i.bf16 %v5673_v23, %v5676_v33  ;;  %v5996_v50 = vpack.i.bf16 %v5703_v45, %v5694_v63  ;;  %v6002_v49 = vpack.i.bf16 %v5713_v2, %v5716_v51  ;;  %v8983_v51 = vld [vmem:[#allocation16_spill] sm:$0xff]  ;;  %v8985_v45 = vld [vmem:[#allocation22_spill] sm:$0xff]  ;;  %v8986_v23 = vld [vmem:[#allocation25_spill] sm:$0xff] }
  0x5a   : > { %v6008_v22 = vpack.i.bf16 %v5733_v1, %v5736_v19  ;;  %v6014_v53 = vpack.i.bf16 %v5760_v17, %v5763_v42  ;;  %v8980_v19 = vld [vmem:[#allocation7_spill] sm:$0xff]  ;;  %v8981_v42 = vld [vmem:[#allocation10_spill] sm:$0xff]  ;;  %v8982_v17 = vld [vmem:[#allocation13_spill] sm:$0xff]  ;;  %vm1753_vm12 = vcmask 293888  }
  0x5b   : > { %v8987_v10 = vld [vmem:[#allocation28_spill] sm:$0xff]  ;;  %v8990_v6 = vld [vmem:[#allocation37_spill] sm:$0xff] }
  0x5c   : > { %4229 = vrot.lane.b32.xlu1 %v5904_v14, %s5386_s8  ;;  %4234 = vrot.lane.b32.xlu0 %v5910_v21, %s5386_s8 }
  0x60   : > { %4239 = vrot.lane.b32.xlu1 %v5914_v5, %s5386_s8  ;;  %4244 = vrot.lane.b32.xlu0 %v4243_v55, %s5387_s9  ;;  %v5950_v55 = vpack.i.bf16 %v5558_v11, %v5553_v9 }
  0x64   : > { %4249 = vrot.lane.b32.xlu1 %v5931_v20, %s5387_s9  ;;  %4254 = vrot.lane.b32.xlu0 %v5936_v30, %s5387_s9 }
  0x68   : > { %4259 = vrot.lane.b32.xlu1 %v5942_v34, %s5387_s9  ;;  %4264 = vrot.lane.b32.xlu0 %v5950_v55, %s5387_s9 }
  0x6c   : > { %4269 = vrot.lane.b32.xlu1 %v5960_v35, %s5387_s9  ;;  %4274 = vrot.lane.b32.xlu0 %v5966_v24, %s5387_s9 }
  0x70   : > { %4279 = vrot.lane.b32.xlu1 %v5972_v52, %s5387_s9  ;;  %4284 = vrot.lane.b32.xlu0 %v5978_v38, %s5387_s9 }
  0x74   : > { %4289 = vrot.lane.b32.xlu1 %v5984_v13, %s5387_s9  ;;  %4294 = vrot.lane.b32.xlu0 %v5990_v3, %s5387_s9 }
  0x78   : > { %4299 = vrot.lane.b32.xlu1 %v5996_v50, %s5387_s9  ;;  %4304 = vrot.lane.b32.xlu0 %v6002_v49, %s5387_s9 }
  0x7c   : > { %4309 = vrot.lane.b32.xlu1 %v6008_v22, %s5387_s9  ;;  %4314 = vrot.lane.b32.xlu0 %v6014_v53, %s5387_s9 }
  0x80   : > { %4319 = vrot.lane.b32.xlu1 %v5954_v44, %s5387_s9  ;;  %4324 = vrot.lane.b32.xlu0 %v5534_v60, %s5388_s10  ;;  %v8984_v60 = vld [vmem:[#allocation19_spill] sm:$0xff] }
  0x84   : > { %4329 = vrot.lane.b32.xlu1 %v8979_v47, %s5388_s10  ;;  %4334 = vrot.lane.b32.xlu0 %v8980_v19, %s5388_s10 }
  0x86   : > { %v6032_v1 = vpop.permute.xlu0 %4084 }
  0x88   : > { %4339 = vrot.lane.b32.xlu1 %v8981_v42, %s5388_s10  ;;  %4344 = vrot.lane.b32.xlu0 %v8982_v17, %s5388_s10 }
  0x8c   : > { %4349 = vrot.lane.b32.xlu1 %v8983_v51, %s5388_s10  ;;  %v6036_v2 = vpop.permute.xlu1 %4094  ;;  %4354 = vrot.lane.b32.xlu0 %v8984_v60, %s5388_s10 }
  0x8e   : > { %v6040_v63 = vpop.permute.xlu0 %4089 }
  0x90   : > { %4359 = vrot.lane.b32.xlu1 %v8985_v45, %s5388_s10  ;;  %v6044_v33 = vpop.permute.xlu1 %4099  ;;  %4364 = vrot.lane.b32.xlu0 %v8986_v23, %s5388_s10 }
  0x94   : > { %4369 = vrot.lane.b32.xlu1 %v8987_v10, %s5388_s10  ;;  %v6050_v0 = vpop.permute.xlu0 %4104  ;;  %4374 = vrot.lane.b32.xlu0 %v8988_v32, %s5388_s10 }
  0x96   : > { %v6054_v31 = vpop.permute.xlu1 %4109 }
  0x98   : > { %4379 = vrot.lane.b32.xlu1 %v8989_v7, %s5388_s10  ;;  %4384 = vrot.lane.b32.xlu0 %v8990_v6, %s5388_s10  ;;  %v6060_v58 = vpop.permute.xlu0 %4114 }
  0x9c   : > { %4389 = vrot.lane.b32.xlu1 %v8991_v56, %s5388_s10  ;;  %v6064_v26 = vpop.permute.xlu1 %4119  ;;  %4394 = vrot.lane.b32.xlu0 %v5783_v43, %s5388_s10 }
  0x9e   : > { %v6068_v25 = vpop.permute.xlu0 %4124 }
  0x9f   : > { %8992 = vst [vmem:[#allocation5_spill] sm:$0xff] %v6068_v25 }
  0xa0   : > { %4399 = vrot.lane.b32.xlu1 %v5925_v40, %s5388_s10  ;;  %4404 = vrot.lane.b32.xlu0 %v5788_v46, %s5389_s11  ;;  %v6074_v9 = vpop.permute.xlu1 %4129 }
  0xa1   : > { %8993 = vst [vmem:[#allocation7_spill] sm:$0xff] %v6074_v9 }
  0xa4   : > { %4409 = vrot.lane.b32.xlu1 %v5797_v61, %s5389_s11  ;;  %v6078_v11 = vpop.permute.xlu0 %4134  ;;  %4414 = vrot.lane.b32.xlu0 %v5811_v62, %s5389_s11 }
  0xa5   : > { %8994 = vst [vmem:[#allocation10_spill] sm:$0xff] %v6078_v11 }
  0xa6   : > { %v6082_v57 = vpop.permute.xlu1 %4139 }
  0xa7   : > { %8995 = vst [vmem:[#allocation13_spill] sm:$0xff] %v6082_v57  ;;  %v8999_v57 = vld [vmem:[#allocation42_spill] sm:$0xff] }
  0xa8   : > { %4419 = vrot.lane.b32.xlu1 %v5823_v16, %s5389_s11  ;;  %4424 = vrot.lane.b32.xlu0 %v5831_v18, %s5389_s11 }
  0xaa   : > { %v6088_v40 = vpop.permute.xlu0 %4144 }
  0xab   : > { %8996 = vst [vmem:[#allocation16_spill] sm:$0xff] %v6088_v40 }
  0xac   : > { %4429 = vrot.lane.b32.xlu1 %v5844_v8, %s5389_s11  ;;  %v6092_v46 = vpop.permute.xlu1 %4149  ;;  %4434 = vrot.lane.b32.xlu0 %v5849_v12, %s5389_s11 }
  0xad   : > { %8997 = vst [vmem:[#allocation19_spill] sm:$0xff] %v6092_v46 }
  0xae   : > { %v6096_v11 = vpop.permute.xlu0 %4154 }
  0xaf   : > { %8998 = vst [vmem:[#allocation22_spill] sm:$0xff] %v6096_v11 }
  0xb0   : > { %4439 = vrot.lane.b32.xlu1 %v5851_v15, %s5389_s11  ;;  %4444 = vrot.lane.b32.xlu0 %v8999_v57, %s5389_s11 }
  0xb2   : > { %v6102_v9 = vpop.permute.xlu1 %4159  ;;  %v6104_v25 = vpop.permute.xlu0 %4164 }
  0xb3   : > { %9000 = vst [vmem:[#allocation25_spill] sm:$0xff] %v6102_v9  ;;  %9001 = vst [vmem:[#allocation28_spill] sm:$0xff] %v6104_v25 }
  0xb4   : > { %4449 = vrot.lane.b32.xlu1 %v5871_v59, %s5389_s11  ;;  %4454 = vrot.lane.b32.xlu0 %v5887_v54, %s5389_s11 }
  0xb6   : > { %v6110_v46 = vpop.permute.xlu1 %4169  ;;  %v6112_v40 = vpop.permute.xlu0 %4174 }
  0xb7   : > { %9002 = vst [vmem:[#allocation31_spill] sm:$0xff] %v6110_v46 }
  0xb8   : > { %4459 = vrot.lane.b32.xlu1 %v5896_v27, %s5389_s11  ;;  %4464 = vrot.lane.b32.xlu0 %v5904_v14, %s5389_s11 }
  0xba   : > { %v6118_v11 = vpop.permute.xlu1 %4179  ;;  %v6120_v9 = vpop.permute.xlu0 %4184 }
  0xbb   : > { %9003 = vst [vmem:[#allocation34_spill] sm:$0xff] %v6118_v11  ;;  %9004 = vst [vmem:[#allocation37_spill] sm:$0xff] %v6120_v9 }
  0xbc   : > { %4469 = vrot.lane.b32.xlu1 %v5910_v21, %s5389_s11  ;;  %4474 = vrot.lane.b32.xlu0 %v5914_v5, %s5389_s11 }
  0xbe   : > { %v6126_v25 = vpop.permute.xlu1 %4189  ;;  %v6128_v46 = vpop.permute.xlu0 %4194 }
  0xbf   : > { %9005 = vst [vmem:[#allocation41_spill] sm:$0xff] %v6126_v25  ;;  %9006 = vst [vmem:[#allocation42_spill] sm:$0xff] %v6128_v46 }
  0xc0   : > { %4479 = vrot.lane.b32.xlu1 %v5952_v41, %s5389_s11  ;;  %4484 = vrot.lane.b32.xlu0 %v5931_v20, %s5390_s12 }
  0xc2   : > { %v6134_v11 = vpop.permute.xlu1 %4199  ;;  %v6136_v9 = vpop.permute.xlu0 %4204 }
  0xc3   : > { %9007 = vst [vmem:[#allocation44_spill] sm:$0xff] %v6134_v11 }
  0xc4   : > { %4489 = vrot.lane.b32.xlu1 %v5936_v30, %s5390_s12  ;;  %4494 = vrot.lane.b32.xlu0 %v5942_v34, %s5390_s12 }
  0xc6   : > { %v6142_v25 = vpop.permute.xlu1 %4209  ;;  %v6144_v46 = vpop.permute.xlu0 %4214 }
  0xc8   : > { %4499 = vrot.lane.b32.xlu1 %v5950_v55, %s5390_s12  ;;  %4504 = vrot.lane.b32.xlu0 %v5960_v35, %s5390_s12 }
  0xca   : > { %v6150_v20 = vpop.permute.xlu1 %4219  ;;  %v6152_v11 = vpop.permute.xlu0 %4224 }
  0xcc   : > { %4509 = vrot.lane.b32.xlu1 %v5966_v24, %s5390_s12  ;;  %4514 = vrot.lane.b32.xlu0 %v5972_v52, %s5390_s12 }
  0xce   : > { %v6158_v30 = vpop.permute.xlu1 %4229  ;;  %v6160_v34 = vpop.permute.xlu0 %4234 }
  0xd0   : > { %4519 = vrot.lane.b32.xlu1 %v5978_v38, %s5390_s12  ;;  %4524 = vrot.lane.b32.xlu0 %v5984_v13, %s5390_s12  ;;  %v5338_v38 = vld [vmem:[%s8777_s1 + $0x10] ss:$0 sps:$4 sm:$0x33]  }
  0xd1   : > { %4064 = vmatprep.subr.msk.bf16.mxu0 %vm1802_vm3, %v5338_v38  ;;  %v1804_v13 = vsel %vm1802_vm3, %v5338_v38, 0 }
  0xd2   : > { %v6166_v55 = vpop.permute.xlu1 %4239  ;;  %v6168_v35 = vpop.permute.xlu0 %4244  ;;  %3989 = vmatpush3.bf16.msra.mxu0 %v1804_v13  ;;  %v5340_v13 = vld [vmem:[%s8777_s1] sm:$0xff]  }
  0xd3   : > { %9008 = vst [vmem:[#allocation45_spill] sm:$0xff] %v6168_v35 }
  0xd4   : > { %4529 = vrot.lane.b32.xlu1 %v5990_v3, %s5390_s12  ;;  %4534 = vrot.lane.b32.xlu0 %v5996_v50, %s5390_s12 }
  0xd6   : > { %v6174_v24 = vpop.permute.xlu1 %4249  ;;  %v6176_v52 = vpop.permute.xlu0 %4254 }
  0xd7   : > { %9009 = vst [vmem:[#allocation46_spill] sm:$0xff] %v6174_v24  ;;  %9010 = vst [vmem:[#allocation47_spill] sm:$0xff] %v6176_v52  ;;  %v5339_v52 = vld [vmem:[%s8777_s1 + $0x8] sm:$0xff]   ;;  %v9012_v24 = vld [vmem:[#allocation2_spill] sm:$0xff] }
  0xd8   : > { %4539 = vrot.lane.b32.xlu1 %v6002_v49, %s5390_s12  ;;  %4544 = vrot.lane.b32.xlu0 %v6008_v22, %s5390_s12  ;;  %v9011_v49 = vld [vmem:[#allocation3_spill] sm:$0xff] }
  0xd9   : > { %v4558_v35 = vpack.i.bf16 %v9012_v24, %v9011_v49  ;;  %3990 = vmatprep.subr.bf16.mxu0 %v5339_v52 }
  0xda   : > { %v6187_v3 = vpop.permute.xlu1 %4259  ;;  %v6189_v50 = vpop.permute.xlu0 %4264  ;;  %3991 = vmatpush3.bf16.msra.mxu0 %v5339_v52 }
  0xdb   : > { %3992 = vmatprep.subr.bf16.mxu0 %v5340_v13 }
  0xdc   : > { %4549 = vrot.lane.b32.xlu1 %v6014_v53, %s5390_s12  ;;  %4554 = vrot.lane.b32.xlu0 %v5954_v44, %s5390_s12 }
  0xde   : > { %v6200_v22 = vpop.permute.xlu1 %4269  ;;  %v6202_v38 = vpop.permute.xlu0 %4274  ;;  %3993 = vmatpush3.bf16.msra.mxu0 %v5340_v13 }
  0xdf   : > { %9013 = vst [vmem:[#allocation3_spill] sm:$0xff] %v6202_v38 }
  0xe0   : > { %4559 = vrot.lane.b32.xlu1 %v4558_v35, %s5390_s12  ;;  %4564 = vrot.lane.b32.xlu0 %v8979_v47, %s5391_s19 }
  0xe2   : > { %v6210_v53 = vpop.permute.xlu1 %4279  ;;  %v6212_v44 = vpop.permute.xlu0 %4284 }
  0xe4   : > { %4569 = vrot.lane.b32.xlu1 %v8980_v19, %s5391_s19  ;;  %4574 = vrot.lane.b32.xlu0 %v8981_v42, %s5391_s19 }
  0xe6   : > { %v6218_v52 = vpop.permute.xlu1 %4289  ;;  %v6220_v38 = vpop.permute.xlu0 %4294 }
  0xe7   : > { %9014 = vst [vmem:[#allocation2_spill] sm:$0xff] %v6220_v38 }
  0xe8   : > { %4579 = vrot.lane.b32.xlu1 %v8982_v17, %s5391_s19  ;;  %4584 = vrot.lane.b32.xlu0 %v5797_v61, %s5392_s20 }
  0xea   : > { %v6226_v47 = vpop.permute.xlu1 %4299  ;;  %v6228_v35 = vpop.permute.xlu0 %4304 }
  0xeb   : > { %9015 = vst [vmem:[#allocation48_spill] sm:$0xff] %v6226_v47  ;;  %9016 = vst [vmem:[#allocation49_spill] sm:$0xff] %v6228_v35 }
  0xec   : > { %4589 = vrot.lane.b32.xlu1 %v5811_v62, %s5392_s20  ;;  %4594 = vrot.lane.b32.xlu0 %v5823_v16, %s5392_s20 }
  0xee   : > { %v6234_v19 = vpop.permute.xlu1 %4309  ;;  %v6236_v42 = vpop.permute.xlu0 %4314 }
  0xef   : > { %9017 = vst [vmem:[#allocation50_spill] sm:$0xff] %v6234_v19  ;;  %9018 = vst [vmem:[#allocation51_spill] sm:$0xff] %v6236_v42 }
  0xf0   : > { %4599 = vrot.lane.b32.xlu1 %v5831_v18, %s5392_s20  ;;  %4604 = vrot.lane.b32.xlu0 %v8983_v51, %s5391_s19 }
  0xf2   : > { %v6242_v17 = vpop.permute.xlu1 %4319  ;;  %v6244_v61 = vpop.permute.xlu0 %4324 }
  0xf3   : > { %9019 = vst [vmem:[#allocation52_spill] sm:$0xff] %v6242_v17  ;;  %9020 = vst [vmem:[#allocation53_spill] sm:$0xff] %v6244_v61 }
  0xf4   : > { %4609 = vrot.lane.b32.xlu1 %v8984_v60, %s5391_s19  ;;  %4614 = vrot.lane.b32.xlu0 %v5844_v8, %s5392_s20 }
  0xf6   : > { %v6250_v62 = vpop.permute.xlu1 %4329  ;;  %v6252_v16 = vpop.permute.xlu0 %4334 }
  0xf7   : > { %9021 = vst [vmem:[#allocation54_spill] sm:$0xff] %v6250_v62  ;;  %9022 = vst [vmem:[#allocation55_spill] sm:$0xff] %v6252_v16 }
  0xf8   : > { %4619 = vrot.lane.b32.xlu1 %v5849_v12, %s5392_s20  ;;  %4624 = vrot.lane.b32.xlu0 %v8985_v45, %s5391_s19 }
  0xfa   : > { %v6258_v51 = vpop.permute.xlu1 %4339  ;;  %v6260_v18 = vpop.permute.xlu0 %4344 }
  0xfb   : > { %9023 = vst [vmem:[#allocation56_spill] sm:$0xff] %v6258_v51  ;;  %9024 = vst [vmem:[#allocation57_spill] sm:$0xff] %v6260_v18 }
  0xfc   : > { %4629 = vrot.lane.b32.xlu1 %v8986_v23, %s5391_s19  ;;  %4634 = vrot.lane.b32.xlu0 %v5851_v15, %s5392_s20 }
  0xfe   : > { %v6266_v8 = vpop.permute.xlu1 %4349  ;;  %v6268_v60 = vpop.permute.xlu0 %4354 }
  0xff   : > { %9025 = vst [vmem:[#allocation58_spill] sm:$0xff] %v6266_v8  ;;  %9026 = vst [vmem:[#allocation59_spill] sm:$0xff] %v6268_v60  ;;  %v9061_v8 = vld [vmem:[#allocation22_spill] sm:$0xff] }
 0x100   : > { %4639 = vrot.lane.b32.xlu1 %v8999_v57, %s5392_s20  ;;  %4644 = vrot.lane.b32.xlu0 %v8987_v10, %s5391_s19 }
 0x102   : > { %v6274_v45 = vpop.permute.xlu1 %4359  ;;  %v6276_v12 = vpop.permute.xlu0 %4364 }
 0x103   : > { %9027 = vst [vmem:[#allocation60_spill] sm:$0xff] %v6274_v45  ;;  %9028 = vst [vmem:[#allocation61_spill] sm:$0xff] %v6276_v12  ;;  %v9054_v12 = vld [vmem:[#allocation18_spill] sm:$0xff] }
 0x104   : > { %4649 = vrot.lane.b32.xlu1 %v8988_v32, %s5391_s19  ;;  %4654 = vrot.lane.b32.xlu0 %v5871_v59, %s5392_s20  ;;  %v4087_v59 = vunpack.i.h.bf16 %v6032_v1 }
 0x106   : > { %v6282_v23 = vpop.permute.xlu1 %4369  ;;  %v6284_v15 = vpop.permute.xlu0 %4374 }
 0x107   : > { %9029 = vst [vmem:[#allocation62_spill] sm:$0xff] %v6282_v23  ;;  %9030 = vst [vmem:[#allocation63_spill] sm:$0xff] %v6284_v15 }
 0x108   : > { %4659 = vrot.lane.b32.xlu1 %v5887_v54, %s5392_s20  ;;  %4664 = vrot.lane.b32.xlu0 %v8989_v7, %s5391_s19  ;;  %v4086_v54 = vunpack.i.l.bf16 %v6032_v1  ;;  %v4097_v7 = vunpack.i.h.bf16 %v6036_v2  ;;  %v4091_v1 = vunpack.i.l.bf16 %v6040_v63 }
 0x10a   : > { %v6290_v57 = vpop.permute.xlu1 %4379  ;;  %v6292_v10 = vpop.permute.xlu0 %4384 }
 0x10b   : > { %9031 = vst [vmem:[#allocation64_spill] sm:$0xff] %v6290_v57  ;;  %9032 = vst [vmem:[#allocation65_spill] sm:$0xff] %v6292_v10  ;;  %v4096_v10 = vunpack.i.l.bf16 %v6036_v2  ;;  %v6323_v2 = vsel %vm1453_vm4, %v9011_v49, %v4086_v54  ;;  %v4107_v57 = vunpack.i.h.bf16 %v6050_v0  ;;  %v4112_v49 = vunpack.i.h.bf16 %v6054_v31 }
 0x10c   : > { %4669 = vrot.lane.b32.xlu1 %v8990_v6, %s5391_s19  ;;  %4674 = vrot.lane.b32.xlu0 %v5896_v27, %s5392_s20  ;;  %v4092_v6 = vunpack.i.h.bf16 %v6040_v63  ;;  %v4116_v54 = vunpack.i.l.bf16 %v6060_v58 }
 0x10d   : > { %v6335_v63 = vsel %vm1453_vm4, %v5486_v29, %v4096_v10  ;;  %v6352_v29 = vsel %vm1453_vm4, %v5499_v37, %v4091_v1  ;;  %v9039_v37 = vld [vmem:[#allocation5_spill] sm:$0xff] }
 0x10e   : > { %v6298_v32 = vpop.permute.xlu1 %4389  ;;  %v6301_v13 = vpop.permute.xlu0 %4394  ;;  %v4126_v1 = vunpack.i.l.bf16 %v9039_v37 }
 0x10f   : > { %9033 = vst [vmem:[#allocation66_spill] sm:$0xff] %v6298_v32  ;;  %9034 = vst [vmem:[#allocation67_spill] sm:$0xff] %v6301_v13  ;;  %v6315_v13 = vsel %vm1453_vm4, %v9012_v24, %v4087_v59  ;;  %v4102_v32 = vunpack.i.h.bf16 %v6044_v33  ;;  %v6331_v24 = vsel %vm1453_vm4, %v5483_v28, %v4097_v7  ;;  %v4106_v59 = vunpack.i.l.bf16 %v6050_v0 }
 0x110   : > { %4679 = vrot.lane.b32.xlu1 %v5904_v14, %s5392_s20  ;;  %4684 = vrot.lane.b32.xlu0 %v8991_v56, %s5391_s19  ;;  %v4101_v56 = vunpack.i.l.bf16 %v6044_v33  ;;  %v6343_v33 = vsel %vm1453_vm4, %v5496_v36, %v4092_v6  ;;  %v4117_v28 = vunpack.i.h.bf16 %v6060_v58  ;;  %v4121_v36 = vunpack.i.l.bf16 %v6064_v26 }
 0x111   : > { %v6356_v0 = vsel %vm1453_vm4, %v5505_v39, %v4102_v32  ;;  %v6368_v58 = vsel %vm1453_vm4, %v5543_v4, %v4107_v57  ;;  %v4127_v6 = vunpack.i.h.bf16 %v9039_v37  ;;  %v9040_v39 = vld [vmem:[#allocation6_spill] sm:$0xff]  ;;  %v9041_v32 = vld [vmem:[#allocation9_spill] sm:$0xff]  ;;  %v9043_v57 = vld [vmem:[#allocation43_spill] sm:$0xff] }
 0x112   : > { %v6311_v27 = vpop.permute.xlu1 %4399  ;;  %v6319_v14 = vpop.permute.xlu0 %4404  ;;  %v9044_v37 = vld [vmem:[#allocation8_spill] sm:$0xff] }
 0x113   : > { %9035 = vst [vmem:[#allocation68_spill] sm:$0xff] %v6311_v27  ;;  %9036 = vst [vmem:[#allocation69_spill] sm:$0xff] %v6319_v14  ;;  %v6380_v27 = vsel %vm1453_vm4, %v9041_v32, %v4112_v49  ;;  %v9047_v32 = vld [vmem:[#allocation10_spill] sm:$0xff] }
 0x114   : > { %4689 = vrot.lane.b32.xlu1 %v5783_v43, %s5391_s19  ;;  %4694 = vrot.lane.b32.xlu0 %v5910_v21, %s5392_s20  ;;  %v4111_v43 = vunpack.i.l.bf16 %v6054_v31  ;;  %v4122_v21 = vunpack.i.h.bf16 %v6064_v26  ;;  %v6364_v31 = vsel %vm1453_vm4, %v5517_v48, %v4101_v56  ;;  %v6376_v26 = vsel %vm1453_vm4, %v9040_v39, %v4106_v59  ;;  %v9042_v48 = vld [vmem:[#allocation7_spill] sm:$0xff]  ;;  %v9046_v39 = vld [vmem:[#allocation12_spill] sm:$0xff] }
 0x115   : > { %v4132_v56 = vunpack.i.h.bf16 %v9042_v48  ;;  %v4131_v4 = vunpack.i.l.bf16 %v9042_v48  ;;  %v6396_v49 = vsel %vm1453_vm4, %v9046_v39, %v4116_v54  ;;  %v9049_v48 = vld [vmem:[#allocation14_spill] sm:$0xff]  ;;  %v9053_v54 = vld [vmem:[#allocation17_spill] sm:$0xff] }
 0x116   : > { %v6348_v7 = vpop.permute.xlu1 %4409  ;;  %v6360_v10 = vpop.permute.xlu0 %4414  ;;  %v6403_v15 = vsel %vm1453_vm4, %v9049_v48, %v4122_v21  ;;  %v6415_v39 = vsel %vm1453_vm4, %v9053_v54, %v4127_v6  ;;  %v9055_v48 = vld [vmem:[#allocation16_spill] sm:$0xff]  ;;  %v9059_v54 = vld [vmem:[#allocation19_spill] sm:$0xff] }
 0x117   : > { %9037 = vst [vmem:[#allocation70_spill] sm:$0xff] %v6348_v7  ;;  %9038 = vst [vmem:[#allocation71_spill] sm:$0xff] %v6360_v10  ;;  %v6388_v10 = vsel %vm1453_vm4, %v9044_v37, %v4111_v43  ;;  %v4137_v7 = vunpack.i.h.bf16 %v9047_v32  ;;  %v4136_v37 = vunpack.i.l.bf16 %v9047_v32  ;;  %v4147_v45 = vunpack.i.h.bf16 %v9055_v48  ;;  %v9057_v32 = vld [vmem:[#allocation20_spill] sm:$0xff] }
 0x118   : > { %4699 = vrot.lane.b32.xlu1 %v5914_v5, %s5392_s20  ;;  %4704 = vrot.lane.b32.xlu0 %v9043_v57, %s5391_s19  ;;  %v9045_v5 = vld [vmem:[#allocation11_spill] sm:$0xff]  ;;  %v4146_v6 = vunpack.i.l.bf16 %v9055_v48  ;;  %v9064_v48 = vld [vmem:[#allocation26_spill] sm:$0xff] }
 0x119   : > { %v6392_v59 = vsel %vm1453_vm4, %v9045_v5, %v4117_v28  ;;  %v9050_v57 = vld [vmem:[#allocation15_spill] sm:$0xff]  ;;  %v9051_v28 = vld [vmem:[#allocation13_spill] sm:$0xff] }
 0x11a   : > { %v6399_v14 = vpop.permute.xlu1 %4419  ;;  %v6407_v43 = vsel %vm1453_vm4, %v9050_v57, %v4121_v36  ;;  %v4142_v5 = vunpack.i.h.bf16 %v9051_v28  ;;  %v6411_v23 = vpop.permute.xlu0 %4424  ;;  %v4141_v21 = vunpack.i.l.bf16 %v9051_v28  ;;  %v9056_v36 = vld [vmem:[#allocation4_spill] sm:$0xff]  ;;  %v6427_v57 = vsel %vm1453_vm4, %v9057_v32, %v4132_v56 }
 0x11b   : > { %9048 = vst [vmem:[#allocation5_spill] sm:$0xff] %v6399_v14  ;;  %9052 = vst [vmem:[#allocation6_spill] sm:$0xff] %v6411_v23  ;;  %v6419_v14 = vsel %vm1453_vm4, %v9054_v12, %v4126_v1  ;;  %v9058_v23 = vld [vmem:[#allocation21_spill] sm:$0xff]  ;;  %v4152_v12 = vunpack.i.h.bf16 %v9059_v54  ;;  %v9060_v1 = vld [vmem:[#allocation23_spill] sm:$0xff]  ;;  %v4157_v56 = vunpack.i.h.bf16 %v9061_v8  ;;  %v4156_v32 = vunpack.i.l.bf16 %v9061_v8 }
 0x11c   : > { %4709 = vrot.lane.b32.xlu1 %v9056_v36, %s5391_s19  ;;  %v6431_v60 = vsel %vm1453_vm4, %v9058_v23, %v4131_v4  ;;  %4714 = vrot.lane.b32.xlu0 %v5952_v41, %s5392_s20  ;;  %v6439_v28 = vsel %vm1453_vm4, %v9060_v1, %v4137_v7  ;;  %v4151_v36 = vunpack.i.l.bf16 %v9059_v54  ;;  %v9063_v23 = vld [vmem:[#allocation24_spill] sm:$0xff]  ;;  %v6452_v51 = vsel %vm1453_vm4, %v9064_v48, %v4142_v5  ;;  %v9065_v41 = vld [vmem:[#allocation25_spill] sm:$0xff]  ;;  %v9067_v54 = vld [vmem:[#allocation27_spill] sm:$0xff] }
 0x11d   : > { %v6448_v4 = vsel %vm1453_vm4, %v9063_v23, %v4136_v37  ;;  %v4162_v16 = vunpack.i.h.bf16 %v9065_v41  ;;  %v4161_v7 = vunpack.i.l.bf16 %v9065_v41  ;;  %v6460_v62 = vsel %vm1453_vm4, %v9067_v54, %v4141_v21  ;;  %v9068_v8 = vld [vmem:[#allocation30_spill] sm:$0xff]  ;;  %v9069_v37 = vld [vmem:[#allocation28_spill] sm:$0xff]  ;;  %v9071_v48 = vld [vmem:[#allocation29_spill] sm:$0xff] }
 0x11e   : > { %v6444_v18 = vpop.permute.xlu1 %4429  ;;  %v6456_v1 = vpop.permute.xlu0 %4434  ;;  %v4167_v23 = vunpack.i.h.bf16 %v9069_v37  ;;  %v4166_v61 = vunpack.i.l.bf16 %v9069_v37  ;;  %v9070_v5 = vld [vmem:[#allocation38_spill] sm:$0xff]  ;;  %v6472_v41 = vsel %vm1453_vm4, %v9071_v48, %v4146_v6  ;;  %v9073_v21 = vld [vmem:[#allocation31_spill] sm:$0xff]  ;;  %v4177_v48 = vunpack.i.h.bf16 %v6112_v40 }
 0x11f   : > { %9062 = vst [vmem:[#allocation9_spill] sm:$0xff] %v6444_v18  ;;  %9066 = vst [vmem:[#allocation7_spill] sm:$0xff] %v6456_v1  ;;  %v6464_v18 = vsel %vm1453_vm4, %v9068_v8, %v4147_v45  ;;  %v9072_v1 = vld [vmem:[#allocation32_spill] sm:$0xff]  ;;  %v4172_v54 = vunpack.i.h.bf16 %v9073_v21  ;;  %v4171_v45 = vunpack.i.l.bf16 %v9073_v21  ;;  %v9074_v8 = vld [vmem:[#allocation33_spill] sm:$0xff] }
 0x120   : > { %4719 = vrot.lane.b32.xlu1 %v9070_v5, %s5392_s20  ;;  %v6476_v17 = vsel %vm1453_vm4, %v9072_v1, %v4152_v12  ;;  %v6482_v42 = vsel %vm1453_vm4, %v9074_v8, %v4151_v36  ;;  %v9075_v37 = vld [vmem:[#allocation35_spill] sm:$0xff]  ;;  %v9076_v5 = vld [vmem:[#allocation36_spill] sm:$0xff]  ;;  %v4176_v8 = vunpack.i.l.bf16 %v6112_v40 }
 0x121   : > { %v6486_v19 = vsel %vm1453_vm4, %v9075_v37, %v4157_v56  ;;  %v6490_v6 = vsel %vm1453_vm4, %v9076_v5, %v4156_v32  ;;  %v9078_v1 = vld [vmem:[#allocation39_spill] sm:$0xff]  ;;  %v9079_v21 = vld [vmem:[#allocation40_spill] sm:$0xff]  ;;  %v9080_v56 = vld [vmem:[#allocation34_spill] sm:$0xff]  ;;  %v6509_v32 = vsel %vm1486_vm5, %v6315_v13, %v4167_v23  ;;  %v6513_v5 = vsel %vm1486_vm5, %v6323_v2, %v4166_v61 }
 0x122   : > { %v6493_v12 = vpop.permute.xlu1 %4439  ;;  %v6497_v35 = vsel %vm1453_vm4, %v9078_v1, %v4162_v16  ;;  %v6501_v36 = vsel %vm1453_vm4, %v9079_v21, %v4161_v7  ;;  %v4182_v37 = vunpack.i.h.bf16 %v9080_v56  ;;  %v6505_v47 = vpop.permute.xlu0 %4444  ;;  %9082 = vst [vmem:[#allocation11_spill] sm:$0xff] %v6509_v32  ;;  %9083 = vst [vmem:[#allocation12_spill] sm:$0xff] %v6513_v5  ;;  %v4181_v16 = vunpack.i.l.bf16 %v9080_v56  ;;  %v9084_v1 = vld [vmem:[#allocation37_spill] sm:$0xff]  ;;  %v9086_v56 = vld [vmem:[#allocation42_spill] sm:$0xff] }
 0x123   : > { %9077 = vst [vmem:[#allocation43_spill] sm:$0xff] %v6493_v12  ;;  %9081 = vst [vmem:[#allocation8_spill] sm:$0xff] %v6505_v47  ;;  %v4186_v12 = vunpack.i.l.bf16 %v9084_v1  ;;  %v6519_v7 = vsel %vm1486_vm5, %v6352_v29, %v4171_v45  ;;  %v6523_v40 = vsel %vm1486_vm5, %v6343_v33, %v4172_v54  ;;  %v4187_v21 = vunpack.i.h.bf16 %v9084_v1  ;;  %v9085_v13 = vld [vmem:[#allocation41_spill] sm:$0xff]  ;;  %v9087_v45 = vld [vmem:[#allocation44_spill] sm:$0xff] }
 0x124   : > { %v4192_v23 = vunpack.i.h.bf16 %v9085_v13  ;;  %v6529_v61 = vsel %vm1486_vm5, %v6331_v24, %v4177_v48  ;;  %v4191_v2 = vunpack.i.l.bf16 %v9085_v13  ;;  %v4197_v47 = vunpack.i.h.bf16 %v9086_v56 }
 0x125   : > { %v4196_v38 = vunpack.i.l.bf16 %v9086_v56  ;;  %v6538_v33 = vsel %vm1486_vm5, %v6335_v63, %v4176_v8  ;;  %v6542_v54 = vsel %vm1486_vm5, %v6356_v0, %v4182_v37  ;;  %v4202_v1 = vunpack.i.h.bf16 %v9087_v45 }
 0x126   : > { %v6534_v29 = vpop.permute.xlu1 %4449  ;;  %v4201_v24 = vunpack.i.l.bf16 %v9087_v45  ;;  %v6546_v48 = vpop.permute.xlu0 %4454  ;;  %v6550_v13 = vsel %vm1486_vm5, %v6364_v31, %v4181_v16  ;;  %v6554_v56 = vsel %vm1486_vm5, %v6376_v26, %v4186_v12  ;;  %v4207_v63 = vunpack.i.h.bf16 %v6136_v9 }
 0x127   : > { %v4206_v8 = vunpack.i.l.bf16 %v6136_v9  ;;  %v6560_v0 = vsel %vm1486_vm5, %v6368_v58, %v4187_v21  ;;  %v6564_v37 = vsel %vm1486_vm5, %v6380_v27, %v4192_v23  ;;  %v4212_v45 = vunpack.i.h.bf16 %v6142_v25 }
 0x128   : > { %v4211_v31 = vunpack.i.l.bf16 %v6142_v25  ;;  %v6570_v26 = vsel %vm1486_vm5, %v6388_v10, %v4191_v2  ;;  %v6574_v9 = vsel %vm1486_vm5, %v6396_v49, %v4196_v38  ;;  %v6578_v58 = vsel %vm1486_vm5, %v6392_v59, %v4197_v47 }
 0x129   : > { %v4216_v27 = vunpack.i.l.bf16 %v6144_v46  ;;  %v6585_v25 = vsel %vm1486_vm5, %v6403_v15, %v4202_v1  ;;  %v6589_v10 = vsel %vm1486_vm5, %v6407_v43, %v4201_v24  ;;  %v4217_v16 = vunpack.i.h.bf16 %v6144_v46 }
 0x12a   : > { %v6581_v12 = vpop.permute.xlu1 %4459  ;;  %v4222_v38 = vunpack.i.h.bf16 %v6150_v20  ;;  %v6593_v49 = vpop.permute.xlu0 %4464  ;;  %v6597_v47 = vsel %vm1486_vm5, %v6419_v14, %v4206_v8  ;;  %v6601_v59 = vsel %vm1486_vm5, %v6415_v39, %v4207_v63  ;;  %v4221_v15 = vunpack.i.l.bf16 %v6150_v20 }
 0x12b   : > { %v4226_v21 = vunpack.i.l.bf16 %v6152_v11  ;;  %v6607_v43 = vsel %vm1486_vm5, %v6427_v57, %v4212_v45  ;;  %v6611_v46 = vsel %vm1486_vm5, %v6431_v60, %v4211_v31  ;;  %v4227_v23 = vunpack.i.h.bf16 %v6152_v11  ;;  %v9091_v31 = vld [vmem:[#allocation46_spill] sm:$0xff] }
 0x12c   : > { %v4232_v14 = vunpack.i.h.bf16 %v6158_v30  ;;  %v6617_v39 = vsel %vm1486_vm5, %v6448_v4, %v4216_v27  ;;  %v4231_v20 = vunpack.i.l.bf16 %v6158_v30  ;;  %v4237_v2 = vunpack.i.h.bf16 %v6160_v34 }
 0x12d   : > { %v4236_v1 = vunpack.i.l.bf16 %v6160_v34  ;;  %v6626_v60 = vsel %vm1486_vm5, %v6439_v28, %v4217_v16  ;;  %v6630_v11 = vsel %vm1486_vm5, %v6452_v51, %v4222_v38  ;;  %v4242_v24 = vunpack.i.h.bf16 %v6166_v55  ;;  %v9090_v28 = vld [vmem:[#allocation45_spill] sm:$0xff]  ;;  %v9092_v38 = vld [vmem:[#allocation47_spill] sm:$0xff] }
 0x12e   : > { %v6622_v57 = vpop.permute.xlu1 %4469  ;;  %v4241_v4 = vunpack.i.l.bf16 %v6166_v55  ;;  %v6634_v63 = vpop.permute.xlu0 %4474  ;;  %v6638_v30 = vsel %vm1486_vm5, %v6460_v62, %v4221_v15  ;;  %v6642_v34 = vsel %vm1486_vm5, %v6472_v41, %v4226_v21  ;;  %v4247_v8 = vunpack.i.h.bf16 %v9090_v28 }
 0x12f   : > { %9088 = vst [vmem:[#allocation10_spill] sm:$0xff] %v6622_v57  ;;  %9089 = vst [vmem:[#allocation14_spill] sm:$0xff] %v6634_v63  ;;  %v4246_v45 = vunpack.i.l.bf16 %v9090_v28  ;;  %v6648_v51 = vsel %vm1486_vm5, %v6464_v18, %v4227_v23  ;;  %v6652_v55 = vsel %vm1486_vm5, %v6476_v17, %v4232_v14  ;;  %v4252_v27 = vunpack.i.h.bf16 %v9091_v31 }
 0x130   : > { %v4251_v62 = vunpack.i.l.bf16 %v9091_v31  ;;  %v6658_v41 = vsel %vm1486_vm5, %v6482_v42, %v4231_v20  ;;  %v6662_v16 = vsel %vm1486_vm5, %v6490_v6, %v4236_v1  ;;  %v6666_v18 = vsel %vm1486_vm5, %v6486_v19, %v4237_v2 }
 0x131   : > { %v4256_v15 = vunpack.i.l.bf16 %v9092_v38  ;;  %v6673_v21 = vsel %vm1486_vm5, %v6497_v35, %v4242_v24  ;;  %v6677_v42 = vsel %vm1486_vm5, %v6501_v36, %v4241_v4  ;;  %v4257_v23 = vunpack.i.h.bf16 %v9092_v38 }
 0x132   : > { %v6669_v17 = vpop.permute.xlu1 %4479  ;;  %v4261_v6 = vunpack.i.l.bf16 %v6187_v3  ;;  %v6681_v14 = vpop.permute.xlu0 %4484  ;;  %v6685_v19 = vsel %vm1519_vm6, %v6513_v5, %v4246_v45  ;;  %v6689_v20 = vsel %vm1519_vm6, %v6509_v32, %v4247_v8  ;;  %v4262_v35 = vunpack.i.h.bf16 %v6187_v3  ;;  %v9094_v8 = vld [vmem:[#allocation3_spill] sm:$0xff] }
 0x133   : > { %9093 = vst [vmem:[#allocation15_spill] sm:$0xff] %v6669_v17  ;;  %v4266_v2 = vunpack.i.l.bf16 %v6189_v50  ;;  %v6695_v36 = vsel %vm1519_vm6, %v6519_v7, %v4251_v62  ;;  %v6699_v1 = vsel %vm1519_vm6, %v6523_v40, %v4252_v27  ;;  %v4267_v24 = vunpack.i.h.bf16 %v6189_v50 }
 0x134   : > { %v4271_v4 = vunpack.i.l.bf16 %v6200_v22  ;;  %v6705_v28 = vsel %vm1519_vm6, %v6538_v33, %v4256_v15  ;;  %v4272_v3 = vunpack.i.h.bf16 %v6200_v22  ;;  %v4277_v45 = vunpack.i.h.bf16 %v9094_v8 }
 0x135   : > { %v4276_v31 = vunpack.i.l.bf16 %v9094_v8  ;;  %v6714_v40 = vsel %vm1519_vm6, %v6529_v61, %v4257_v23  ;;  %v6718_v50 = vsel %vm1519_vm6, %v6550_v13, %v4261_v6  ;;  %v4282_v27 = vunpack.i.h.bf16 %v6210_v53  ;;  %v9095_v6 = vld [vmem:[#allocation2_spill] sm:$0xff]  ;;  %v9097_v8 = vld [vmem:[#allocation49_spill] sm:$0xff] }
 0x136   : > { %v6710_v7 = vpop.permute.xlu1 %4489  ;;  %v4281_v33 = vunpack.i.l.bf16 %v6210_v53  ;;  %v6722_v62 = vpop.permute.xlu0 %4494  ;;  %v6726_v22 = vsel %vm1519_vm6, %v6542_v54, %v4262_v35  ;;  %v6730_v38 = vsel %vm1519_vm6, %v6554_v56, %v4266_v2  ;;  %v4287_v61 = vunpack.i.h.bf16 %v6212_v44 }
 0x137   : > { %v4286_v15 = vunpack.i.l.bf16 %v6212_v44  ;;  %v6736_v13 = vsel %vm1519_vm6, %v6560_v0, %v4267_v24  ;;  %v6740_v53 = vsel %vm1519_vm6, %v6570_v26, %v4271_v4  ;;  %v4292_v23 = vunpack.i.h.bf16 %v6218_v52 }
 0x138   : > { %v4291_v54 = vunpack.i.l.bf16 %v6218_v52  ;;  %v6746_v56 = vsel %vm1519_vm6, %v6564_v37, %v4272_v3  ;;  %v6750_v44 = vsel %vm1519_vm6, %v6574_v9, %v4276_v31  ;;  %v6754_v0 = vsel %vm1519_vm6, %v6578_v58, %v4277_v45  ;;  %v9096_v9 = vld [vmem:[#allocation48_spill] sm:$0xff] }
 0x139   : > { %v4296_v26 = vunpack.i.l.bf16 %v9095_v6  ;;  %v6761_v52 = vsel %vm1519_vm6, %v6589_v10, %v4281_v33  ;;  %v6765_v37 = vsel %vm1519_vm6, %v6585_v25, %v4282_v27  ;;  %v4297_v2 = vunpack.i.h.bf16 %v9095_v6 }
 0x13a   : > { %v6757_v35 = vpop.permute.xlu1 %4499  ;;  %v4301_v24 = vunpack.i.l.bf16 %v9096_v9  ;;  %v6769_v4 = vpop.permute.xlu0 %4504  ;;  %v6773_v58 = vsel %vm1519_vm6, %v6597_v47, %v4286_v15  ;;  %v6777_v3 = vsel %vm1519_vm6, %v6601_v59, %v4287_v61  ;;  %v4302_v10 = vunpack.i.h.bf16 %v9096_v9  ;;  %v9098_v47 = vld [vmem:[#allocation50_spill] sm:$0xff]  ;;  %v9099_v15 = vld [vmem:[#allocation51_spill] sm:$0xff] }
 0x13b   : > { %v4306_v45 = vunpack.i.l.bf16 %v9097_v8  ;;  %v6783_v25 = vsel %vm1519_vm6, %v6611_v46, %v4291_v54  ;;  %v6787_v31 = vsel %vm1519_vm6, %v6607_v43, %v4292_v23  ;;  %v4307_v27 = vunpack.i.h.bf16 %v9097_v8  ;;  %v9100_v54 = vld [vmem:[#allocation52_spill] sm:$0xff] }
 0x13c   : > { %v4311_v33 = vunpack.i.l.bf16 %v9098_v47  ;;  %v6793_v59 = vsel %vm1519_vm6, %v6617_v39, %v4296_v26  ;;  %v4312_v61 = vunpack.i.h.bf16 %v9098_v47  ;;  %v4317_v6 = vunpack.i.h.bf16 %v9099_v15 }
 0x13d   : > { %v4316_v9 = vunpack.i.l.bf16 %v9099_v15  ;;  %v6802_v43 = vsel %vm1519_vm6, %v6626_v60, %v4297_v2  ;;  %v6806_v23 = vsel %vm1519_vm6, %v6638_v30, %v4301_v24  ;;  %v4322_v8 = vunpack.i.h.bf16 %v9100_v54  ;;  %v9101_v60 = vld [vmem:[#allocation53_spill] sm:$0xff] }
 0x13e   : > { %v6798_v46 = vpop.permute.xlu1 %4509  ;;  %v4321_v39 = vunpack.i.l.bf16 %v9100_v54  ;;  %v6810_v26 = vpop.permute.xlu0 %4514  ;;  %v6814_v47 = vsel %vm1519_vm6, %v6630_v11, %v4302_v10  ;;  %v6818_v15 = vsel %vm1519_vm6, %v6642_v34, %v4306_v45  ;;  %v4327_v2 = vunpack.i.h.bf16 %v9101_v60  ;;  %v9102_v54 = vld [vmem:[#allocation54_spill] sm:$0xff]  ;;  %v9103_v45 = vld [vmem:[#allocation55_spill] sm:$0xff] }
 0x13f   : > { %v4326_v5 = vunpack.i.l.bf16 %v9101_v60  ;;  %v6824_v30 = vsel %vm1519_vm6, %v6648_v51, %v4307_v27  ;;  %v6828_v24 = vsel %vm1519_vm6, %v6658_v41, %v4311_v33  ;;  %v4332_v32 = vunpack.i.h.bf16 %v9102_v54 }
 0x140   : > { %v4331_v11 = vunpack.i.l.bf16 %v9102_v54  ;;  %v6834_v34 = vsel %vm1519_vm6, %v6652_v55, %v4312_v61  ;;  %v6838_v10 = vsel %vm1519_vm6, %v6662_v16, %v4316_v9  ;;  %v6842_v51 = vsel %vm1519_vm6, %v6666_v18, %v4317_v6  ;;  %v9106_v16 = vld [vmem:[#allocation56_spill] sm:$0xff] }
 0x141   : > { %v4336_v27 = vunpack.i.l.bf16 %v9103_v45  ;;  %v6849_v33 = vsel %vm1519_vm6, %v6677_v42, %v4321_v39  ;;  %v6853_v55 = vsel %vm1519_vm6, %v6673_v21, %v4322_v8  ;;  %v4337_v61 = vunpack.i.h.bf16 %v9103_v45  ;;  %v9107_v39 = vld [vmem:[#allocation57_spill] sm:$0xff] }
 0x142   : > { %v6845_v41 = vpop.permute.xlu1 %4519  ;;  %9104 = vst [vmem:[#allocation13_spill] sm:$0xff] %v6849_v33  ;;  %9105 = vst [vmem:[#allocation17_spill] sm:$0xff] %v6853_v55  ;;  %v4341_v9 = vunpack.i.l.bf16 %v9106_v16  ;;  %v6857_v60 = vpop.permute.xlu0 %4524  ;;  %v6861_v18 = vsel %vm1552_vm7, %v6685_v19, %v4326_v5  ;;  %v6865_v6 = vsel %vm1552_vm7, %v6689_v20, %v4327_v2  ;;  %v4342_v42 = vunpack.i.h.bf16 %v9106_v16  ;;  %v9108_v5 = vld [vmem:[#allocation58_spill] sm:$0xff]  ;;  %v9109_v16 = vld [vmem:[#allocation59_spill] sm:$0xff] }
 0x143   : > { %v4346_v54 = vunpack.i.l.bf16 %v9107_v39  ;;  %v6871_v21 = vsel %vm1552_vm7, %v6695_v36, %v4331_v11  ;;  %v6875_v8 = vsel %vm1552_vm7, %v6699_v1, %v4332_v32  ;;  %v4347_v45 = vunpack.i.h.bf16 %v9107_v39  ;;  %v9110_v11 = vld [vmem:[#allocation60_spill] sm:$0xff] }
 0x144   : > { %v4351_v19 = vunpack.i.l.bf16 %v9108_v5  ;;  %v6881_v20 = vsel %vm1552_vm7, %v6705_v28, %v4336_v27  ;;  %v4352_v2 = vunpack.i.h.bf16 %v9108_v5  ;;  %v4357_v55 = vunpack.i.h.bf16 %v9109_v16 }
 0x145   : > { %v4356_v17 = vunpack.i.l.bf16 %v9109_v16  ;;  %v6890_v32 = vsel %vm1552_vm7, %v6714_v40, %v4337_v61  ;;  %v6894_v1 = vsel %vm1552_vm7, %v6718_v50, %v4341_v9  ;;  %v4362_v39 = vunpack.i.h.bf16 %v9110_v11  ;;  %v9111_v40 = vld [vmem:[#allocation61_spill] sm:$0xff] }
 0x146   : > { %v6886_v36 = vpop.permute.xlu1 %4529  ;;  %v4361_v28 = vunpack.i.l.bf16 %v9110_v11  ;;  %v6898_v27 = vpop.permute.xlu0 %4534  ;;  %v6902_v5 = vsel %vm1552_vm7, %v6726_v22, %v4342_v42  ;;  %v6906_v16 = vsel %vm1552_vm7, %v6730_v38, %v4346_v54  ;;  %v4367_v61 = vunpack.i.h.bf16 %v9111_v40  ;;  %v9112_v11 = vld [vmem:[#allocation62_spill] sm:$0xff] }
 0x147   : > { %v4366_v33 = vunpack.i.l.bf16 %v9111_v40  ;;  %v6912_v50 = vsel %vm1552_vm7, %v6736_v13, %v4347_v45  ;;  %v6916_v9 = vsel %vm1552_vm7, %v6740_v53, %v4351_v19  ;;  %v4372_v22 = vunpack.i.h.bf16 %v9112_v11  ;;  %v9113_v45 = vld [vmem:[#allocation63_spill] sm:$0xff] }
 0x148   : > { %v4371_v42 = vunpack.i.l.bf16 %v9112_v11  ;;  %v6922_v38 = vsel %vm1552_vm7, %v6746_v56, %v4352_v2  ;;  %v6926_v54 = vsel %vm1552_vm7, %v6750_v44, %v4356_v17  ;;  %v6930_v13 = vsel %vm1552_vm7, %v6754_v0, %v4357_v55  ;;  %v9115_v17 = vld [vmem:[#allocation64_spill] sm:$0xff] }
 0x149   : > { %v4376_v40 = vunpack.i.l.bf16 %v9113_v45  ;;  %v6937_v19 = vsel %vm1552_vm7, %v6761_v52, %v4361_v28  ;;  %v6941_v56 = vsel %vm1552_vm7, %v6765_v37, %v4362_v39  ;;  %v4377_v2 = vunpack.i.h.bf16 %v9113_v45  ;;  %v9117_v28 = vld [vmem:[#allocation65_spill] sm:$0xff] }
 0x14a   : > { %v6933_v53 = vpop.permute.xlu1 %4539  ;;  %v4381_v44 = vunpack.i.l.bf16 %v9115_v17  ;;  %v6945_v11 = vpop.permute.xlu0 %4544  ;;  %v6949_v0 = vsel %vm1552_vm7, %v6773_v58, %v4366_v33  ;;  %v6953_v55 = vsel %vm1552_vm7, %v6777_v3, %v4367_v61  ;;  %v4382_v52 = vunpack.i.h.bf16 %v9115_v17  ;;  %v9118_v58 = vld [vmem:[#allocation66_spill] sm:$0xff]  ;;  %v9119_v17 = vld [vmem:[#allocation67_spill] sm:$0xff] }
 0x14b   : > { %9114 = vst [vmem:[#allocation18_spill] sm:$0xff] %v6933_v53  ;;  %9116 = vst [vmem:[#allocation16_spill] sm:$0xff] %v6945_v11  ;;  %v4386_v63 = vunpack.i.l.bf16 %v9117_v28  ;;  %v6959_v37 = vsel %vm1552_vm7, %v6783_v25, %v4371_v42  ;;  %v6963_v39 = vsel %vm1552_vm7, %v6787_v31, %v4372_v22  ;;  %v4387_v45 = vunpack.i.h.bf16 %v9117_v28  ;;  %v9121_v42 = vld [vmem:[#allocation69_spill] sm:$0xff] }
 0x14c   : > { %v4391_v33 = vunpack.i.l.bf16 %v9118_v58  ;;  %v6969_v3 = vsel %vm1552_vm7, %v6793_v59, %v4376_v40  ;;  %v4392_v61 = vunpack.i.h.bf16 %v9118_v58  ;;  %v4397_v11 = vunpack.i.h.bf16 %v9119_v17 }
 0x14d   : > { %v4396_v53 = vunpack.i.l.bf16 %v9119_v17  ;;  %v6978_v31 = vsel %vm1552_vm7, %v6802_v43, %v4377_v2  ;;  %v6982_v22 = vsel %vm1552_vm7, %v6806_v23, %v4381_v44  ;;  %v4407_v28 = vunpack.i.h.bf16 %v9121_v42  ;;  %v9124_v43 = vld [vmem:[#allocation70_spill] sm:$0xff] }
 0x14e   : > { %v6974_v25 = vpop.permute.xlu1 %4549  ;;  %v4406_v59 = vunpack.i.l.bf16 %v9121_v42  ;;  %v6986_v40 = vpop.permute.xlu0 %4554  ;;  %v6990_v58 = vsel %vm1552_vm7, %v6814_v47, %v4382_v52  ;;  %v6994_v17 = vsel %vm1552_vm7, %v6818_v15, %v4386_v63  ;;  %v4412_v2 = vunpack.i.h.bf16 %v9124_v43  ;;  %v9131_v52 = vld [vmem:[#allocation5_spill] sm:$0xff] }
 0x14f   : > { %9120 = vst [vmem:[#allocation4_spill] sm:$0xff] %v6974_v25  ;;  %9122 = vst [vmem:[#allocation20_spill] sm:$0xff] %v6986_v40  ;;  %v4411_v23 = vunpack.i.l.bf16 %v9124_v43  ;;  %v7000_v44 = vsel %vm1552_vm7, %v6824_v30, %v4387_v45  ;;  %v7004_v42 = vsel %vm1552_vm7, %v6828_v24, %v4391_v33  ;;  %v9127_v40 = vld [vmem:[#allocation71_spill] sm:$0xff]  ;;  %v7010_v63 = vsel %vm1552_vm7, %v6834_v34, %v4392_v61  ;;  %v9134_v61 = vld [vmem:[#allocation6_spill] sm:$0xff] }
 0x150   : > { %9123 = vst [vmem:[#allocation21_spill] sm:$0xff] %v6994_v17  ;;  %9125 = vst [vmem:[#allocation19_spill] sm:$0xff] %v7000_v44  ;;  %v4417_v25 = vunpack.i.h.bf16 %v9127_v40  ;;  %v4416_v47 = vunpack.i.l.bf16 %v9127_v40  ;;  %v7014_v15 = vsel %vm1552_vm7, %v6838_v10, %v4396_v53  ;;  %v7018_v30 = vsel %vm1552_vm7, %v6842_v51, %v4397_v11 }
 0x151   : > { %9126 = vst [vmem:[#allocation23_spill] sm:$0xff] %v7004_v42  ;;  %9128 = vst [vmem:[#allocation22_spill] sm:$0xff] %v7010_v63  ;;  %v4421_v45 = vunpack.i.l.bf16 %v9131_v52  ;;  %v1586_v40 = vsel %vm1585_vm8, %v6861_v18, %v4406_v59  ;;  %v1587_v34 = vsel %vm1585_vm8, %v6865_v6, %v4407_v28  ;;  %v4422_v10 = vunpack.i.h.bf16 %v9131_v52  ;;  %v9135_v28 = vld [vmem:[#allocation9_spill] sm:$0xff] }
 0x152   : > { %9129 = vst [vmem:[#allocation24_spill] sm:$0xff] %v7014_v15  ;;  %9130 = vst [vmem:[#allocation26_spill] sm:$0xff] %v7018_v30  ;;  %v7021_v24 = vpop.permute.xlu1 %4559  ;;  %v4565_v53 = vpop.permute.xlu0 %4564  ;;  %v1588_v51 = vsel %vm1585_vm8, %v6871_v21, %v4411_v23  ;;  %v1589_v11 = vsel %vm1585_vm8, %v6875_v8, %v4412_v2  ;;  %v4426_v43 = vunpack.i.l.bf16 %v9134_v61  ;;  %v1590_v18 = vsel %vm1585_vm8, %v6881_v20, %v4416_v47 }
 0x153   : > { %9132 = vst [vmem:[#allocation25_spill] sm:$0xff] %v7021_v24  ;;  %v4427_v24 = vunpack.i.h.bf16 %v9134_v61  ;;  %v1591_v6 = vsel %vm1585_vm8, %v6890_v32, %v4417_v25  ;;  %v4432_v59 = vunpack.i.h.bf16 %v9135_v28  ;;  %v4431_v52 = vunpack.i.l.bf16 %v9135_v28  ;;  %v9136_v28 = vld [vmem:[#allocation7_spill] sm:$0xff] }
 0x154   : > { %v7043_v21 = vsel %vm1585_vm8, %v6894_v1, %v4421_v45  ;;  %v4487_v8 = vunpack.i.h.bf16 %v6681_v14  ;;  %v4486_v2 = vunpack.i.l.bf16 %v6681_v14  ;;  %v4491_v23 = vunpack.i.l.bf16 %v6710_v7 }
 0x155   : > { %v7050_v20 = vsel %vm1585_vm8, %v6902_v5, %v4422_v10  ;;  %v4492_v32 = vunpack.i.h.bf16 %v6710_v7  ;;  %v4497_v25 = vunpack.i.h.bf16 %v6722_v62  ;;  %v4496_v47 = vunpack.i.l.bf16 %v6722_v62 }
 0x156   : > { %v4570_v61 = vpop.permute.xlu1 %4569  ;;  %v4575_v1 = vpop.permute.xlu0 %4574  ;;  %v7057_v45 = vsel %vm1585_vm8, %v6906_v16, %v4426_v43  ;;  %v7061_v14 = vsel %vm1585_vm8, %v6912_v50, %v4427_v24  ;;  %v4437_v30 = vunpack.i.h.bf16 %v9136_v28  ;;  %v4436_v5 = vunpack.i.l.bf16 %v9136_v28  ;;  %v9137_v16 = vld [vmem:[#allocation43_spill] sm:$0xff] }
 0x157   : > { %v7067_v7 = vsel %vm1585_vm8, %v6916_v9, %v4431_v52  ;;  %v7071_v62 = vsel %vm1585_vm8, %v6922_v38, %v4432_v59  ;;  %v4567_v10 = vunpack.i.h.bf16 %v4565_v53  ;;  %v4566_v15 = vunpack.i.l.bf16 %v4565_v53 }
 0x158   : > { %v4441_v43 = vunpack.i.l.bf16 %v9137_v16  ;;  %v1621_v33 = vsel %vm1618_vm9, %v1588_v51, %v4491_v23  ;;  %v1619_v24 = vsel %vm1618_vm9, %v1586_v40, %v4486_v2  ;;  %v1620_v63 = vsel %vm1618_vm9, %v1587_v34, %v4487_v8 }
 0x159   : > { %v1622_v28 = vsel %vm1618_vm9, %v1589_v11, %v4492_v32  ;;  %v1623_v9 = vsel %vm1618_vm9, %v1590_v18, %v4496_v47  ;;  %v1624_v52 = vsel %vm1618_vm9, %v1591_v6, %v4497_v25  ;;  %v4571_v42 = vunpack.i.l.bf16 %v4570_v61 }
 0x15a   : > { %v4580_v50 = vpop.permute.xlu1 %4579  ;;  %v4585_v38 = vpop.permute.xlu0 %4584  ;;  %v4572_v59 = vunpack.i.h.bf16 %v4570_v61  ;;  %v4576_v44 = vunpack.i.l.bf16 %v4575_v1  ;;  %v4502_v57 = vunpack.i.h.bf16 %v6757_v35  ;;  %v4577_v51 = vunpack.i.h.bf16 %v4575_v1 }
 0x15b   : > { %v4587_v53 = vunpack.i.h.bf16 %v4585_v38  ;;  %v4586_v17 = vunpack.i.l.bf16 %v4585_v38  ;;  %v1652_v23 = vsel %vm1651_vm10, %v1619_v24, %v4566_v15  ;;  %v1653_v40 = vsel %vm1651_vm10, %v1620_v63, %v4567_v10 }
 0x15c   : > { %v4501_v34 = vunpack.i.l.bf16 %v6757_v35  ;;  %v4507_v11 = vunpack.i.h.bf16 %v6769_v4  ;;  %v1654_v2 = vsel %vm1651_vm10, %v1621_v33, %v4571_v42  ;;  %v1655_v1 = vsel %vm1651_vm10, %v1622_v28, %v4572_v59 }
 0x15d   : > { %v1685_v6 = vsel %vm1684_vm11, %v1652_v23, %v4586_v17  ;;  %v1686_v8 = vsel %vm1684_vm11, %v1653_v40, %v4587_v53  ;;  %v1656_v15 = vsel %vm1651_vm10, %v1623_v9, %v4576_v44  ;;  %v1657_v35 = vsel %vm1651_vm10, %v1624_v52, %v4577_v51 }
 0x15e   : > { %v4590_v18 = vpop.permute.xlu1 %4589  ;;  %v4595_v25 = vpop.permute.xlu0 %4594  ;;  %v1717_v47 = vpack.c.bf16 %v1686_v8, %v1685_v6  ;;  %v4582_v24 = vunpack.i.h.bf16 %v4580_v50  ;;  %v4581_v42 = vunpack.i.l.bf16 %v4580_v50  ;;  %v4506_v44 = vunpack.i.l.bf16 %v6769_v4  ;;  %v9138_v6 = vld [vmem:[#allocation8_spill] sm:$0xff] }
 0x15f   : > { %v4592_v61 = vunpack.i.h.bf16 %v4590_v18  ;;  %v4591_v32 = vunpack.i.l.bf16 %v4590_v18  ;;  %v4597_v63 = vunpack.i.h.bf16 %v4595_v25  ;;  %v4596_v10 = vunpack.i.l.bf16 %v4595_v25 }
 0x160   : > { %3994 = vmatprep.mubr.msk.bf16.mxu0 %vm1753_vm12, %v1717_v47  ;;  %v1598_v51 = vsel %vm1585_vm8, %v6926_v54, %v4436_v5  ;;  %v1599_v18 = vsel %vm1585_vm8, %v6930_v13, %v4437_v30  ;;  %v4442_v50 = vunpack.i.h.bf16 %v9137_v16  ;;  %v4447_v8 = vunpack.i.h.bf16 %v9138_v6 }
 0x161   : > { %v1687_v38 = vsel %vm1684_vm11, %v1654_v2, %v4591_v32  ;;  %v1688_v17 = vsel %vm1684_vm11, %v1655_v1, %v4592_v61  ;;  %v1689_v33 = vsel %vm1684_vm11, %v1656_v15, %v4596_v10  ;;  %v1690_v53 = vsel %vm1684_vm11, %v1657_v35, %v4597_v63 }
 0x162   : > { %v4600_v23 = vpop.permute.xlu1 %4599  ;;  %v1718_v28 = vpack.c.bf16 %v1688_v17, %v1687_v38  ;;  %v4605_v40 = vpop.permute.xlu0 %4604  ;;  %v1719_v52 = vpack.c.bf16 %v1690_v53, %v1689_v33  ;;  %v1625_v2 = vsel %vm1618_vm9, %v7043_v21, %v4501_v34  ;;  %v1626_v4 = vsel %vm1618_vm9, %v7050_v20, %v4502_v57 }
 0x163   : > { %v4602_v9 = vunpack.i.h.bf16 %v4600_v23  ;;  %v4601_v59 = vunpack.i.l.bf16 %v4600_v23  ;;  %v4607_v61 = vunpack.i.h.bf16 %v4605_v40  ;;  %v4606_v32 = vunpack.i.l.bf16 %v4605_v40 }
 0x164   : > { %3995 = vmatmul.mubr.msk.bf16.vlgmr.msra.gmra.mxu0 %vm1753_vm12, %v1718_v28  ;;  %v7111_v54 = vsel %vm1585_vm8, %v6937_v19, %v4441_v43  ;;  %v4446_v13 = vunpack.i.l.bf16 %v9138_v6  ;;  %v1658_v30 = vsel %vm1651_vm10, %v1625_v2, %v4581_v42  ;;  %v1659_v5 = vsel %vm1651_vm10, %v1626_v4, %v4582_v24 }
 0x165   : > { %3998 = vmatprep.mubr.msk.bf16.mxu0 %vm1753_vm12, %v1719_v52  ;;  %v1627_v21 = vsel %vm1618_vm9, %v7057_v45, %v4506_v44  ;;  %v1628_v57 = vsel %vm1618_vm9, %v7061_v14, %v4507_v11  ;;  %v1691_v20 = vsel %vm1684_vm11, %v1658_v30, %v4601_v59  ;;  %v1692_v34 = vsel %vm1684_vm11, %v1659_v5, %v4602_v9 }
 0x166   : > { %v4610_v16 = vpop.permute.xlu1 %4609  ;;  %v4615_v25 = vpop.permute.xlu0 %4614  ;;  %v4512_v19 = vunpack.i.h.bf16 %v6798_v46  ;;  %v4511_v43 = vunpack.i.l.bf16 %v6798_v46  ;;  %v1660_v15 = vsel %vm1651_vm10, %v1627_v21, %v4606_v32  ;;  %v1661_v63 = vsel %vm1651_vm10, %v1628_v57, %v4607_v61 }
 0x167   : > { %v4617_v47 = vunpack.i.h.bf16 %v4615_v25  ;;  %v4616_v1 = vunpack.i.l.bf16 %v4615_v25  ;;  %v4612_v10 = vunpack.i.h.bf16 %v4610_v16  ;;  %v4611_v45 = vunpack.i.l.bf16 %v4610_v16 }
 0x168   : > { %v4517_v35 = vunpack.i.h.bf16 %v6810_v26  ;;  %v1720_v38 = vpack.c.bf16 %v1692_v34, %v1691_v20  ;;  %v4516_v17 = vunpack.i.l.bf16 %v6810_v26  ;;  %v1601_v23 = vsel %vm1585_vm8, %v6941_v56, %v4442_v50 }
 0x169   : > { %v1693_v14 = vsel %vm1684_vm11, %v1660_v15, %v4616_v1  ;;  %v1694_v11 = vsel %vm1684_vm11, %v1661_v63, %v4617_v47  ;;  %v1602_v28 = vsel %vm1585_vm8, %v6949_v0, %v4446_v13  ;;  %v1629_v44 = vsel %vm1618_vm9, %v7067_v7, %v4511_v43 }
 0x16a   : > { %v4620_v24 = vpop.permute.xlu1 %4619  ;;  %v4625_v33 = vpop.permute.xlu0 %4624  ;;  %v1721_v53 = vpack.c.bf16 %v1694_v11, %v1693_v14  ;;  %v1630_v9 = vsel %vm1618_vm9, %v7071_v62, %v4512_v19  ;;  %v1662_v26 = vsel %vm1651_vm10, %v1629_v44, %v4611_v45  ;;  %v1603_v56 = vsel %vm1585_vm8, %v6953_v55, %v4447_v8 }
 0x16b   : > { %v4622_v42 = vunpack.i.h.bf16 %v4620_v24  ;;  %v4621_v46 = vunpack.i.l.bf16 %v4620_v24  ;;  %v1663_v59 = vsel %vm1651_vm10, %v1630_v9, %v4612_v10  ;;  %v4627_v40 = vunpack.i.h.bf16 %v4625_v33 }
 0x16c   : > { %3999 = vmatmul.mubr.msk.bf16.gmra.mxu0 %vm1753_vm12, %v1720_v38  ;;  %v4626_v52 = vunpack.i.l.bf16 %v4625_v33  ;;  %v4452_v0 = vunpack.i.h.bf16 %v6534_v29  ;;  %v4451_v6 = vunpack.i.l.bf16 %v6534_v29  ;;  %v4456_v2 = vunpack.i.l.bf16 %v6546_v48 }
 0x16d   : > { %4002 = vmatprep.mubr.msk.bf16.mxu0 %vm1753_vm12, %v1721_v53  ;;  %v1695_v7 = vsel %vm1684_vm11, %v1662_v26, %v4621_v46  ;;  %v1696_v50 = vsel %vm1684_vm11, %v1663_v59, %v4622_v42  ;;  %v1631_v4 = vsel %vm1618_vm9, %v1598_v51, %v4516_v17  ;;  %v1632_v61 = vsel %vm1618_vm9, %v1599_v18, %v4517_v35 }
 0x16e   : > { %v4630_v62 = vpop.permute.xlu1 %4629  ;;  %v4635_v32 = vpop.permute.xlu0 %4634  ;;  %v4522_v13 = vunpack.i.h.bf16 %v6845_v41  ;;  %v4521_v55 = vunpack.i.l.bf16 %v6845_v41  ;;  %v4527_v5 = vunpack.i.h.bf16 %v6857_v60  ;;  %v1664_v16 = vsel %vm1651_vm10, %v1631_v4, %v4626_v52 }
 0x16f   : > { %v4637_v8 = vunpack.i.h.bf16 %v4635_v32  ;;  %v4636_v30 = vunpack.i.l.bf16 %v4635_v32  ;;  %v1665_v21 = vsel %vm1651_vm10, %v1632_v61, %v4627_v40  ;;  %v1722_v29 = vpack.c.bf16 %v1696_v50, %v1695_v7 }
 0x170   : > { %v4632_v57 = vunpack.i.h.bf16 %v4630_v62  ;;  %v4631_v20 = vunpack.i.l.bf16 %v4630_v62  ;;  %v4526_v25 = vunpack.i.l.bf16 %v6857_v60  ;;  %v1604_v1 = vsel %vm1585_vm8, %v6959_v37, %v4451_v6 }
 0x171   : > { %v1697_v51 = vsel %vm1684_vm11, %v1664_v16, %v4636_v30  ;;  %v1698_v18 = vsel %vm1684_vm11, %v1665_v21, %v4637_v8  ;;  %v1605_v15 = vsel %vm1585_vm8, %v6963_v39, %v4452_v0  ;;  %v4457_v63 = vunpack.i.h.bf16 %v6546_v48 }
 0x172   : > { %v4640_v34 = vpop.permute.xlu1 %4639  ;;  %v4645_v43 = vpop.permute.xlu0 %4644  ;;  %v1723_v47 = vpack.c.bf16 %v1698_v18, %v1697_v51  ;;  %v1606_v10 = vsel %vm1585_vm8, %v6969_v3, %v4456_v2  ;;  %v1633_v60 = vsel %vm1618_vm9, %v7111_v54, %v4521_v55  ;;  %v1634_v45 = vsel %vm1618_vm9, %v1601_v23, %v4522_v13 }
 0x173   : > { %v4642_v19 = vunpack.i.h.bf16 %v4640_v34  ;;  %v4641_v41 = vunpack.i.l.bf16 %v4640_v34  ;;  %v4647_v35 = vunpack.i.h.bf16 %v4645_v43  ;;  %v4646_v14 = vunpack.i.l.bf16 %v4645_v43  ;;  %v9140_v34 = vld [vmem:[#allocation18_spill] sm:$0xff] }
 0x174   : > { %4003 = vmatmul.mubr.msk.bf16.gmra.mxu0 %vm1753_vm12, %v1722_v29  ;;  %v4462_v37 = vunpack.i.h.bf16 %v6581_v12  ;;  %v4461_v39 = vunpack.i.l.bf16 %v6581_v12  ;;  %v1666_v48 = vsel %vm1651_vm10, %v1633_v60, %v4631_v20  ;;  %v1667_v11 = vsel %vm1651_vm10, %v1634_v45, %v4632_v57  ;;  %v9139_v29 = vld [vmem:[#allocation10_spill] sm:$0xff] }
 0x175   : > { %4006 = vmatprep.mubr.msk.bf16.mxu0 %vm1753_vm12, %v1723_v47  ;;  %v1635_v24 = vsel %vm1618_vm9, %v1602_v28, %v4526_v25  ;;  %v1636_v38 = vsel %vm1618_vm9, %v1603_v56, %v4527_v5  ;;  %v1699_v54 = vsel %vm1684_vm11, %v1666_v48, %v4641_v41  ;;  %v1700_v17 = vsel %vm1684_vm11, %v1667_v11, %v4642_v19  ;;  %v9141_v41 = vld [vmem:[#allocation16_spill] sm:$0xff]  ;;  %v9142_v11 = vld [vmem:[#allocation21_spill] sm:$0xff] }
 0x176   : > { %v4650_v3 = vpop.permute.xlu1 %4649  ;;  %v4655_v42 = vpop.permute.xlu0 %4654  ;;  %v4532_v46 = vunpack.i.h.bf16 %v6886_v36  ;;  %v4531_v33 = vunpack.i.l.bf16 %v6886_v36  ;;  %v1668_v23 = vsel %vm1651_vm10, %v1635_v24, %v4646_v14  ;;  %v1669_v44 = vsel %vm1651_vm10, %v1636_v38, %v4647_v35  ;;  %v9143_v24 = vld [vmem:[#allocation19_spill] sm:$0xff] }
 0x177   : > { %v4657_v53 = vunpack.i.h.bf16 %v4655_v42  ;;  %v4656_v12 = vunpack.i.l.bf16 %v4655_v42  ;;  %v4652_v9 = vunpack.i.h.bf16 %v4650_v3  ;;  %v4651_v26 = vunpack.i.l.bf16 %v4650_v3 }
 0x178   : > { %v4537_v28 = vunpack.i.h.bf16 %v6898_v27  ;;  %v1724_v56 = vpack.c.bf16 %v1700_v17, %v1699_v54  ;;  %v4536_v0 = vunpack.i.l.bf16 %v6898_v27  ;;  %v1607_v6 = vsel %vm1585_vm8, %v6978_v31, %v4457_v63  ;;  %v9144_v17 = vld [vmem:[#allocation14_spill] sm:$0xff] }
 0x179   : > { %v1701_v59 = vsel %vm1684_vm11, %v1668_v23, %v4656_v12  ;;  %v1702_v40 = vsel %vm1684_vm11, %v1669_v44, %v4657_v53  ;;  %v4467_v2 = vunpack.i.h.bf16 %v6593_v49  ;;  %v1637_v4 = vsel %vm1618_vm9, %v1604_v1, %v4531_v33  ;;  %v9145_v23 = vld [vmem:[#allocation23_spill] sm:$0xff] }
 0x17a   : > { %v4660_v52 = vpop.permute.xlu1 %4659  ;;  %v4665_v50 = vpop.permute.xlu0 %4664  ;;  %v1725_v62 = vpack.c.bf16 %v1702_v40, %v1701_v59  ;;  %v1638_v61 = vsel %vm1618_vm9, %v1605_v15, %v4532_v46  ;;  %v1670_v32 = vsel %vm1651_vm10, %v1637_v4, %v4651_v26  ;;  %v1608_v8 = vsel %vm1585_vm8, %v6982_v22, %v4461_v39 }
 0x17b   : > { %v4662_v7 = vunpack.i.h.bf16 %v4660_v52  ;;  %v4661_v36 = vunpack.i.l.bf16 %v4660_v52  ;;  %v1671_v13 = vsel %vm1651_vm10, %v1638_v61, %v4652_v9  ;;  %v4667_v27 = vunpack.i.h.bf16 %v4665_v50 }
 0x17c   : > { %4007 = vmatmul.mubr.msk.bf16.gmra.mxu0 %vm1753_vm12, %v1724_v56  ;;  %v4666_v55 = vunpack.i.l.bf16 %v4665_v50  ;;  %v4466_v31 = vunpack.i.l.bf16 %v6593_v49  ;;  %v1609_v21 = vsel %vm1585_vm8, %v6990_v58, %v4462_v37  ;;  %v4471_v57 = vunpack.i.l.bf16 %v9139_v29 }
 0x17d   : > { %4010 = vmatprep.mubr.msk.bf16.mxu0 %vm1753_vm12, %v1725_v62  ;;  %v1703_v30 = vsel %vm1684_vm11, %v1670_v32, %v4661_v36  ;;  %v1704_v5 = vsel %vm1684_vm11, %v1671_v13, %v4662_v7  ;;  %v1639_v20 = vsel %vm1618_vm9, %v1606_v10, %v4536_v0  ;;  %v1640_v51 = vsel %vm1618_vm9, %v1607_v6, %v4537_v28  ;;  %v9146_v36 = vld [vmem:[#allocation4_spill] sm:$0xff] }
 0x17e   : > { %v4670_v16 = vpop.permute.xlu1 %4669  ;;  %v4675_v18 = vpop.permute.xlu0 %4674  ;;  %v4542_v25 = vunpack.i.h.bf16 %v9140_v34  ;;  %v4541_v22 = vunpack.i.l.bf16 %v9140_v34  ;;  %v4547_v43 = vunpack.i.h.bf16 %v9141_v41  ;;  %v1672_v47 = vsel %vm1651_vm10, %v1639_v20, %v4666_v55 }
 0x17f   : > { %v4677_v49 = vunpack.i.h.bf16 %v4675_v18  ;;  %v4676_v19 = vunpack.i.l.bf16 %v4675_v18  ;;  %v1673_v1 = vsel %vm1651_vm10, %v1640_v51, %v4667_v27  ;;  %v1726_v58 = vpack.c.bf16 %v1704_v5, %v1703_v30  ;;  %v9147_v27 = vld [vmem:[#allocation22_spill] sm:$0xff]  ;;  %v9149_v18 = vld [vmem:[#allocation68_spill] sm:$0xff] }
 0x180   : > { %v4672_v15 = vunpack.i.h.bf16 %v4670_v16  ;;  %v4671_v63 = vunpack.i.l.bf16 %v4670_v16  ;;  %v4546_v35 = vunpack.i.l.bf16 %v9141_v41  ;;  %v1610_v3 = vsel %vm1585_vm8, %v9142_v11, %v4466_v31  ;;  %v9148_v16 = vld [vmem:[#allocation20_spill] sm:$0xff] }
 0x181   : > { %v1705_v10 = vsel %vm1684_vm11, %v1672_v47, %v4676_v19  ;;  %v1706_v60 = vsel %vm1684_vm11, %v1673_v1, %v4677_v49  ;;  %v1611_v38 = vsel %vm1585_vm8, %v9143_v24, %v4467_v2  ;;  %v4472_v54 = vunpack.i.h.bf16 %v9139_v29 }
 0x182   : > { %v4680_v45 = vpop.permute.xlu1 %4679  ;;  %v4685_v39 = vpop.permute.xlu0 %4684  ;;  %v1727_v48 = vpack.c.bf16 %v1706_v60, %v1705_v10  ;;  %v4477_v42 = vunpack.i.h.bf16 %v9144_v17  ;;  %v1641_v46 = vsel %vm1618_vm9, %v1608_v8, %v4541_v22  ;;  %v1642_v33 = vsel %vm1618_vm9, %v1609_v21, %v4542_v25 }
 0x183   : > { %v4682_v14 = vunpack.i.h.bf16 %v4680_v45  ;;  %v4681_v37 = vunpack.i.l.bf16 %v4680_v45  ;;  %v4687_v53 = vunpack.i.h.bf16 %v4685_v39  ;;  %v4686_v12 = vunpack.i.l.bf16 %v4685_v39  ;;  %v9155_v39 = vld [vmem:[#allocation15_spill] sm:$0xff] }
 0x184   : > { %4011 = vmatmul.mubr.msk.bf16.gmra.mxu0 %vm1753_vm12, %v1726_v58  ;;  %v1612_v44 = vsel %vm1585_vm8, %v9145_v23, %v4471_v57  ;;  %v4476_v9 = vunpack.i.l.bf16 %v9144_v17  ;;  %v1674_v26 = vsel %vm1651_vm10, %v1641_v46, %v4671_v63  ;;  %v1675_v28 = vsel %vm1651_vm10, %v1642_v33, %v4672_v15  ;;  %v9151_v58 = vld [vmem:[#allocation13_spill] sm:$0xff]  ;;  %v9152_v63 = vld [vmem:[#allocation24_spill] sm:$0xff] }
 0x185   : > { %4014 = vmatprep.mubr.msk.bf16.mxu0 %vm1753_vm12, %v1727_v48  ;;  %v1643_v40 = vsel %vm1618_vm9, %v1610_v3, %v4546_v35  ;;  %v1644_v52 = vsel %vm1618_vm9, %v1611_v38, %v4547_v43  ;;  %v1707_v56 = vsel %vm1684_vm11, %v1674_v26, %v4681_v37  ;;  %v1708_v0 = vsel %vm1684_vm11, %v1675_v28, %v4682_v14  ;;  %v9154_v14 = vld [vmem:[#allocation26_spill] sm:$0xff] }
 0x186   : > { %v4690_v59 = vpop.permute.xlu1 %4689  ;;  %v4695_v7 = vpop.permute.xlu0 %4694  ;;  %v4552_v50 = vunpack.i.h.bf16 %v9146_v36  ;;  %v4551_v62 = vunpack.i.l.bf16 %v9146_v36  ;;  %v1676_v4 = vsel %vm1651_vm10, %v1643_v40, %v4686_v12  ;;  %v1677_v61 = vsel %vm1651_vm10, %v1644_v52, %v4687_v53  ;;  %v9158_v40 = vld [vmem:[#allocation17_spill] sm:$0xff] }
 0x187   : > { %v4697_v6 = vunpack.i.h.bf16 %v4695_v7  ;;  %v4696_v2 = vunpack.i.l.bf16 %v4695_v7  ;;  %v4692_v32 = vunpack.i.h.bf16 %v4690_v59  ;;  %v4691_v13 = vunpack.i.l.bf16 %v4690_v59 }
 0x188   : > { %v1613_v55 = vsel %vm1585_vm8, %v9147_v27, %v4472_v54  ;;  %v1728_v5 = vpack.c.bf16 %v1708_v0, %v1707_v56  ;;  %v4556_v21 = vunpack.i.l.bf16 %v9148_v16  ;;  %v4402_v34 = vunpack.i.h.bf16 %v9149_v18  ;;  %v9156_v54 = vld [vmem:[#allocation25_spill] sm:$0xff]  ;;  %v7306_v27 = vld [vmem:[%s8778_s2] ss:$0 sm:$0xff] }
 0x189   : > { %v1709_v8 = vsel %vm1684_vm11, %v1676_v4, %v4696_v2  ;;  %v1710_v31 = vsel %vm1684_vm11, %v1677_v61, %v4697_v6  ;;  %v1645_v25 = vsel %vm1618_vm9, %v1612_v44, %v4551_v62  ;;  %v1646_v22 = vsel %vm1618_vm9, %v1613_v55, %v4552_v50 }
 0x18a   : > { %v4700_v30 = vpop.permute.xlu1 %4699  ;;  %v4705_v20 = vpop.permute.xlu0 %4704  ;;  %v1729_v51 = vpack.c.bf16 %v1710_v31, %v1709_v8  ;;  %v4557_v49 = vunpack.i.h.bf16 %v9148_v16  ;;  %v1678_v19 = vsel %vm1651_vm10, %v1645_v25, %v4691_v13  ;;  %v1679_v41 = vsel %vm1651_vm10, %v1646_v22, %v4692_v32  ;;  %v7312_v31 = vld [vmem:[%s8779_s3] ss:$0 sm:$0xff] }
 0x18b   : > { %v4702_v29 = vunpack.i.h.bf16 %v4700_v30  ;;  %v4701_v57 = vunpack.i.l.bf16 %v4700_v30  ;;  %v4707_v43 = vunpack.i.h.bf16 %v4705_v20  ;;  %v4706_v47 = vunpack.i.l.bf16 %v4705_v20 }
 0x18c   : > { %4015 = vmatmul.mubr.msk.bf16.gmra.mxu0 %vm1753_vm12, %v1728_v5  ;;  %v9150_v1 = vunpack.i.l.bf16 %v9149_v18  ;;  %v1614_v10 = vsel %vm1585_vm8, %v9152_v63, %v4476_v9  ;;  %v1615_v37 = vsel %vm1585_vm8, %v9154_v14, %v4477_v42  ;;  %v4482_v48 = vunpack.i.h.bf16 %v9155_v39 }
 0x18d   : > { %4018 = vmatprep.mubr.msk.bf16.mxu0 %vm1753_vm12, %v1729_v51  ;;  %v1711_v60 = vsel %vm1684_vm11, %v1678_v19, %v4701_v57  ;;  %v1712_v45 = vsel %vm1684_vm11, %v1679_v41, %v4702_v29  ;;  %v4481_v11 = vunpack.i.l.bf16 %v9155_v39  ;;  %v1647_v3 = vsel %vm1618_vm9, %v1614_v10, %v4556_v21 }
 0x18e   : > { %v1583_v15 = vsel %vm1552_vm7, %v9151_v58, %v9150_v1  ;;  %v7258_v35 = vpop.permute.xlu1 %4709  ;;  %v4715_v24 = vpop.permute.xlu0 %4714  ;;  %v1648_v38 = vsel %vm1618_vm9, %v1615_v37, %v4557_v49  ;;  %v8906_v17 = vunpack.i.h.bf16 %v9156_v54  ;;  %v8907_v53 = vunpack.i.l.bf16 %v9156_v54  ;;  %v5342_v54 = vld [vmem:[%s8780_s4 + $0x8] sm:$0xff]  }
 0x18f   : > { %9153 = vst [vmem:[#allocation27_spill] sm:$0xff] %v7258_v35  ;;  %v4717_v46 = vunpack.i.h.bf16 %v4715_v24  ;;  %v4716_v33 = vunpack.i.l.bf16 %v4715_v24  ;;  %v1680_v12 = vsel %vm1651_vm10, %v1647_v3, %v4706_v47  ;;  %v1681_v23 = vsel %vm1651_vm10, %v1648_v38, %v4707_v43 }
 0x190   : > { %v1730_v42 = vpack.c.bf16 %v1712_v45, %v1711_v60  ;;  %v8904_v44 = vunpack.i.h.bf16 %v7258_v35  ;;  %v8905_v9 = vunpack.i.l.bf16 %v7258_v35  ;;  %v1584_v52 = vsel %vm1552_vm7, %v9158_v40, %v4402_v34 }
 0x191   : > { %v1713_v26 = vsel %vm1684_vm11, %v1680_v12, %v4716_v33  ;;  %v1714_v28 = vsel %vm1684_vm11, %v1681_v23, %v4717_v46  ;;  %v1616_v36 = vsel %vm1585_vm8, %v1583_v15, %v4481_v11  ;;  %v1617_v50 = vsel %vm1585_vm8, %v1584_v52, %v4482_v48 }
 0x192   : > { %v7274_v59 = vpop.permute.xlu1 %4719  ;;  %v1731_v7 = vpack.c.bf16 %v1714_v28, %v1713_v26  ;;  %v1649_v62 = vsel %vm1618_vm9, %v1616_v36, %v8907_v53  ;;  %v1650_v6 = vsel %vm1618_vm9, %v1617_v50, %v8906_v17 }
 0x193   : > { %9157 = vst [vmem:[#allocation30_spill] sm:$0xff] %v7274_v59  ;;  %v8902_v56 = vunpack.i.h.bf16 %v7274_v59  ;;  %v8903_v0 = vunpack.i.l.bf16 %v7274_v59  ;;  %v1682_v2 = vsel %vm1651_vm10, %v1649_v62, %v8905_v9  ;;  %v1683_v4 = vsel %vm1651_vm10, %v1650_v6, %v8904_v44 }
 0x194   : > { %4019 = vmatmul.mubr.msk.bf16.gmra.mxu0 %vm1753_vm12, %v1730_v42 }
 0x195   : > { %4022 = vmatprep.mubr.msk.bf16.mxu0 %vm1753_vm12, %v1731_v7  ;;  %v1715_v61 = vsel %vm1684_vm11, %v1682_v2, %v8903_v0  ;;  %v1716_v32 = vsel %vm1684_vm11, %v1683_v4, %v8902_v56 }
 0x196   : > { %v1732_v13 = vpack.c.bf16 %v1716_v32, %v1715_v61 }
 0x19c   : > { %4023 = vmatmul.mubr.msk.bf16.gmra.mxu0 %vm1753_vm12, %v1732_v13 }
 0x224   : > { %v3996_v55 = vpop.f32.mrf.mxu0 }
 0x225   : > { %v1976_v8 = vmul.f32 %v3996_v55, %v7306_v27 }
 0x226   : > { %v1840_v30 = vpop.f32.mrf.mxu0 }
 0x227   : > { %v1974_v5 = vmul.f32 %v7306_v27, %v1840_v30  ;;  %v2015_v21 = vadd.f32 %v7312_v31, %v1976_v8 }
 0x228   : > { %v3997_v16 = vpop.f32.mrf.mxu0 }
 0x229   : > { %v2013_v29 = vadd.f32 %v7312_v31, %v1974_v5  ;;  %v1977_v57 = vmul.f32 %v3997_v16, %v7306_v27  ;;  %v2047_v25 = vmax.f32 %v2015_v21, 0.0 }
 0x22a   : > { %v1843_v20 = vpop.f32.mrf.mxu0 }
 0x22b   : > { %v2016_v51 = vadd.f32 %v7312_v31, %v1977_v57  ;;  %v1975_v18 = vmul.f32 %v7306_v27, %v1843_v20  ;;  %v2045_v22 = vmax.f32 %v2013_v29, 0.0  ;;  %v2112_v58 = vrot.slane %v2047_v25, 7 }
 0x22c   : > { %v4000_v34 = vpop.f32.mrf.mxu0 }
 0x22d   : > { %v2048_v49 = vmax.f32 %v2016_v51, 0.0  ;;  %v2014_v19 = vadd.f32 %v7312_v31, %v1975_v18  ;;  %v2109_v15 = vrot.slane %v2045_v22, 7  ;;  %v7330_v37 = vsel %vm345_vm0, 0.0, %v2112_v58 }
 0x22e   : > { %v1856_v41 = vpop.f32.mrf.mxu0  ;;  %v2436_v26 = vrot.slane %v7330_v37, 2  ;;  %v2271_v28 = vrot.slane %v7330_v37, 1  ;;  %v1980_v51 = vmul.f32 %v4000_v34, %v7306_v27 }
 0x22f   : > { %v2113_v43 = vrot.slane %v2048_v49, 7  ;;  %v2046_v47 = vmax.f32 %v2014_v19, 0.0  ;;  %v7333_v39 = vsel %vm345_vm0, 0.0, %v2109_v15  ;;  %v1978_v36 = vmul.f32 %v7306_v27, %v1856_v41 }
 0x230   : > { %v4001_v1 = vpop.f32.mrf.mxu0  ;;  %v2266_v20 = vrot.slane %v7333_v39, 1 }
 0x231   : > { %v2110_v63 = vrot.slane %v2046_v47, 7  ;;  %v7322_v60 = vsel %vm345_vm0, %v2112_v58, %v2113_v43  ;;  %v2221_v48 = vsel %vm345_vm0, %v2113_v43, 0.0  ;;  %v2017_v8 = vadd.f32 %v7312_v31, %v1978_v36 }
 0x232   : > { %v1859_v10 = vpop.f32.mrf.mxu0  ;;  %v4723_v11 = vpack.i.bf16 %v7322_v60, %v7330_v37  ;;  %v2274_v46 = vrot.slane %v2221_v48, 1  ;;  %v2439_v33 = vrot.slane %v2221_v48, 2  ;;  %v2437_v12 = vrot.slane %v7322_v60, 2 }
 0x233   : > { %v7325_v45 = vsel %vm345_vm0, %v2109_v15, %v2110_v63  ;;  %v2272_v42 = vrot.slane %v7322_v60, 1  ;;  %v1979_v40 = vmul.f32 %v7306_v27, %v1859_v10  ;;  %v2220_v55 = vsel %vm345_vm0, %v2110_v63, 0.0 }
 0x234   : > { %v7327_v14 = vpop.f32.mrf.mxu0  ;;  %v4733_v3 = vpack.i.bf16 %v7325_v45, %v7333_v39  ;;  %4724 = vrot.lane.b32.xlu1 %v4723_v11, %s5387_s9  ;;  %v2438_v7 = vsel %vm688_vm2, %v2436_v26, %v2437_v12  ;;  %v2440_v50 = vsel %vm688_vm2, %v2437_v12, %v2439_v33  ;;  %v2267_v5 = vrot.slane %v7325_v45, 1 }
 0x235   : > { %v2273_v62 = vsel %vm511_vm1, %v2271_v28, %v2272_v42  ;;  %v2275_v6 = vsel %vm511_vm1, %v2272_v42, %v2274_v46  ;;  %v4743_v4 = vpack.i.bf16 %v2440_v50, %v2438_v7  ;;  %v2018_v61 = vadd.f32 %v7312_v31, %v1979_v40 }
 0x236   : > { %v7340_v24 = vpop.f32.mrf.mxu0  ;;  %4734 = vrot.lane.b32.xlu0 %v4733_v3, %s5387_s9  ;;  %v4738_v32 = vpack.i.bf16 %v2275_v6, %v2273_v62  ;;  %v1981_v16 = vmul.f32 %v4001_v1, %v7306_v27  ;;  %v2269_v57 = vrot.slane %v2220_v55, 1  ;;  %v2049_v18 = vmax.f32 %v2017_v8, 0.0 }
 0x237   : > { %v2050_v21 = vmax.f32 %v2018_v61, 0.0  ;;  %v2432_v22 = vrot.slane %v7325_v45, 2  ;;  %v2434_v49 = vrot.slane %v2220_v55, 2  ;;  %v2268_v43 = vsel %vm511_vm1, %v2266_v20, %v2267_v5 }
 0x238   : > { %v7344_v38 = vpop.f32.mrf.mxu0  ;;  %4729 = vrot.lane.b32.xlu1 %v4723_v11, %s5390_s12  ;;  %v2020_v19 = vadd.f32 %v7312_v31, %v1981_v16  ;;  %v2270_v34 = vsel %vm511_vm1, %v2267_v5, %v2269_v57  ;;  %v2431_v1 = vrot.slane %v7333_v39, 2  ;;  %v2019_v58 = vadd.f32 %v7312_v31, %v1980_v51 }
 0x239   : > { %v7384_v41 = vrot.slane %v2050_v21, 7  ;;  %v2115_v15 = vrot.slane %v2049_v18, 7  ;;  %v4768_v10 = vpack.i.bf16 %v2270_v34, %v2268_v43  ;;  %v2435_v46 = vsel %vm688_vm2, %v2432_v22, %v2434_v49 }
 0x23a   : > { %v7347_v23 = vpop.f32.mrf.mxu0  ;;  %4744 = vrot.lane.b32.xlu0 %v4743_v4, %s5386_s8  ;;  %v2052_v48 = vmax.f32 %v2020_v19, 0.0  ;;  %v2433_v3 = vsel %vm688_vm2, %v2431_v1, %v2432_v22  ;;  %v2051_v42 = vmax.f32 %v2019_v58, 0.0  ;;  %v1984_v21 = vmul.f32 %v7327_v14, %v7306_v27 }
 0x23b   : > { %v7398_v11 = vsel %vm345_vm0, %v2115_v15, %v7384_v41  ;;  %v4773_v12 = vpack.i.bf16 %v2435_v46, %v2433_v3  ;;  %v7406_v26 = vsel %vm345_vm0, 0.0, %v2115_v15  ;;  %v1982_v58 = vmul.f32 %v7306_v27, %v7340_v24 }
 0x23c   : > { %v7354_v52 = vpop.f32.mrf.mxu0  ;;  %4739 = vrot.lane.b32.xlu1 %v4738_v32, %s5385_s30  ;;  %v4798_v40 = vpack.i.bf16 %v7398_v11, %v7406_v26  ;;  %v2119_v7 = vrot.slane %v2052_v48, 7  ;;  %v2118_v50 = vrot.slane %v2051_v42, 7  ;;  %v2023_v14 = vadd.f32 %v7312_v31, %v1984_v21 }
 0x23d   : > { %v1985_v48 = vmul.f32 %v7344_v38, %v7306_v27  ;;  %v2021_v42 = vadd.f32 %v7312_v31, %v1982_v58  ;;  %v1983_v24 = vmul.f32 %v7306_v27, %v7347_v23  ;;  %v2222_v38 = vsel %vm345_vm0, %v7384_v41, 0.0 }
 0x23e   : > { %v7361_v2 = vpop.f32.mrf.mxu0  ;;  %4749 = vrot.lane.b32.xlu0 %v4738_v32, %s5388_s10  ;;  %v2223_v6 = vsel %vm345_vm0, %v2119_v7, 0.0  ;;  %v7424_v61 = vsel %vm345_vm0, 0.0, %v2118_v50  ;;  %v2055_v46 = vmax.f32 %v2023_v14, 0.0  ;;  %v2277_v21 = vrot.slane %v7398_v11, 1 }
 0x23f   : > { %9159 = vst [vmem:[#allocation28_spill] sm:$0xff] %v7424_v61  ;;  %v2449_v8 = vrot.slane %v2223_v6, 2  ;;  %v2446_v16 = vrot.slane %v7424_v61, 2  ;;  %v2284_v20 = vrot.slane %v2223_v6, 1  ;;  %v2281_v19 = vrot.slane %v7424_v61, 1 }
 0x240   : > { %v7364_v13 = vpop.f32.mrf.mxu0  ;;  %4759 = vrot.lane.b32.xlu1 %v4738_v32, %s5391_s19  ;;  %v7427_v32 = vsel %vm345_vm0, %v2118_v50, %v2119_v7  ;;  %v2024_v7 = vadd.f32 %v7312_v31, %v1985_v48  ;;  %v2124_v6 = vrot.slane %v2055_v46, 7  ;;  %v2053_v23 = vmax.f32 %v2021_v42, 0.0 }
 0x241   : > { %9160 = vst [vmem:[#allocation38_spill] sm:$0xff] %v7427_v32  ;;  %v2447_v57 = vrot.slane %v7427_v32, 2  ;;  %v2282_v51 = vrot.slane %v7427_v32, 1  ;;  %v4788_v43 = vpack.i.bf16 %v7427_v32, %v7424_v61  ;;  %v1988_v41 = vmul.f32 %v7354_v52, %v7306_v27  ;;  %v5343_v61 = vld [vmem:[%s8780_s4] sm:$0xff]  }
 0x242   : > { %v7370_v30 = vpop.f32.mrf.mxu0  ;;  %4754 = vrot.lane.b32.xlu0 %v4743_v4, %s5389_s11  ;;  %v2121_v14 = vrot.slane %v2053_v23, 7  ;;  %v2441_v46 = vrot.slane %v7406_v26, 2  ;;  %v2444_v42 = vrot.slane %v2222_v38, 2  ;;  %v2442_v23 = vrot.slane %v7398_v11, 2 }
 0x243   : > { %v2448_v22 = vsel %vm688_vm2, %v2446_v16, %v2447_v57  ;;  %v2450_v49 = vsel %vm688_vm2, %v2447_v57, %v2449_v8  ;;  %v2283_v15 = vsel %vm511_vm1, %v2281_v19, %v2282_v51  ;;  %v2022_v8 = vadd.f32 %v7312_v31, %v1983_v24 }
 0x244   : > { %v7374_v29 = vpop.f32.mrf.mxu0  ;;  %4764 = vrot.lane.b32.xlu1 %v4743_v4, %s5392_s20  ;;  %v4813_v1 = vpack.i.bf16 %v2450_v49, %v2448_v22  ;;  %v2276_v57 = vrot.slane %v7406_v26, 1  ;;  %v2056_v22 = vmax.f32 %v2024_v7, 0.0  ;;  %v1986_v19 = vmul.f32 %v7306_v27, %v7361_v2 }
 0x245   : > { %v2054_v58 = vmax.f32 %v2022_v8, 0.0  ;;  %v2027_v52 = vadd.f32 %v7312_v31, %v1988_v41 }
 0x246   : > { %v7379_v25 = vpop.f32.mrf.mxu0  ;;  %4769 = vrot.lane.b32.xlu0 %v4768_v10, %s5385_s30  ;;  %v2125_v2 = vrot.slane %v2056_v22, 7  ;;  %v2025_v7 = vadd.f32 %v7312_v31, %v1986_v19  ;;  %v2443_v22 = vsel %vm688_vm2, %v2441_v46, %v2442_v23 }
 0x248   : > { %v7387_v47 = vpop.f32.mrf.mxu0  ;;  %4774 = vrot.lane.b32.xlu1 %v4773_v12, %s5386_s8  ;;  %v7513_v19 = vsel %vm345_vm0, %v2124_v6, %v2125_v2 }
 0x249   : > { %v7572_v56 = vmul.f32 %v7387_v47, %v7306_v27  ;;  %v2292_v47 = vrot.slane %v7513_v19, 1 }
 0x24a   : > { %v7393_v63 = vpop.f32.mrf.mxu0  ;;  %4799 = vrot.lane.b32.xlu0 %v4798_v40, %s5387_s9 }
 0x24c   : > { %v7402_v33 = vpop.f32.mrf.mxu0  ;;  %4779 = vrot.lane.b32.xlu1 %v4768_v10, %s5388_s10  ;;  %v2285_v10 = vsel %vm511_vm1, %v2282_v51, %v2284_v20  ;;  %v2279_v20 = vrot.slane %v2222_v38, 1  ;;  %v2122_v38 = vrot.slane %v2054_v58, 7 }
 0x24e   : > { %v7408_v28 = vpop.f32.mrf.mxu0  ;;  %4804 = vrot.lane.b32.xlu0 %v4798_v40, %s5390_s12  ;;  %v7465_v40 = vld [vmem:[%s8780_s4 + $0x10] ss:$0 sps:$4 sm:$0x33]  }
 0x24f   : > { %4065 = vmatprep.subr.msk.bf16.mxu1 %vm1802_vm3, %v7465_v40 }
 0x250   : > { %v7413_v36 = vpop.f32.mrf.mxu0  ;;  %4784 = vrot.lane.b32.xlu1 %v4773_v12, %s5389_s11  ;;  %v4818_v12 = vpack.i.bf16 %v2285_v10, %v2283_v15  ;;  %v2280_v10 = vsel %vm511_vm1, %v2277_v21, %v2279_v20 }
 0x252   : > { %v7416_v62 = vpop.f32.mrf.mxu0  ;;  %4814 = vrot.lane.b32.xlu0 %v4813_v1, %s5386_s8 }
 0x254   : > { %v7420_v4 = vpop.f32.mrf.mxu0  ;;  %4789 = vrot.lane.b32.xlu1 %v4788_v43, %s5387_s9 }
 0x256   : > { %v7429_v55 = vpop.f32.mrf.mxu0  ;;  %4819 = vrot.lane.b32.xlu0 %v4818_v12, %s5388_s10 }
 0x258   : > { %v7431_v5 = vpop.f32.mrf.mxu0  ;;  %4794 = vrot.lane.b32.xlu1 %v4788_v43, %s5390_s12  ;;  %v2278_v43 = vsel %vm511_vm1, %v2276_v57, %v2277_v21  ;;  %v7498_v21 = vsel %vm345_vm0, 0.0, %v2121_v14  ;;  %v2059_v57 = vmax.f32 %v2027_v52, 0.0 }
 0x259   : > { %v4838_v24 = vpack.i.bf16 %v2280_v10, %v2278_v43  ;;  %9161 = vst [vmem:[#allocation29_spill] sm:$0xff] %v7498_v21  ;;  %v1996_v43 = vmul.f32 %v7402_v33, %v7306_v27  ;;  %v2000_v10 = vmul.f32 %v7420_v4, %v7306_v27 }
 0x25a   : > { %v7439_v18 = vpop.f32.mrf.mxu0  ;;  %4824 = vrot.lane.b32.xlu0 %v4813_v1, %s5389_s11  ;;  %v2130_v33 = vrot.slane %v2059_v57, 7 }
 0x25c   : > { %v4024_v34 = vpop.f32.mrf.mxu0  ;;  %4809 = vrot.lane.b32.xlu1 %v4818_v12, %s5385_s30 }
 0x25d   : > { %v2004_v16 = vmul.f32 %v4024_v34, %v7306_v27  ;;  %v7486_v34 = vsel %vm345_vm0, 0.0, %v2124_v6  ;;  %v1997_v6 = vmul.f32 %v7413_v36, %v7306_v27  ;;  %v7541_v36 = vsel %vm345_vm0, %v2121_v14, %v2122_v38 }
 0x25e   : > { %v7455_v3 = vpop.f32.mrf.mxu0  ;;  %v2291_v8 = vrot.slane %v7486_v34, 1  ;;  %4839 = vrot.lane.b32.xlu0 %v4838_v24, %s5385_s30  ;;  %9162 = vst [vmem:[#allocation32_spill] sm:$0xff] %v7541_v36  ;;  %v2039_v14 = vadd.f32 %v7312_v31, %v2000_v10  ;;  %v2457_v10 = vrot.slane %v7513_v19, 2 }
 0x25f   : > { %v2043_v49 = vadd.f32 %v7312_v31, %v2004_v16  ;;  %v2456_v16 = vrot.slane %v7486_v34, 2 }
 0x260   : > { %v4025_v50 = vpop.f32.mrf.mxu0  ;;  %4829 = vrot.lane.b32.xlu1 %v4818_v12, %s5391_s19  ;;  %v1989_v12 = vmul.f32 %v7364_v13, %v7306_v27  ;;  %v2057_v13 = vmax.f32 %v2025_v7, 0.0  ;;  %v2071_v0 = vmax.f32 %v2039_v14, 0.0 }
 0x261   : > { %v2005_v51 = vmul.f32 %v4025_v50, %v7306_v27  ;;  %v2075_v15 = vmax.f32 %v2043_v49, 0.0  ;;  %v2445_v49 = vsel %vm688_vm2, %v2442_v23, %v2444_v42  ;;  %v2035_v23 = vadd.f32 %v7312_v31, %v1996_v43 }
 0x262   : > { %v2028_v52 = vadd.f32 %v7312_v31, %v1989_v12  ;;  %4849 = vrot.lane.b32.xlu0 %v4838_v24, %s5391_s19  ;;  %v4878_v43 = vpack.i.bf16 %v7541_v36, %v7498_v21  ;;  %v1955_v44 = vpop.f32.mrf.mxu0 }
 0x263   : > { %v2044_v48 = vadd.f32 %v7312_v31, %v2005_v51  ;;  %v7503_v20 = vrot.slane %v2075_v15, 7  ;;  %v1987_v51 = vmul.f32 %v7306_v27, %v7370_v30  ;;  %v7524_v30 = vsel %vm345_vm0, %v2125_v2, 0.0 }
 0x264   : > { %4834 = vrot.lane.b32.xlu1 %v4813_v1, %s5392_s20  ;;  %v2286_v1 = vrot.slane %v7498_v21, 1  ;;  %v7531_v15 = vsel %vm345_vm0, %v2122_v38, 0.0  ;;  %v1998_v2 = vmul.f32 %v7306_v27, %v7429_v55  ;;  %v2294_v7 = vrot.slane %v7524_v30, 1 }
 0x265   : > { %v2076_v50 = vmax.f32 %v2044_v48, 0.0  ;;  %v4843_v48 = vpack.i.bf16 %v2445_v49, %v2443_v22  ;;  %v2026_v42 = vadd.f32 %v7312_v31, %v1987_v51  ;;  %v2459_v4 = vrot.slane %v7524_v30, 2 }
 0x266   : > { %v2289_v12 = vrot.slane %v7531_v15, 1  ;;  %v2060_v57 = vmax.f32 %v2028_v52, 0.0  ;;  %v2036_v51 = vadd.f32 %v7312_v31, %v1997_v6  ;;  %v7550_v55 = vsel %vm345_vm0, 0.0, %v2130_v33 }
 0x267   : > { %v7505_v41 = vrot.slane %v2076_v50, 7  ;;  %v2127_v50 = vrot.slane %v2057_v13, 7  ;;  %4854 = vrot.lane.b32.xlu0 %v4843_v48, %s5392_s20  ;;  %v2001_v38 = vmul.f32 %v7431_v5, %v7306_v27  ;;  %v2058_v22 = vmax.f32 %v2026_v42, 0.0 }
 0x268   : > { %4844 = vrot.lane.b32.xlu1 %v4843_v48, %s5386_s8  ;;  %v2037_v49 = vadd.f32 %v7312_v31, %v1998_v2  ;;  %v1999_v13 = vmul.f32 %v7306_v27, %v7439_v18  ;;  %v2067_v6 = vmax.f32 %v2035_v23, 0.0  ;;  %v2131_v42 = vrot.slane %v2060_v57, 7 }
 0x269   : > { %v7520_v58 = vsel %vm345_vm0, %v7503_v20, %v7505_v41  ;;  %v7562_v52 = vsel %vm345_vm0, 0.0, %v2127_v50  ;;  %v2068_v2 = vmax.f32 %v2036_v51, 0.0  ;;  %v2002_v18 = vmul.f32 %v7306_v27, %v7455_v3 }
 0x26a   : > { %9163 = vst [vmem:[#allocation31_spill] sm:$0xff] %v7562_v52  ;;  %v2040_v23 = vadd.f32 %v7312_v31, %v2001_v38  ;;  %v2069_v9 = vmax.f32 %v2037_v49, 0.0  ;;  %v2038_v17 = vadd.f32 %v7312_v31, %v1999_v13  ;;  %v2142_v53 = vrot.slane %v2067_v6, 7 }
 0x26b   : > { %4879 = vrot.lane.b32.xlu0 %v4878_v43, %s5387_s9  ;;  %v2458_v3 = vsel %vm688_vm2, %v2456_v16, %v2457_v10  ;;  %v2460_v57 = vsel %vm688_vm2, %v2457_v10, %v2459_v4  ;;  %v7583_v51 = vsel %vm345_vm0, %v2130_v33, %v2131_v42  ;;  %v2143_v14 = vrot.slane %v2068_v2, 7 }
 0x26c   : > { %4859 = vrot.lane.b32.xlu1 %v4838_v24, %s5388_s10  ;;  %v2128_v24 = vrot.slane %v2058_v22, 7  ;;  %v2041_v38 = vadd.f32 %v7312_v31, %v2002_v18  ;;  %v2003_v22 = vmul.f32 %v7306_v27, %v1955_v44  ;;  %v2148_v49 = vrot.slane %v2071_v0, 7 }
 0x26d   : > { %v2072_v13 = vmax.f32 %v2040_v23, 0.0  ;;  %v4868_v16 = vpack.i.bf16 %v7513_v19, %v7486_v34  ;;  %v2145_v33 = vrot.slane %v2069_v9, 7  ;;  %v2070_v6 = vmax.f32 %v2038_v17, 0.0 }
 0x26e   : > { %v7594_v4 = vsel %vm345_vm0, %v2127_v50, %v2128_v24  ;;  %v7596_v10 = vpack.i.bf16 %v2460_v57, %v2458_v3  ;;  %v7599_v2 = vsel %vm345_vm0, %v2128_v24, 0.0  ;;  %v7602_v44 = vsel %vm345_vm0, 0.0, %v2142_v53 }
 0x26f   : > { %4884 = vrot.lane.b32.xlu0 %v4878_v43, %s5390_s12  ;;  %9164 = vst [vmem:[#allocation33_spill] sm:$0xff] %v7594_v4  ;;  %v2293_v0 = vsel %vm511_vm1, %v2291_v8, %v2292_v47  ;;  %v2295_v43 = vsel %vm511_vm1, %v2292_v47, %v2294_v7  ;;  %v7611_v17 = vsel %vm345_vm0, %v2143_v14, 0.0  ;;  %v2073_v9 = vmax.f32 %v2041_v38, 0.0 }
 0x270   : > { %4864 = vrot.lane.b32.xlu1 %v4843_v48, %s5389_s11  ;;  %v7589_v48 = vsel %vm345_vm0, %v2131_v42, 0.0  ;;  %v2042_v42 = vadd.f32 %v7312_v31, %v2003_v22  ;;  %v7618_v23 = vsel %vm345_vm0, 0.0, %v2148_v49  ;;  %v2149_v24 = vrot.slane %v2072_v13, 7 }
 0x271   : > { %9165 = vst [vmem:[#allocation35_spill] sm:$0xff] %v7618_v23  ;;  %v7622_v7 = vsel %vm345_vm0, 0.0, %v2145_v33  ;;  %v2146_v3 = vrot.slane %v2070_v6, 7  ;;  %v4898_v57 = vpack.i.bf16 %v2295_v43, %v2293_v0  ;;  %v7626_v38 = vsel %vm345_vm0, %v2142_v53, %v2143_v14 }
 0x272   : > { %v2324_v22 = vrot.slane %v7611_v17, 1  ;;  %v2287_v50 = vrot.slane %v7541_v36, 1  ;;  %v2489_v13 = vrot.slane %v7611_v17, 2  ;;  %v2331_v18 = vrot.slane %v7618_v23, 1 }
 0x273   : > { %4894 = vrot.lane.b32.xlu0 %v7596_v10, %s5386_s8  ;;  %v2151_v5 = vrot.slane %v2073_v9, 7  ;;  %v2074_v8 = vmax.f32 %v2042_v42, 0.0  ;;  %v2496_v6 = vrot.slane %v7618_v23, 2  ;;  %v2233_v53 = vsel %vm345_vm0, %v2149_v24, 0.0 }
 0x274   : > { %4869 = vrot.lane.b32.xlu1 %v4868_v16, %s5387_s9  ;;  %v2491_v14 = vrot.slane %v7622_v7, 2  ;;  %v7642_v43 = vsel %vm345_vm0, %v2146_v3, 0.0  ;;  %v7645_v17 = vsel %vm345_vm0, %v2145_v33, %v2146_v3  ;;  %v7649_v9 = vsel %vm345_vm0, 0.0, %v7503_v20 }
 0x275   : > { %v2288_v42 = vsel %vm511_vm1, %v2286_v1, %v2287_v50  ;;  %v7659_v0 = vsel %vm345_vm0, 0.0, %v2151_v5  ;;  %v7663_v33 = vsel %vm345_vm0, %v7505_v41, 0.0  ;;  %v2152_v20 = vrot.slane %v2074_v8, 7 }
 0x276   : > { %9167 = vst [vmem:[#allocation39_spill] sm:$0xff] %v7659_v0  ;;  %v2499_v3 = vrot.slane %v2233_v53, 2  ;;  %v2329_v47 = vrot.slane %v7642_v43, 1  ;;  %v2452_v1 = vrot.slane %v7541_v36, 2  ;;  %v2494_v30 = vrot.slane %v7642_v43, 2 }
 0x277   : > { %4899 = vrot.lane.b32.xlu0 %v4898_v57, %s5388_s10  ;;  %v2336_v59 = vrot.slane %v7659_v0, 1  ;;  %v2501_v41 = vrot.slane %v7659_v0, 2  ;;  %v7680_v43 = vsel %vm345_vm0, %v2151_v5, %v2152_v20  ;;  %v2487_v5 = vrot.slane %v7626_v38, 2 }
 0x278   : > { %4874 = vrot.lane.b32.xlu1 %v4868_v16, %s5390_s12  ;;  %v7639_v16 = vsel %vm345_vm0, %v2148_v49, %v2149_v24  ;;  %v2290_v49 = vsel %vm511_vm1, %v2287_v50, %v2289_v12  ;;  %v2334_v24 = vrot.slane %v2233_v53, 1  ;;  %9168 = vst [vmem:[#allocation40_spill] sm:$0xff] %v7680_v43  ;;  %v2234_v50 = vsel %vm345_vm0, %v2152_v20, 0.0 }
 0x279   : > { %9166 = vst [vmem:[#allocation36_spill] sm:$0xff] %v7639_v16  ;;  %v4918_v46 = vpack.i.bf16 %v2290_v49, %v2288_v42  ;;  %v9169_v42 = vrot.slane %v7498_v21, 2  ;;  %v9170_v12 = vrot.slane %v7531_v15, 2  ;;  %v2332_v20 = vrot.slane %v7639_v16, 1 }
 0x27a   : > { %v3503_v53 = vsel %vm1802_vm3, %v7465_v40, 0  ;;  %v2339_v8 = vrot.slane %v2234_v50, 1  ;;  %v2504_v21 = vrot.slane %v2234_v50, 2  ;;  %v2497_v15 = vrot.slane %v7639_v16, 2 }
 0x27b   : > { %4904 = vrot.lane.b32.xlu0 %v7596_v10, %s5389_s11  ;;  %v2453_v49 = vsel %vm688_vm2, %v9169_v42, %v2452_v1  ;;  %v2455_v35 = vsel %vm688_vm2, %v2452_v1, %v9170_v12  ;;  %v2492_v1 = vrot.slane %v7645_v17, 2  ;;  %v4953_v42 = vpack.i.bf16 %v7594_v4, %v7562_v52  ;;  %4027 = vmatpush3.bf16.msra.mxu1 %v3503_v53 }
 0x27c   : > { %4889 = vrot.lane.b32.xlu1 %v4898_v57, %s5385_s30  ;;  %v4933_v12 = vpack.i.bf16 %v2455_v35, %v2453_v49  ;;  %v2327_v36 = vrot.slane %v7645_v17, 1  ;;  %v9171_v40 = vrot.slane %v7602_v44, 1  ;;  %4028 = vmatprep.subr.bf16.mxu1 %v5342_v54  ;;  %v9172_v35 = vrot.slane %v7602_v44, 2 }
 0x27d   : > { %v2490_v16 = vsel %vm688_vm2, %v2487_v5, %v2489_v13  ;;  %v2333_v53 = vsel %vm511_vm1, %v2331_v18, %v2332_v20  ;;  %v2502_v23 = vrot.slane %v7680_v43, 2  ;;  %v2493_v32 = vsel %vm688_vm2, %v2491_v14, %v2492_v1 }
 0x27e   : > { %v2488_v49 = vsel %vm688_vm2, %v9172_v35, %v2487_v5  ;;  %v2467_v35 = vrot.slane %v7583_v51, 2  ;;  %v2495_v13 = vsel %vm688_vm2, %v2492_v1, %v2494_v30  ;;  %v9173_v18 = vrot.slane %v7622_v7, 1 }
 0x27f   : > { %4919 = vrot.lane.b32.xlu0 %v4918_v46, %s5385_s30  ;;  %4029 = vmatpush3.bf16.msra.mxu1 %v5342_v54  ;;  %v2503_v14 = vsel %vm688_vm2, %v2501_v41, %v2502_v23  ;;  %v9177_v41 = vrot.slane %v7520_v58, 1 }
 0x280   : > { %4909 = vrot.lane.b32.xlu1 %v4898_v57, %s5391_s19  ;;  %v2322_v57 = vrot.slane %v7626_v38, 1  ;;  %v2328_v5 = vsel %vm511_vm1, %v9173_v18, %v2327_v36  ;;  %4030 = vmatprep.subr.bf16.mxu1 %v5343_v61  ;;  %v2301_v18 = vrot.slane %v7550_v55, 1 }
 0x282   : > { %v2323_v50 = vsel %vm511_vm1, %v9171_v40, %v2322_v57  ;;  %v2325_v0 = vsel %vm511_vm1, %v2322_v57, %v2324_v22  ;;  %v2335_v22 = vsel %vm511_vm1, %v2332_v20, %v2334_v24  ;;  %v2498_v57 = vsel %vm688_vm2, %v2496_v6, %v2497_v15 }
 0x283   : > { %4929 = vrot.lane.b32.xlu0 %v4918_v46, %s5391_s19  ;;  %v2500_v40 = vsel %vm688_vm2, %v2497_v15, %v2499_v3  ;;  %v7734_v3 = vpack.i.bf16 %v2325_v0, %v2323_v50  ;;  %v2505_v20 = vsel %vm688_vm2, %v2502_v23, %v2504_v21  ;;  %v7738_v15 = vpack.i.bf16 %v2490_v16, %v2488_v49 }
 0x284   : > { %4914 = vrot.lane.b32.xlu1 %v7596_v10, %s5392_s20  ;;  %v2337_v10 = vrot.slane %v7680_v43, 1  ;;  %v2330_v43 = vsel %vm511_vm1, %v2327_v36, %v2329_v47  ;;  %v7740_v30 = vpack.i.bf16 %v2335_v22, %v2333_v53  ;;  %v7745_v54 = vpack.i.bf16 %v2500_v40, %v2498_v57  ;;  %4031 = vmatpush3.bf16.msra.mxu1 %v5343_v61 }
 0x285   : > { %v7743_v1 = vpack.i.bf16 %v2330_v43, %v2328_v5  ;;  %v9174_v36 = vrot.slane %v7550_v55, 2  ;;  %v2302_v21 = vrot.slane %v7583_v51, 1  ;;  %v9175_v0 = vrot.slane %v7589_v48, 2 }
 0x286   : > { %v2338_v24 = vsel %vm511_vm1, %v2336_v59, %v2337_v10  ;;  %v2340_v6 = vsel %vm511_vm1, %v2337_v10, %v2339_v8  ;;  %v7747_v59 = vpack.i.bf16 %v2495_v13, %v2493_v32  ;;  %v7759_v16 = vpack.i.bf16 %v2505_v20, %v2503_v14 }
 0x287   : > { %4934 = vrot.lane.b32.xlu0 %v4933_v12, %s5392_s20  ;;  %v2468_v47 = vsel %vm688_vm2, %v9174_v36, %v2467_v35  ;;  %v7754_v23 = vpack.i.bf16 %v2340_v6, %v2338_v24  ;;  %v7763_v32 = vpack.i.bf16 %v7520_v58, %v7649_v9  ;;  %v9178_v8 = vrot.slane %v7649_v9, 1 }
 0x288   : > { %4924 = vrot.lane.b32.xlu1 %v4933_v12, %s5386_s8  ;;  %v9179_v61 = vrot.slane %v7663_v33, 1  ;;  %v9180_v50 = vmov %v9177_v41  ;;  %v9181_v49 = vrot.slane %v7520_v58, 2  ;;  %v9182_v53 = vrot.slane %v7649_v9, 2 }
 0x289   : > { %9176 = vst [vmem:[#allocation34_spill] sm:$0xff] %v7763_v32  ;;  %v2696_v43 = vsel %vm511_vm1, %v9178_v8, %v9177_v41  ;;  %v9184_v40 = vrot.slane %v7663_v33, 2  ;;  %v2464_v9 = vrot.slane %v7599_v2, 2  ;;  %v1992_v24 = vmul.f32 %v7374_v29, %v7306_v27 }
 0x28a   : > { %v2698_v10 = vsel %vm511_vm1, %v9180_v50, %v9179_v61  ;;  %v2797_v22 = vsel %vm688_vm2, %v9182_v53, %v9181_v49  ;;  %v7799_v33 = vpack.i.bf16 %v7583_v51, %v7550_v55  ;;  %v2303_v6 = vsel %vm511_vm1, %v2301_v18, %v2302_v21 }
 0x28b   : > { %4954 = vrot.lane.b32.xlu0 %v4953_v42, %s5387_s9  ;;  %v7781_v57 = vpack.i.bf16 %v2698_v10, %v2696_v43  ;;  %v2462_v20 = vrot.slane %v7594_v4, 2  ;;  %v2299_v36 = vrot.slane %v7599_v2, 1  ;;  %v2032_v29 = vadd.f32 %v7312_v31, %v7572_v56 }
 0x28c   : > { %4939 = vrot.lane.b32.xlu1 %v4918_v46, %s5388_s10  ;;  %v2470_v46 = vsel %vm688_vm2, %v2467_v35, %v9175_v0  ;;  %v9185_v35 = vmov %v9181_v49  ;;  %v1990_v0 = vmul.f32 %v7306_v27, %v7379_v25  ;;  %v2031_v2 = vadd.f32 %v7312_v31, %v1992_v24 }
 0x28d   : > { %9183 = vst [vmem:[#allocation37_spill] sm:$0xff] %v7781_v57  ;;  %v2799_v13 = vsel %vm688_vm2, %v9185_v35, %v9184_v40  ;;  %v7801_v58 = vpack.i.bf16 %v2470_v46, %v2468_v47  ;;  %v2461_v47 = vrot.slane %v7562_v52, 2  ;;  %v2465_v41 = vsel %vm688_vm2, %v2462_v20, %v2464_v9 }
 0x28e   : > { %v7790_v5 = vpack.i.bf16 %v2799_v13, %v2797_v22  ;;  %v2064_v8 = vmax.f32 %v2032_v29, 0.0  ;;  %v2029_v61 = vadd.f32 %v7312_v31, %v1990_v0  ;;  %v2063_v50 = vmax.f32 %v2031_v2, 0.0 }
 0x28f   : > { %4959 = vrot.lane.b32.xlu0 %v4953_v42, %s5390_s12  ;;  %v9187_v42 = vrot.slane %v7589_v48, 1  ;;  %v2296_v48 = vrot.slane %v7562_v52, 1  ;;  %v2463_v46 = vsel %vm688_vm2, %v2461_v47, %v2462_v20  ;;  %v1995_v40 = vmul.f32 %v7306_v27, %v7416_v62 }
 0x290   : > { %4944 = vrot.lane.b32.xlu1 %v4933_v12, %s5389_s11  ;;  %9186 = vst [vmem:[#allocation41_spill] sm:$0xff] %v7790_v5  ;;  %v1991_v12 = vmul.f32 %v7306_v27, %v7393_v63  ;;  %v2297_v63 = vrot.slane %v7594_v4, 1  ;;  %v4983_v10 = vpack.i.bf16 %v2465_v41, %v2463_v46  ;;  %v2137_v22 = vrot.slane %v2064_v8, 7 }
 0x291   : > { %v2305_v14 = vsel %vm511_vm1, %v2302_v21, %v9187_v42  ;;  %v2061_v35 = vmax.f32 %v2029_v61, 0.0  ;;  %v2136_v18 = vrot.slane %v2063_v50, 7  ;;  %v1994_v9 = vmul.f32 %v7306_v27, %v7408_v28 }
 0x292   : > { %v7821_v21 = vpack.i.bf16 %v2305_v14, %v2303_v6  ;;  %v2030_v56 = vadd.f32 %v7312_v31, %v1991_v12  ;;  %v2298_v25 = vsel %vm511_vm1, %v2296_v48, %v2297_v63  ;;  %v2300_v43 = vsel %vm511_vm1, %v2297_v63, %v2299_v36 }
 0x293   : > { %4969 = vrot.lane.b32.xlu0 %v7801_v58, %s5386_s8  ;;  %v4978_v53 = vpack.i.bf16 %v2300_v43, %v2298_v25  ;;  %v7842_v12 = vsel %vm345_vm0, %v2136_v18, %v2137_v22  ;;  %v2229_v6 = vsel %vm345_vm0, %v2137_v22, 0.0  ;;  %v2034_v42 = vadd.f32 %v7312_v31, %v1995_v40 }
 0x294   : > { %4949 = vrot.lane.b32.xlu1 %v7799_v33, %s5387_s9  ;;  %v2062_v49 = vmax.f32 %v2030_v56, 0.0  ;;  %9188 = vst [vmem:[#allocation42_spill] sm:$0xff] %v7842_v12  ;;  %v2133_v14 = vrot.slane %v2061_v35, 7  ;;  %v7853_v36 = vsel %vm345_vm0, 0.0, %v2136_v18  ;;  %v2033_v27 = vadd.f32 %v7312_v31, %v1994_v9 }
 0x295   : > { %9189 = vst [vmem:[#allocation44_spill] sm:$0xff] %v7853_v36  ;;  %v2314_v28 = vrot.slane %v2229_v6, 1  ;;  %v2312_v63 = vrot.slane %v7842_v12, 1  ;;  %v2479_v47 = vrot.slane %v2229_v6, 2  ;;  %v2066_v48 = vmax.f32 %v2034_v42, 0.0 }
 0x296   : > { %v2134_v24 = vrot.slane %v2062_v49, 7  ;;  %v2477_v2 = vrot.slane %v7842_v12, 2  ;;  %v2311_v56 = vrot.slane %v7853_v36, 1  ;;  %v2476_v46 = vrot.slane %v7853_v36, 2 }
 0x297   : > { %4974 = vrot.lane.b32.xlu0 %v7821_v21, %s5388_s10  ;;  %v7866_v31 = vsel %vm345_vm0, 0.0, %v2133_v14  ;;  %v2065_v25 = vmax.f32 %v2033_v27, 0.0  ;;  %v7871_v43 = vpack.i.bf16 %v7842_v12, %v7853_v36  ;;  %v2140_v40 = vrot.slane %v2066_v48, 7 }
 0x298   : > { %4964 = vrot.lane.b32.xlu1 %v7821_v21, %s5385_s30  ;;  %v2228_v29 = vsel %vm345_vm0, %v2134_v24, 0.0  ;;  %v7859_v0 = vsel %vm345_vm0, %v2133_v14, %v2134_v24  ;;  %9191 = vst [vmem:[#allocation46_spill] sm:$0xff] %v7866_v31  ;;  %v2313_v49 = vsel %vm511_vm1, %v2311_v56, %v2312_v63  ;;  %v2478_v35 = vsel %vm688_vm2, %v2476_v46, %v2477_v2 }
 0x299   : > { %9190 = vst [vmem:[#allocation45_spill] sm:$0xff] %v7859_v0  ;;  %v2309_v41 = vrot.slane %v2228_v29, 1  ;;  %v2474_v8 = vrot.slane %v2228_v29, 2  ;;  %v7877_v50 = vpack.i.bf16 %v7859_v0, %v7866_v31  ;;  %v2480_v18 = vsel %vm688_vm2, %v2477_v2, %v2479_v47 }
 0x29a   : > { %v2307_v9 = vrot.slane %v7859_v0, 1  ;;  %v2471_v24 = vrot.slane %v7866_v31, 2  ;;  %v2306_v6 = vrot.slane %v7866_v31, 1  ;;  %v2139_v42 = vrot.slane %v2065_v25, 7 }
 0x29b   : > { %4979 = vrot.lane.b32.xlu0 %v4978_v53, %s5385_s30  ;;  %v2230_v48 = vsel %vm345_vm0, %v2140_v40, 0.0 }
 0x29c   : > { %4984 = vrot.lane.b32.xlu1 %v4983_v10, %s5386_s8  ;;  %v7902_v47 = vsel %vm345_vm0, %v2139_v42, %v2140_v40  ;;  %v2308_v2 = vsel %vm511_vm1, %v2306_v6, %v2307_v9  ;;  %v2310_v56 = vsel %vm511_vm1, %v2307_v9, %v2309_v41  ;;  %v7912_v25 = vsel %vm345_vm0, 0.0, %v2139_v42 }
 0x29d   : > { %9192 = vst [vmem:[#allocation47_spill] sm:$0xff] %v7902_v47  ;;  %9193 = vst [vmem:[#allocation3_spill] sm:$0xff] %v7912_v25  ;;  %v2482_v40 = vrot.slane %v7902_v47, 2  ;;  %v7930_v9 = vpack.i.bf16 %v7902_v47, %v7912_v25  ;;  %v2319_v42 = vrot.slane %v2230_v48, 1 }
 0x29f   : > { %4989 = vrot.lane.b32.xlu0 %v4978_v53, %s5391_s19 }
 0x2a0   : > { %4999 = vrot.lane.b32.xlu1 %v4978_v53, %s5388_s10  ;;  %v2315_v53 = vsel %vm511_vm1, %v2312_v63, %v2314_v28  ;;  %v7897_v28 = vpack.i.bf16 %v2480_v18, %v2478_v35  ;;  %v2481_v35 = vrot.slane %v7912_v25, 2 }
 0x2a1   : > { %v7893_v14 = vpack.i.bf16 %v2315_v53, %v2313_v49  ;;  %v2484_v53 = vrot.slane %v2230_v48, 2 }
 0x2a3   : > { %4994 = vrot.lane.b32.xlu0 %v4983_v10, %s5392_s20  ;;  %v2485_v6 = vsel %vm688_vm2, %v2482_v40, %v2484_v53 }
 0x2a4   : > { %5004 = vrot.lane.b32.xlu1 %v4983_v10, %s5389_s11  ;;  %v2472_v10 = vrot.slane %v7859_v0, 2 }
 0x2a6   : > { %v7837_v13 = vpop.permute.xlu1 %4724  ;;  %v2473_v29 = vsel %vm688_vm2, %v2471_v24, %v2472_v10  ;;  %v2475_v63 = vsel %vm688_vm2, %v2472_v10, %v2474_v8  ;;  %v7918_v10 = vpack.i.bf16 %v2310_v56, %v2308_v2  ;;  %v2483_v24 = vsel %vm688_vm2, %v2481_v35, %v2482_v40 }
 0x2a7   : > { %5014 = vrot.lane.b32.xlu0 %v7877_v50, %s5387_s9  ;;  %v7914_v8 = vpack.i.bf16 %v2475_v63, %v2473_v29  ;;  %v2317_v63 = vrot.slane %v7902_v47, 1  ;;  %v2316_v2 = vrot.slane %v7912_v25, 1  ;;  %v7942_v56 = vpack.i.bf16 %v2485_v6, %v2483_v24  ;;  %v9194_v25 = vld [vmem:[#allocation11_spill] sm:$0xff] }
 0x2a8   : > { %v7847_v62 = vpop.permute.xlu0 %4734  ;;  %5009 = vrot.lane.b32.xlu1 %v7871_v43, %s5387_s9 }
 0x2a9   : > { %v2318_v53 = vsel %vm511_vm1, %v2316_v2, %v2317_v63  ;;  %v2320_v48 = vsel %vm511_vm1, %v2317_v63, %v2319_v42  ;;  %v4737_v31 = vunpack.i.h.bf16 %v7847_v62  ;;  %v4736_v24 = vunpack.i.l.bf16 %v7847_v62 }
 0x2aa   : > { %v7850_v20 = vpop.permute.xlu1 %4729  ;;  %v7952_v47 = vpack.i.bf16 %v2320_v48, %v2318_v53  ;;  %v9195_v53 = vld [vmem:[#allocation12_spill] sm:$0xff] }
 0x2ab   : > { %5024 = vrot.lane.b32.xlu0 %v7897_v28, %s5386_s8  ;;  %v3227_v0 = vsel %vm1519_vm6, %v9194_v25, %v4737_v31  ;;  %v3226_v48 = vsel %vm1519_vm6, %v9195_v53, %v4736_v24  ;;  %v4732_v4 = vunpack.i.h.bf16 %v7850_v20  ;;  %v4731_v36 = vunpack.i.l.bf16 %v7850_v20 }
 0x2ac   : > { %v7873_v61 = vpop.permute.xlu0 %4744  ;;  %5019 = vrot.lane.b32.xlu1 %v7893_v14, %s5385_s30 }
 0x2ae   : > { %v7881_v22 = vpop.permute.xlu1 %4739 }
 0x2af   : > { %5029 = vrot.lane.b32.xlu0 %v7918_v10, %s5385_s30 }
 0x2b0   : > { %v7895_v27 = vpop.permute.xlu0 %4749  ;;  %5034 = vrot.lane.b32.xlu1 %v7914_v8, %s5386_s8 }
 0x2b2   : > { %v4760_v46 = vpop.permute.xlu1 %4759 }
 0x2b3   : > { %5039 = vrot.lane.b32.xlu0 %v7930_v9, %s5387_s9  ;;  %v4762_v31 = vunpack.i.h.bf16 %v4760_v46  ;;  %v4761_v25 = vunpack.i.l.bf16 %v4760_v46 }
 0x2b4   : > { %v7916_v49 = vpop.permute.xlu0 %4754  ;;  %5044 = vrot.lane.b32.xlu1 %v7734_v3, %s5385_s30 }
 0x2b6   : > { %v4765_v41 = vpop.permute.xlu1 %4764 }
 0x2b7   : > { %5049 = vrot.lane.b32.xlu0 %v7738_v15, %s5386_s8  ;;  %v4767_v5 = vunpack.i.h.bf16 %v4765_v41  ;;  %v4766_v57 = vunpack.i.l.bf16 %v4765_v41 }
 0x2b8   : > { %v7926_v18 = vpop.permute.xlu0 %4769  ;;  %5059 = vrot.lane.b32.xlu1 %v7942_v56, %s5386_s8 }
 0x2ba   : > { %v7936_v29 = vpop.permute.xlu1 %4774 }
 0x2bb   : > { %5054 = vrot.lane.b32.xlu0 %v7952_v47, %s5385_s30 }
 0x2bc   : > { %v7948_v40 = vpop.permute.xlu0 %4799  ;;  %5064 = vrot.lane.b32.xlu1 %v7740_v30, %s5385_s30 }
 0x2be   : > { %v4780_v35 = vpop.permute.xlu1 %4779 }
 0x2bf   : > { %v4782_v6 = vunpack.i.h.bf16 %v4780_v35  ;;  %v4781_v42 = vunpack.i.l.bf16 %v4780_v35  ;;  %5069 = vrot.lane.b32.xlu0 %v7745_v54, %s5386_s8 }
 0x2c0   : > { %v7960_v63 = vpop.permute.xlu0 %4804  ;;  %5084 = vrot.lane.b32.xlu1 %v7747_v59, %s5386_s8 }
 0x2c1   : > { %v3259_v35 = vsel %vm1552_vm7, %v3227_v0, %v4782_v6  ;;  %v3258_v12 = vsel %vm1552_vm7, %v3226_v48, %v4781_v42  ;;  %v4777_v42 = vunpack.i.h.bf16 %v7936_v29  ;;  %v4776_v48 = vunpack.i.l.bf16 %v7936_v29 }
 0x2c2   : > { %v4785_v2 = vpop.permute.xlu1 %4784  ;;  %v4727_v29 = vunpack.i.h.bf16 %v7837_v13 }
 0x2c3   : > { %v4787_v62 = vunpack.i.h.bf16 %v4785_v2  ;;  %v4786_v52 = vunpack.i.l.bf16 %v4785_v2  ;;  %5074 = vrot.lane.b32.xlu0 %v7743_v1, %s5385_s30 }
 0x2c4   : > { %v7980_v0 = vpop.permute.xlu0 %4814  ;;  %5089 = vrot.lane.b32.xlu1 %v7799_v33, %s5390_s12  ;;  %v4771_v33 = vunpack.i.l.bf16 %v7926_v18 }
 0x2c5   : > { %v3290_v24 = vsel %vm1585_vm8, %v3258_v12, %v4786_v52  ;;  %v3291_v53 = vsel %vm1585_vm8, %v3259_v35, %v4787_v62 }
 0x2c6   : > { %v7976_v2 = vpop.permute.xlu1 %4789  ;;  %v3322_v32 = vsel %vm1618_vm9, %v3290_v24, %v4731_v36  ;;  %v3323_v20 = vsel %vm1618_vm9, %v3291_v53, %v4732_v4  ;;  %v4751_v53 = vunpack.i.l.bf16 %v7895_v27 }
 0x2c7   : > { %v3354_v6 = vsel %vm1651_vm10, %v3322_v32, %v4761_v25  ;;  %v3355_v46 = vsel %vm1651_vm10, %v3323_v20, %v4762_v31  ;;  %5079 = vrot.lane.b32.xlu0 %v7801_v58, %s5389_s11  ;;  %v4772_v32 = vunpack.i.h.bf16 %v7926_v18  ;;  %v3166_v18 = vsel %vm1453_vm4, %v7333_v39, %v4771_v33 }
 0x2c8   : > { %v3386_v52 = vsel %vm1684_vm11, %v3354_v6, %v4766_v57  ;;  %v3387_v12 = vsel %vm1684_vm11, %v3355_v46, %v4767_v5  ;;  %v7992_v4 = vpop.permute.xlu0 %4819  ;;  %5104 = vrot.lane.b32.xlu1 %v7759_v16, %s5386_s8  ;;  %v3196_v35 = vsel %vm1486_vm5, %v3166_v18, %v4776_v48  ;;  %v4726_v25 = vunpack.i.l.bf16 %v7837_v13 }
 0x2c9   : > { %v3418_v41 = vpack.c.bf16 %v3387_v12, %v3386_v52  ;;  %v3167_v62 = vsel %vm1453_vm4, %v7325_v45, %v4772_v32  ;;  %v4807_v46 = vunpack.i.h.bf16 %v7960_v63  ;;  %v4806_v52 = vunpack.i.l.bf16 %v7960_v63 }
 0x2ca   : > { %v7990_v36 = vpop.permute.xlu1 %4794  ;;  %v3197_v31 = vsel %vm1486_vm5, %v3167_v62, %v4777_v42  ;;  %v4757_v12 = vunpack.i.h.bf16 %v7916_v49  ;;  %v4741_v42 = vunpack.i.l.bf16 %v7881_v22 }
 0x2cb   : > { %4032 = vmatprep.mubr.msk.bf16.mxu1 %vm1753_vm12, %v3418_v41  ;;  %5094 = vrot.lane.b32.xlu0 %v7754_v23, %s5385_s30  ;;  %v3229_v24 = vsel %vm1519_vm6, %v3197_v31, %v4727_v29 }
 0x2cc   : > { %5109 = vrot.lane.b32.xlu1 %v7821_v21, %s5391_s19  ;;  %v8007_v5 = vpop.permute.xlu0 %4824 }
 0x2ce   : > { %v8003_v57 = vpop.permute.xlu1 %4809 }
 0x2cf   : > { %5099 = vrot.lane.b32.xlu0 %v7877_v50, %s5390_s12  ;;  %v4752_v50 = vunpack.i.h.bf16 %v7895_v27  ;;  %v4742_v27 = vunpack.i.h.bf16 %v7881_v22 }
 0x2d0   : > { %5119 = vrot.lane.b32.xlu1 %v7801_v58, %s5392_s20  ;;  %v8025_v45 = vpop.permute.xlu0 %4839  ;;  %v3228_v58 = vsel %vm1519_vm6, %v3196_v35, %v4726_v25 }
 0x2d1   : > { %v3260_v13 = vsel %vm1552_vm7, %v3228_v58, %v4751_v53  ;;  %v3261_v6 = vsel %vm1552_vm7, %v3229_v24, %v4752_v50  ;;  %v3169_v22 = vsel %vm1453_vm4, %v7322_v60, %v4742_v27  ;;  %v3168_v50 = vsel %vm1453_vm4, %v7330_v37, %v4741_v42 }
 0x2d2   : > { %v8017_v21 = vpop.permute.xlu1 %4829  ;;  %v3293_v48 = vsel %vm1585_vm8, %v3261_v6, %v4757_v12  ;;  %v4801_v53 = vunpack.i.l.bf16 %v7948_v40  ;;  %v4747_v6 = vunpack.i.h.bf16 %v7873_v61  ;;  %v4797_v42 = vunpack.i.h.bf16 %v7990_v36 }
 0x2d3   : > { %5114 = vrot.lane.b32.xlu0 %v7918_v10, %s5391_s19  ;;  %v3325_v18 = vsel %vm1618_vm9, %v3293_v48, %v4807_v46  ;;  %v4746_v46 = vunpack.i.l.bf16 %v7873_v61 }
 0x2d4   : > { %5129 = vrot.lane.b32.xlu1 %v7918_v10, %s5388_s10  ;;  %v4850_v20 = vpop.permute.xlu0 %4849  ;;  %v4756_v10 = vunpack.i.l.bf16 %v7916_v49 }
 0x2d5   : > { %v4852_v41 = vunpack.i.h.bf16 %v4850_v20  ;;  %v4851_v32 = vunpack.i.l.bf16 %v4850_v20  ;;  %v3198_v37 = vsel %vm1486_vm5, %v3168_v50, %v4746_v46 }
 0x2d6   : > { %v8029_v39 = vpop.permute.xlu1 %4834  ;;  %v3292_v63 = vsel %vm1585_vm8, %v3260_v13, %v4756_v10  ;;  %v8082_v10 = vpack.i.bf16 %v7626_v38, %v7602_v44 }
 0x2d7   : > { %5124 = vrot.lane.b32.xlu0 %v7914_v8, %s5392_s20  ;;  %v3324_v49 = vsel %vm1618_vm9, %v3292_v63, %v4806_v52  ;;  %v4796_v63 = vunpack.i.l.bf16 %v7990_v36  ;;  %v4837_v36 = vunpack.i.h.bf16 %v8029_v39 }
 0x2d8   : > { %5139 = vrot.lane.b32.xlu1 %v7914_v8, %s5389_s11  ;;  %v3357_v8 = vsel %vm1651_vm10, %v3325_v18, %v4852_v41  ;;  %v3356_v29 = vsel %vm1651_vm10, %v3324_v49, %v4851_v32  ;;  %v3230_v41 = vsel %vm1519_vm6, %v3198_v37, %v4801_v53  ;;  %v4832_v18 = vunpack.i.h.bf16 %v8017_v21 }
 0x2d9   : > { %v4855_v62 = vpop.permute.xlu0 %4854  ;;  %v4831_v49 = vunpack.i.l.bf16 %v8017_v21  ;;  %v4842_v53 = vunpack.i.h.bf16 %v8025_v45 }
 0x2da   : > { %v8048_v33 = vpop.permute.xlu1 %4844  ;;  %v4857_v35 = vunpack.i.h.bf16 %v4855_v62  ;;  %v4856_v31 = vunpack.i.l.bf16 %v4855_v62 }
 0x2db   : > { %5134 = vrot.lane.b32.xlu0 %v7893_v14, %s5388_s10  ;;  %v4846_v46 = vunpack.i.l.bf16 %v8048_v33 }
 0x2dc   : > { %5149 = vrot.lane.b32.xlu1 %v7871_v43, %s5390_s12  ;;  %v3388_v25 = vsel %vm1684_vm11, %v3356_v29, %v4856_v31  ;;  %v3389_v58 = vsel %vm1684_vm11, %v3357_v8, %v4857_v35  ;;  %v4802_v43 = vunpack.i.h.bf16 %v7948_v40  ;;  %v3199_v40 = vsel %vm1486_vm5, %v3169_v22, %v4747_v6 }
 0x2dd   : > { %v8069_v20 = vpop.permute.xlu0 %4879  ;;  %v3419_v13 = vpack.c.bf16 %v3389_v58, %v3388_v25  ;;  %v4836_v8 = vunpack.i.l.bf16 %v8029_v39  ;;  %v4847_v6 = vunpack.i.h.bf16 %v8048_v33 }
 0x2de   : > { %v4860_v24 = vpop.permute.xlu1 %4859  ;;  %v3231_v61 = vsel %vm1519_vm6, %v3199_v40, %v4802_v43 }
 0x2df   : > { %v4862_v60 = vunpack.i.h.bf16 %v4860_v24  ;;  %v4861_v52 = vunpack.i.l.bf16 %v4860_v24  ;;  %4033 = vmatmul.mubr.msk.bf16.vlgmr.msra.gmra.mxu1 %vm1753_vm12, %v3419_v13  ;;  %5144 = vrot.lane.b32.xlu0 %v7897_v28, %s5389_s11  ;;  %v4841_v13 = vunpack.i.l.bf16 %v8025_v45  ;;  %v8133_v45 = vpack.i.bf16 %v7645_v17, %v7622_v7 }
 0x2e0   : > { %5159 = vrot.lane.b32.xlu1 %v7893_v14, %s5391_s19 }
 0x2e1   : > { %v8086_v32 = vpop.permute.xlu0 %4884  ;;  %v3263_v48 = vsel %vm1552_vm7, %v3231_v61, %v4862_v60  ;;  %v3262_v62 = vsel %vm1552_vm7, %v3230_v41, %v4861_v52  ;;  %v3171_v41 = vsel %vm1453_vm4, %v7398_v11, %v4842_v53  ;;  %v3170_v33 = vsel %vm1453_vm4, %v7406_v26, %v4841_v13 }
 0x2e2   : > { %v4865_v12 = vpop.permute.xlu1 %4864 }
 0x2e3   : > { %v4867_v14 = vunpack.i.h.bf16 %v4865_v12  ;;  %v4866_v27 = vunpack.i.l.bf16 %v4865_v12  ;;  %5154 = vrot.lane.b32.xlu0 %v7930_v9, %s5390_s12 }
 0x2e4   : > { %5169 = vrot.lane.b32.xlu1 %v7897_v28, %s5392_s20 }
 0x2e5   : > { %v3294_v35 = vsel %vm1585_vm8, %v3262_v62, %v4866_v27  ;;  %v3295_v31 = vsel %vm1585_vm8, %v3263_v48, %v4867_v14  ;;  %v4895_v25 = vpop.permute.xlu0 %4894  ;;  %v4791_v62 = vunpack.i.l.bf16 %v7976_v2 }
 0x2e6   : > { %v3326_v29 = vsel %vm1618_vm9, %v3294_v35, %v4796_v63  ;;  %v3327_v22 = vsel %vm1618_vm9, %v3295_v31, %v4797_v42  ;;  %v8104_v28 = vpop.permute.xlu1 %4869  ;;  %v4897_v12 = vunpack.i.h.bf16 %v4895_v25  ;;  %v4896_v61 = vunpack.i.l.bf16 %v4895_v25 }
 0x2e7   : > { %v3358_v21 = vsel %vm1651_vm10, %v3326_v29, %v4831_v49  ;;  %v3359_v58 = vsel %vm1651_vm10, %v3327_v22, %v4832_v18  ;;  %5164 = vrot.lane.b32.xlu0 %v7952_v47, %s5391_s19  ;;  %v3200_v42 = vsel %vm1486_vm5, %v3170_v33, %v4846_v46  ;;  %v3201_v63 = vsel %vm1486_vm5, %v3171_v41, %v4847_v6  ;;  %v9197_v41 = vld [vmem:[#allocation35_spill] sm:$0xff]  ;;  %v9198_v33 = vld [vmem:[#allocation36_spill] sm:$0xff] }
 0x2e8   : > { %5179 = vrot.lane.b32.xlu1 %v8082_v10, %s5387_s9  ;;  %v3390_v9 = vsel %vm1684_vm11, %v3358_v21, %v4836_v8  ;;  %v3391_v24 = vsel %vm1684_vm11, %v3359_v58, %v4837_v36  ;;  %v4822_v49 = vunpack.i.h.bf16 %v7992_v4  ;;  %v4821_v35 = vunpack.i.l.bf16 %v7992_v4 }
 0x2e9   : > { %v3420_v39 = vpack.c.bf16 %v3391_v24, %v3390_v9  ;;  %v8116_v43 = vpop.permute.xlu0 %4899  ;;  %v4887_v29 = vunpack.i.h.bf16 %v8086_v32  ;;  %v4886_v22 = vunpack.i.l.bf16 %v8086_v32  ;;  %v4826_v25 = vunpack.i.l.bf16 %v8007_v5 }
 0x2ea   : > { %v8114_v50 = vpop.permute.xlu1 %4874  ;;  %v4812_v58 = vunpack.i.h.bf16 %v8003_v57  ;;  %v4811_v24 = vunpack.i.l.bf16 %v8003_v57  ;;  %v9196_v57 = vld [vmem:[#allocation38_spill] sm:$0xff] }
 0x2eb   : > { %4036 = vmatprep.mubr.msk.bf16.mxu1 %vm1753_vm12, %v3420_v39  ;;  %5174 = vrot.lane.b32.xlu0 %v7942_v56, %s5392_s20 }
 0x2ec   : > { %5189 = vrot.lane.b32.xlu1 %v7734_v3, %s5388_s10 }
 0x2ed   : > { %v8127_v52 = vpop.permute.xlu0 %4904 }
 0x2ee   : > { %v4890_v60 = vpop.permute.xlu1 %4889 }
 0x2ef   : > { %v4892_v37 = vunpack.i.h.bf16 %v4890_v60  ;;  %v4891_v40 = vunpack.i.l.bf16 %v4890_v60  ;;  %5184 = vrot.lane.b32.xlu0 %v7952_v47, %s5388_s10  ;;  %v3232_v47 = vsel %vm1519_vm6, %v3200_v42, %v4791_v62 }
 0x2f0   : > { %5199 = vrot.lane.b32.xlu1 %v7738_v15, %s5389_s11 }
 0x2f1   : > { %v3177_v14 = vsel %vm1453_vm4, %v7513_v19, %v4892_v37  ;;  %v3176_v27 = vsel %vm1453_vm4, %v7486_v34, %v4891_v40  ;;  %v4792_v19 = vunpack.i.h.bf16 %v7976_v2  ;;  %v8157_v34 = vpop.permute.xlu0 %4919  ;;  %v3264_v2 = vsel %vm1552_vm7, %v3232_v47, %v4821_v35 }
 0x2f2   : > { %v8147_v48 = vpop.permute.xlu1 %4909  ;;  %v8150_v11 = vsel %vm1486_vm5, %v3176_v27, %v4896_v61  ;;  %v8153_v26 = vsel %vm1486_vm5, %v3177_v14, %v4897_v12  ;;  %v3296_v32 = vsel %vm1585_vm8, %v3264_v2, %v4826_v25  ;;  %v3173_v37 = vsel %vm1453_vm4, %v9196_v57, %v4812_v58  ;;  %v9199_v27 = vld [vmem:[#allocation28_spill] sm:$0xff] }
 0x2f3   : > { %v3233_v18 = vsel %vm1519_vm6, %v3201_v63, %v4792_v19  ;;  %5194 = vrot.lane.b32.xlu0 %v7942_v56, %s5389_s11  ;;  %v4827_v56 = vunpack.i.h.bf16 %v8007_v5  ;;  %v3328_v5 = vsel %vm1618_vm9, %v3296_v32, %v4886_v22  ;;  %v8199_v14 = vpack.i.bf16 %v9198_v33, %v9197_v41 }
 0x2f4   : > { %5209 = vrot.lane.b32.xlu1 %v8133_v45, %s5390_s12  ;;  %v3265_v8 = vsel %vm1552_vm7, %v3233_v18, %v4822_v49  ;;  %v3172_v42 = vsel %vm1453_vm4, %v9199_v27, %v4811_v24  ;;  %v4882_v63 = vunpack.i.h.bf16 %v8069_v20  ;;  %v4881_v19 = vunpack.i.l.bf16 %v8069_v20  ;;  %v9200_v27 = vld [vmem:[#allocation39_spill] sm:$0xff] }
 0x2f5   : > { %v4930_v36 = vpop.permute.xlu0 %4929  ;;  %v3297_v39 = vsel %vm1585_vm8, %v3265_v8, %v4827_v56  ;;  %v4817_v47 = vunpack.i.h.bf16 %v7980_v0  ;;  %v4816_v18 = vunpack.i.l.bf16 %v7980_v0  ;;  %v4877_v25 = vunpack.i.h.bf16 %v8114_v50 }
 0x2f6   : > { %v8167_v31 = vpop.permute.xlu1 %4914  ;;  %v4932_v21 = vunpack.i.h.bf16 %v4930_v36  ;;  %v4931_v4 = vunpack.i.l.bf16 %v4930_v36  ;;  %v3329_v13 = vsel %vm1618_vm9, %v3297_v39, %v4887_v29  ;;  %v4912_v58 = vunpack.i.h.bf16 %v8147_v48 }
 0x2f7   : > { %5204 = vrot.lane.b32.xlu0 %v8082_v10, %s5390_s12  ;;  %v3202_v36 = vsel %vm1486_vm5, %v3172_v42, %v4816_v18  ;;  %v3203_v20 = vsel %vm1486_vm5, %v3173_v37, %v4817_v47  ;;  %v4911_v24 = vunpack.i.l.bf16 %v8147_v48  ;;  %v4921_v57 = vunpack.i.l.bf16 %v8157_v34  ;;  %v9201_v42 = vld [vmem:[#allocation40_spill] sm:$0xff] }
 0x2f8   : > { %5219 = vrot.lane.b32.xlu1 %v7743_v1, %s5391_s19  ;;  %v3361_v10 = vsel %vm1651_vm10, %v3329_v13, %v4932_v21  ;;  %v3360_v60 = vsel %vm1651_vm10, %v3328_v5, %v4931_v4  ;;  %v3235_v8 = vsel %vm1519_vm6, %v3203_v20, %v4882_v63  ;;  %v3234_v29 = vsel %vm1519_vm6, %v3202_v36, %v4881_v19 }
 0x2f9   : > { %v4935_v53 = vpop.permute.xlu0 %4934  ;;  %v4876_v21 = vunpack.i.l.bf16 %v8114_v50  ;;  %v4917_v50 = vunpack.i.h.bf16 %v8167_v31  ;;  %v5268_v63 = vpack.i.bf16 %v9201_v42, %v9200_v27 }
 0x2fa   : > { %v8180_v9 = vpop.permute.xlu1 %4924  ;;  %v4937_v6 = vunpack.i.h.bf16 %v4935_v53  ;;  %v4936_v46 = vunpack.i.l.bf16 %v4935_v53  ;;  %v4916_v53 = vunpack.i.l.bf16 %v8167_v31  ;;  %v4922_v31 = vunpack.i.h.bf16 %v8157_v34 }
 0x2fb   : > { %5214 = vrot.lane.b32.xlu0 %v7734_v3, %s5391_s19 }
 0x2fc   : > { %5229 = vrot.lane.b32.xlu1 %v7747_v59, %s5392_s20  ;;  %v3392_v40 = vsel %vm1684_vm11, %v3360_v60, %v4936_v46  ;;  %v3393_v12 = vsel %vm1684_vm11, %v3361_v10, %v4937_v6 }
 0x2fd   : > { %v3421_v3 = vpack.c.bf16 %v3393_v12, %v3392_v40  ;;  %v8205_v62 = vpop.permute.xlu0 %4954  ;;  %v4927_v40 = vunpack.i.h.bf16 %v8180_v9  ;;  %v4926_v12 = vunpack.i.l.bf16 %v8180_v9 }
 0x2fe   : > { %v4940_v61 = vpop.permute.xlu1 %4939 }
 0x2ff   : > { %v4942_v49 = vunpack.i.h.bf16 %v4940_v61  ;;  %v4941_v35 = vunpack.i.l.bf16 %v4940_v61  ;;  %4037 = vmatmul.mubr.msk.bf16.gmra.mxu1 %vm1753_vm12, %v3421_v3  ;;  %5224 = vrot.lane.b32.xlu0 %v7738_v15, %s5392_s20 }
 0x300   : > { %5239 = vrot.lane.b32.xlu1 %v8199_v14, %s5387_s9 }
 0x301   : > { %v8218_v0 = vpop.permute.xlu0 %4959  ;;  %v3267_v4 = vsel %vm1552_vm7, %v3235_v8, %v4942_v49  ;;  %v3266_v15 = vsel %vm1552_vm7, %v3234_v29, %v4941_v35  ;;  %v9203_v35 = vld [vmem:[#allocation29_spill] sm:$0xff] }
 0x302   : > { %v4945_v2 = vpop.permute.xlu1 %4944  ;;  %v3174_v9 = vsel %vm1453_vm4, %v9203_v35, %v4921_v57 }
 0x303   : > { %v4947_v22 = vunpack.i.h.bf16 %v4945_v2  ;;  %v4946_v56 = vunpack.i.l.bf16 %v4945_v2  ;;  %5234 = vrot.lane.b32.xlu0 %v8133_v45, %s5387_s9  ;;  %v3204_v2 = vsel %vm1486_vm5, %v3174_v9, %v4926_v12  ;;  %v9206_v9 = vld [vmem:[#allocation41_spill] sm:$0xff] }
 0x304   : > { %5249 = vrot.lane.b32.xlu1 %v7740_v30, %s5388_s10 }
 0x305   : > { %v3298_v32 = vsel %vm1585_vm8, %v3266_v15, %v4946_v56  ;;  %v3299_v39 = vsel %vm1585_vm8, %v3267_v4, %v4947_v22  ;;  %v4970_v46 = vpop.permute.xlu0 %4969  ;;  %v4902_v4 = vunpack.i.h.bf16 %v8116_v43  ;;  %v4901_v15 = vunpack.i.l.bf16 %v8116_v43 }
 0x306   : > { %v3330_v13 = vsel %vm1618_vm9, %v3298_v32, %v4876_v21  ;;  %v3331_v5 = vsel %vm1618_vm9, %v3299_v39, %v4877_v25  ;;  %v8236_v6 = vpop.permute.xlu1 %4949  ;;  %v4972_v18 = vunpack.i.h.bf16 %v4970_v46  ;;  %v4971_v34 = vunpack.i.l.bf16 %v4970_v46 }
 0x307   : > { %v3362_v48 = vsel %vm1651_vm10, %v3330_v13, %v4911_v24  ;;  %v3363_v10 = vsel %vm1651_vm10, %v3331_v5, %v4912_v58  ;;  %5244 = vrot.lane.b32.xlu0 %v7743_v1, %s5388_s10  ;;  %v9202_v1 = vld [vmem:[#allocation32_spill] sm:$0xff]  ;;  %v4871_v25 = vunpack.i.l.bf16 %v8104_v28  ;;  %v4962_v39 = vunpack.i.h.bf16 %v8218_v0 }
 0x308   : > { %5259 = vrot.lane.b32.xlu1 %v7745_v54, %s5389_s11  ;;  %v3394_v45 = vsel %vm1684_vm11, %v3362_v48, %v4916_v53  ;;  %v3395_v60 = vsel %vm1684_vm11, %v3363_v10, %v4917_v50  ;;  %v3175_v49 = vsel %vm1453_vm4, %v9202_v1, %v4922_v31  ;;  %v4961_v50 = vunpack.i.l.bf16 %v8218_v0 }
 0x309   : > { %v3422_v37 = vpack.c.bf16 %v3395_v60, %v3394_v45  ;;  %v8252_v19 = vpop.permute.xlu0 %4974  ;;  %v3205_v8 = vsel %vm1486_vm5, %v3175_v49, %v4927_v40  ;;  %v4906_v53 = vunpack.i.l.bf16 %v8127_v52 }
 0x30a   : > { %v4965_v61 = vpop.permute.xlu1 %4964 }
 0x30b   : > { %v4967_v3 = vunpack.i.h.bf16 %v4965_v61  ;;  %v4966_v47 = vunpack.i.l.bf16 %v4965_v61  ;;  %4040 = vmatprep.mubr.msk.bf16.mxu1 %vm1753_vm12, %v3422_v37  ;;  %5254 = vrot.lane.b32.xlu0 %v7747_v59, %s5389_s11  ;;  %v3236_v59 = vsel %vm1519_vm6, %v3204_v2, %v4871_v25  ;;  %v9208_v2 = vld [vmem:[#allocation44_spill] sm:$0xff] }
 0x30c   : > { %5269 = vrot.lane.b32.xlu1 %v5268_v63, %s5390_s12 }
 0x30d   : > { %v3181_v36 = vsel %vm1453_vm4, %v7583_v51, %v4967_v3  ;;  %v3180_v20 = vsel %vm1453_vm4, %v7550_v55, %v4966_v47  ;;  %v4872_v51 = vunpack.i.h.bf16 %v8104_v28  ;;  %v8278_v55 = vpop.permute.xlu0 %4979  ;;  %v3268_v28 = vsel %vm1552_vm7, %v3236_v59, %v4901_v15  ;;  %v9205_v47 = vld [vmem:[#allocation37_spill] sm:$0xff] }
 0x30e   : > { %v8268_v29 = vpop.permute.xlu1 %4984  ;;  %v8271_v22 = vsel %vm1486_vm5, %v3180_v20, %v4971_v34  ;;  %v8274_v56 = vsel %vm1486_vm5, %v3181_v36, %v4972_v18  ;;  %v3300_v46 = vsel %vm1585_vm8, %v3268_v28, %v4906_v53  ;;  %v9207_v36 = vld [vmem:[#allocation42_spill] sm:$0xff] }
 0x30f   : > { %v3237_v21 = vsel %vm1519_vm6, %v3205_v8, %v4872_v51  ;;  %5264 = vrot.lane.b32.xlu0 %v8199_v14, %s5390_s12  ;;  %v4907_v14 = vunpack.i.h.bf16 %v8127_v52  ;;  %v3332_v45 = vsel %vm1618_vm9, %v3300_v46, %v4961_v50  ;;  %v9204_v52 = vld [vmem:[#allocation34_spill] sm:$0xff] }
 0x310   : > { %5279 = vrot.lane.b32.xlu1 %v7754_v23, %s5391_s19  ;;  %v3269_v32 = vsel %vm1552_vm7, %v3237_v21, %v4902_v4 }
 0x311   : > { %v4990_v24 = vpop.permute.xlu0 %4989  ;;  %v3301_v48 = vsel %vm1585_vm8, %v3269_v32, %v4907_v14 }
 0x312   : > { %v8288_v58 = vpop.permute.xlu1 %4999  ;;  %v4992_v13 = vunpack.i.h.bf16 %v4990_v24  ;;  %v4991_v43 = vunpack.i.l.bf16 %v4990_v24  ;;  %v3333_v0 = vsel %vm1618_vm9, %v3301_v48, %v4962_v39 }
 0x313   : > { %5274 = vrot.lane.b32.xlu0 %v7740_v30, %s5391_s19 }
 0x314   : > { %5289 = vrot.lane.b32.xlu1 %v7759_v16, %s5392_s20  ;;  %v3365_v57 = vsel %vm1651_vm10, %v3333_v0, %v4992_v13  ;;  %v3364_v30 = vsel %vm1651_vm10, %v3332_v45, %v4991_v43 }
 0x315   : > { %v4995_v10 = vpop.permute.xlu0 %4994 }
 0x316   : > { %v8300_v5 = vpop.permute.xlu1 %5004  ;;  %v4997_v60 = vunpack.i.h.bf16 %v4995_v10  ;;  %v4996_v31 = vunpack.i.l.bf16 %v4995_v10 }
 0x317   : > { %5284 = vrot.lane.b32.xlu0 %v7745_v54, %s5392_s20 }
 0x318   : > { %5299 = vrot.lane.b32.xlu1 %v9204_v52, %s5387_s9  ;;  %v3396_v37 = vsel %vm1684_vm11, %v3364_v30, %v4996_v31  ;;  %v3397_v40 = vsel %vm1684_vm11, %v3365_v57, %v4997_v60 }
 0x319   : > { %v3423_v61 = vpack.c.bf16 %v3397_v40, %v3396_v37  ;;  %v8316_v3 = vpop.permute.xlu0 %5014 }
 0x31a   : > { %v8314_v12 = vpop.permute.xlu1 %5009 }
 0x31b   : > { %4041 = vmatmul.mubr.msk.bf16.gmra.mxu1 %vm1753_vm12, %v3423_v61  ;;  %5294 = vrot.lane.b32.xlu0 %v5268_v63, %s5387_s9 }
 0x31c   : > { %5309 = vrot.lane.b32.xlu1 %v9205_v47, %s5388_s10 }
 0x31d   : > { %v5025_v34 = vpop.permute.xlu0 %5024 }
 0x31e   : > { %v5020_v18 = vpop.permute.xlu1 %5019  ;;  %v5027_v49 = vunpack.i.h.bf16 %v5025_v34  ;;  %v5026_v35 = vunpack.i.l.bf16 %v5025_v34 }
 0x31f   : > { %v5022_v1 = vunpack.i.h.bf16 %v5020_v18  ;;  %v5021_v54 = vunpack.i.l.bf16 %v5020_v18  ;;  %5304 = vrot.lane.b32.xlu0 %v7754_v23, %s5388_s10 }
 0x320   : > { %5319 = vrot.lane.b32.xlu1 %v9206_v9, %s5389_s11 }
 0x321   : > { %v3185_v20 = vsel %vm1453_vm4, %v9207_v36, %v5022_v1  ;;  %v3184_v8 = vsel %vm1453_vm4, %v9208_v2, %v5021_v54  ;;  %v8334_v59 = vpop.permute.xlu0 %5029  ;;  %v4957_v1 = vunpack.i.h.bf16 %v8205_v62  ;;  %v5002_v2 = vunpack.i.h.bf16 %v8288_v58 }
 0x322   : > { %v8330_v51 = vpop.permute.xlu1 %5034  ;;  %v3214_v63 = vsel %vm1486_vm5, %v3184_v8, %v5026_v35  ;;  %v3215_v25 = vsel %vm1486_vm5, %v3185_v20, %v5027_v49  ;;  %v4981_v35 = vunpack.i.l.bf16 %v8278_v55  ;;  %v5001_v8 = vunpack.i.l.bf16 %v8288_v58 }
 0x323   : > { %5314 = vrot.lane.b32.xlu0 %v7759_v16, %s5389_s11  ;;  %v4987_v58 = vunpack.i.h.bf16 %v8268_v29 }
 0x324   : > { %5329 = vrot.lane.b32.xlu1 %v9205_v47, %s5391_s19 }
 0x325   : > { %v5040_v4 = vpop.permute.xlu0 %5039 }
 0x326   : > { %v5045_v21 = vpop.permute.xlu1 %5044  ;;  %v5042_v28 = vunpack.i.h.bf16 %v5040_v4  ;;  %v5041_v23 = vunpack.i.l.bf16 %v5040_v4  ;;  %v4986_v4 = vunpack.i.l.bf16 %v8268_v29 }
 0x327   : > { %v5047_v15 = vunpack.i.h.bf16 %v5045_v21  ;;  %v5046_v24 = vunpack.i.l.bf16 %v5045_v21  ;;  %5324 = vrot.lane.b32.xlu0 %v9204_v52, %s5390_s12  ;;  %v5006_v21 = vunpack.i.l.bf16 %v8300_v5 }
 0x328   : > { %v8343_v32 = vsel %vm1519_vm6, %v3215_v25, %v5042_v28  ;;  %v8346_v39 = vsel %vm1519_vm6, %v3214_v63, %v5041_v23  ;;  %v9209_v23 = vld [vmem:[#allocation33_spill] sm:$0xff] }
 0x329   : > { %v3189_v16 = vsel %vm1453_vm4, %v7626_v38, %v5047_v15  ;;  %v3188_v14 = vsel %vm1453_vm4, %v7602_v44, %v5046_v24  ;;  %v5050_v53 = vpop.permute.xlu0 %5049 }
 0x32a   : > { %v8348_v50 = vpop.permute.xlu1 %5059  ;;  %v5052_v13 = vunpack.i.h.bf16 %v5050_v53  ;;  %v5051_v43 = vunpack.i.l.bf16 %v5050_v53 }
 0x32b   : > { %5334 = vrot.lane.b32.xlu0 %v9206_v9, %s5392_s20 }
 0x32c   : > { %v8357_v46 = vsel %vm1486_vm5, %v3189_v16, %v5052_v13  ;;  %v8360_v48 = vsel %vm1486_vm5, %v3188_v14, %v5051_v43  ;;  %v9210_v14 = vld [vmem:[#allocation31_spill] sm:$0xff] }
 0x32d   : > { %v8362_v0 = vpop.permute.xlu0 %5054 }
 0x32e   : > { %v5065_v10 = vpop.permute.xlu1 %5064 }
 0x32f   : > { %v5067_v45 = vunpack.i.h.bf16 %v5065_v10  ;;  %v5066_v38 = vunpack.i.l.bf16 %v5065_v10 }
 0x331   : > { %v3193_v44 = vsel %vm1453_vm4, %v9198_v33, %v5067_v45  ;;  %v3192_v31 = vsel %vm1453_vm4, %v9197_v41, %v5066_v38  ;;  %v5070_v52 = vpop.permute.xlu0 %5069  ;;  %v4956_v33 = vunpack.i.l.bf16 %v8205_v62  ;;  %v4982_v41 = vunpack.i.h.bf16 %v8278_v55 }
 0x332   : > { %v5085_v60 = vpop.permute.xlu1 %5084  ;;  %v5072_v57 = vunpack.i.h.bf16 %v5070_v52  ;;  %v5071_v30 = vunpack.i.l.bf16 %v5070_v52  ;;  %v3239_v55 = vsel %vm1519_vm6, %v8153_v26, %v4957_v1  ;;  %v3178_v26 = vsel %vm1453_vm4, %v9210_v14, %v4981_v35 }
 0x333   : > { %v5087_v54 = vunpack.i.h.bf16 %v5085_v60  ;;  %v5086_v49 = vunpack.i.l.bf16 %v5085_v60  ;;  %v3179_v16 = vsel %vm1453_vm4, %v9209_v23, %v4982_v41  ;;  %v3271_v53 = vsel %vm1552_vm7, %v3239_v55, %v5002_v2 }
 0x334   : > { %v8369_v37 = vsel %vm1486_vm5, %v3192_v31, %v5071_v30  ;;  %v8372_v40 = vsel %vm1486_vm5, %v3193_v44, %v5072_v57  ;;  %v4951_v35 = vunpack.i.l.bf16 %v8236_v6 }
 0x335   : > { %v5075_v47 = vpop.permute.xlu0 %5074 }
 0x336   : > { %v5090_v61 = vpop.permute.xlu1 %5089  ;;  %v5077_v18 = vunpack.i.h.bf16 %v5075_v47  ;;  %v5076_v34 = vunpack.i.l.bf16 %v5075_v47 }
 0x337   : > { %v5092_v15 = vunpack.i.h.bf16 %v5090_v61  ;;  %v5091_v24 = vunpack.i.l.bf16 %v5090_v61 }
 0x338   : > { %v3191_v9 = vsel %vm1453_vm4, %v7645_v17, %v5077_v18  ;;  %v3190_v36 = vsel %vm1453_vm4, %v7622_v7, %v5076_v34  ;;  %v3238_v17 = vsel %vm1519_vm6, %v8150_v11, %v4956_v33  ;;  %v5007_v7 = vunpack.i.h.bf16 %v8300_v5 }
 0x339   : > { %v8384_v63 = vpop.permute.xlu0 %5079  ;;  %v8387_v62 = vsel %vm1486_vm5, %v3190_v36, %v5086_v49  ;;  %v8390_v25 = vsel %vm1486_vm5, %v3191_v9, %v5087_v54  ;;  %v3270_v11 = vsel %vm1552_vm7, %v3238_v17, %v5001_v8  ;;  %v3208_v54 = vsel %vm1486_vm5, %v3178_v26, %v4986_v4 }
 0x33a   : > { %v5105_v20 = vpop.permute.xlu1 %5104  ;;  %v3302_v29 = vsel %vm1585_vm8, %v3270_v11, %v5006_v21  ;;  %v3303_v38 = vsel %vm1585_vm8, %v3271_v53, %v5007_v7  ;;  %v3209_v49 = vsel %vm1486_vm5, %v3179_v16, %v4987_v58  ;;  %v3240_v8 = vsel %vm1519_vm6, %v3208_v54, %v4951_v35 }
 0x33b   : > { %v5107_v60 = vunpack.i.h.bf16 %v5105_v20  ;;  %v5106_v44 = vunpack.i.l.bf16 %v5105_v20  ;;  %v3335_v31 = vsel %vm1618_vm9, %v3303_v38, %v5092_v15  ;;  %v3334_v52 = vsel %vm1618_vm9, %v3302_v29, %v5091_v24 }
 0x33c   : > { %v5082_v17 = vunpack.i.h.bf16 %v8384_v63  ;;  %v5081_v7 = vunpack.i.l.bf16 %v8384_v63  ;;  %v4977_v58 = vunpack.i.h.bf16 %v8252_v19  ;;  %v4976_v4 = vunpack.i.l.bf16 %v8252_v19 }
 0x33d   : > { %v5095_v13 = vpop.permute.xlu0 %5094 }
 0x33e   : > { %v5110_v28 = vpop.permute.xlu1 %5109  ;;  %v5097_v43 = vunpack.i.h.bf16 %v5095_v13  ;;  %v5096_v5 = vunpack.i.l.bf16 %v5095_v13  ;;  %v3272_v23 = vsel %vm1552_vm7, %v3240_v8, %v4976_v4  ;;  %v9211_v8 = vld [vmem:[#allocation45_spill] sm:$0xff] }
 0x33f   : > { %v5112_v10 = vunpack.i.h.bf16 %v5110_v28  ;;  %v5111_v45 = vunpack.i.l.bf16 %v5110_v28  ;;  %v3304_v63 = vsel %vm1585_vm8, %v3272_v23, %v5081_v7 }
 0x340   : > { %v3195_v57 = vsel %vm1453_vm4, %v9201_v42, %v5097_v43  ;;  %v3194_v30 = vsel %vm1453_vm4, %v9200_v27, %v5096_v5  ;;  %v4952_v27 = vunpack.i.h.bf16 %v8236_v6 }
 0x341   : > { %v5100_v47 = vpop.permute.xlu0 %5099  ;;  %v8415_v1 = vsel %vm1486_vm5, %v3194_v30, %v5106_v44  ;;  %v8418_v33 = vsel %vm1486_vm5, %v3195_v57, %v5107_v60  ;;  %v3367_v41 = vsel %vm1651_vm10, %v3335_v31, %v5112_v10  ;;  %v3366_v42 = vsel %vm1651_vm10, %v3334_v52, %v5111_v45 }
 0x342   : > { %v5120_v61 = vpop.permute.xlu1 %5119  ;;  %v3241_v55 = vsel %vm1519_vm6, %v3209_v49, %v4952_v27  ;;  %v5102_v6 = vunpack.i.h.bf16 %v5100_v47  ;;  %v5101_v15 = vunpack.i.l.bf16 %v5100_v47  ;;  %v5017_v31 = vunpack.i.h.bf16 %v8316_v3 }
 0x343   : > { %v5122_v18 = vunpack.i.h.bf16 %v5120_v61  ;;  %v5121_v34 = vunpack.i.l.bf16 %v5120_v61  ;;  %v3273_v16 = vsel %vm1552_vm7, %v3241_v55, %v4977_v58  ;;  %v5016_v52 = vunpack.i.l.bf16 %v8316_v3 }
 0x344   : > { %v3305_v26 = vsel %vm1585_vm8, %v3273_v16, %v5082_v17  ;;  %v3336_v19 = vsel %vm1618_vm9, %v3304_v63, %v5101_v15  ;;  %v5032_v61 = vunpack.i.h.bf16 %v8334_v59  ;;  %v5031_v47 = vunpack.i.l.bf16 %v8334_v59  ;;  %v9212_v17 = vld [vmem:[#allocation46_spill] sm:$0xff] }
 0x345   : > { %v3398_v9 = vsel %vm1684_vm11, %v3366_v42, %v5121_v34  ;;  %v3399_v36 = vsel %vm1684_vm11, %v3367_v41, %v5122_v18  ;;  %v5115_v21 = vpop.permute.xlu0 %5114  ;;  %v3337_v11 = vsel %vm1618_vm9, %v3305_v26, %v5102_v6  ;;  %v3243_v27 = vsel %vm1519_vm6, %v8274_v56, %v5017_v31 }
 0x346   : > { %v3424_v20 = vpack.c.bf16 %v3399_v36, %v3398_v9  ;;  %v5130_v2 = vpop.permute.xlu1 %5129  ;;  %v5117_v24 = vunpack.i.h.bf16 %v5115_v21  ;;  %v5116_v28 = vunpack.i.l.bf16 %v5115_v21  ;;  %v3242_v3 = vsel %vm1519_vm6, %v8271_v22, %v5016_v52 }
 0x347   : > { %v5132_v57 = vunpack.i.h.bf16 %v5130_v2  ;;  %v5131_v30 = vunpack.i.l.bf16 %v5130_v2  ;;  %v5037_v36 = vunpack.i.h.bf16 %v8330_v51  ;;  %v3183_v55 = vsel %vm1453_vm4, %v9211_v8, %v5032_v61 }
 0x348   : > { %4044 = vmatprep.mubr.msk.bf16.mxu1 %vm1753_vm12, %v3424_v20  ;;  %v3368_v5 = vsel %vm1651_vm10, %v3336_v19, %v5116_v28  ;;  %v3369_v10 = vsel %vm1651_vm10, %v3337_v11, %v5117_v24  ;;  %v5036_v20 = vunpack.i.l.bf16 %v8330_v51  ;;  %v3182_v7 = vsel %vm1453_vm4, %v9212_v17, %v5031_v47  ;;  %v9213_v17 = vld [vmem:[#allocation47_spill] sm:$0xff] }
 0x349   : > { %v5125_v53 = vpop.permute.xlu0 %5124  ;;  %v3275_v59 = vsel %vm1552_vm7, %v3243_v27, %v5132_v57  ;;  %v3274_v2 = vsel %vm1552_vm7, %v3242_v3, %v5131_v30  ;;  %v3213_v26 = vsel %vm1486_vm5, %v3183_v55, %v5037_v36 }
 0x34a   : > { %v5140_v14 = vpop.permute.xlu1 %5139  ;;  %v5127_v13 = vunpack.i.h.bf16 %v5125_v53  ;;  %v5126_v43 = vunpack.i.l.bf16 %v5125_v53  ;;  %v3212_v23 = vsel %vm1486_vm5, %v3182_v7, %v5036_v20 }
 0x34b   : > { %v5142_v18 = vunpack.i.h.bf16 %v5140_v14  ;;  %v5141_v34 = vunpack.i.l.bf16 %v5140_v14 }
 0x34c   : > { %v3400_v45 = vsel %vm1684_vm11, %v3368_v5, %v5126_v43  ;;  %v3401_v29 = vsel %vm1684_vm11, %v3369_v10, %v5127_v13  ;;  %v5012_v13 = vunpack.i.h.bf16 %v8314_v12  ;;  %v5011_v43 = vunpack.i.l.bf16 %v8314_v12 }
 0x34d   : > { %v3425_v60 = vpack.c.bf16 %v3401_v29, %v3400_v45  ;;  %v5135_v44 = vpop.permute.xlu0 %5134  ;;  %v3306_v56 = vsel %vm1585_vm8, %v3274_v2, %v5141_v34  ;;  %v3307_v22 = vsel %vm1585_vm8, %v3275_v59, %v5142_v18  ;;  %v5057_v59 = vunpack.i.h.bf16 %v8362_v0 }
 0x34e   : > { %v5150_v38 = vpop.permute.xlu1 %5149  ;;  %v5137_v63 = vunpack.i.h.bf16 %v5135_v44  ;;  %v5136_v53 = vunpack.i.l.bf16 %v5135_v44  ;;  %v3245_v31 = vsel %vm1519_vm6, %v3213_v26, %v5012_v13  ;;  %v5056_v2 = vunpack.i.l.bf16 %v8362_v0 }
 0x34f   : > { %4045 = vmatmul.mubr.msk.bf16.gmra.mxu1 %vm1753_vm12, %v3425_v60  ;;  %v5152_v49 = vunpack.i.h.bf16 %v5150_v38  ;;  %v5151_v41 = vunpack.i.l.bf16 %v5150_v38  ;;  %v3244_v60 = vsel %vm1519_vm6, %v3212_v23, %v5011_v43  ;;  %v3187_v7 = vsel %vm1453_vm4, %v9213_v17, %v5057_v59 }
 0x350   : > { %v3277_v44 = vsel %vm1552_vm7, %v3245_v31, %v5137_v63  ;;  %v3276_v30 = vsel %vm1552_vm7, %v3244_v60, %v5136_v53 }
 0x351   : > { %v5145_v42 = vpop.permute.xlu0 %5144  ;;  %v3338_v58 = vsel %vm1618_vm9, %v3306_v56, %v5151_v41  ;;  %v3339_v4 = vsel %vm1618_vm9, %v3307_v22, %v5152_v49  ;;  %v9214_v56 = vld [vmem:[#allocation3_spill] sm:$0xff] }
 0x352   : > { %v5160_v54 = vpop.permute.xlu1 %5159  ;;  %v5147_v5 = vunpack.i.h.bf16 %v5145_v42  ;;  %v5146_v10 = vunpack.i.l.bf16 %v5145_v42  ;;  %v3186_v22 = vsel %vm1453_vm4, %v9214_v56, %v5056_v2 }
 0x353   : > { %v5162_v35 = vunpack.i.h.bf16 %v5160_v54  ;;  %v5161_v9 = vunpack.i.l.bf16 %v5160_v54 }
 0x354   : > { %v3308_v12 = vsel %vm1585_vm8, %v3276_v30, %v5146_v10  ;;  %v3309_v47 = vsel %vm1585_vm8, %v3277_v44, %v5147_v5 }
 0x355   : > { %v5155_v51 = vpop.permute.xlu0 %5154  ;;  %v3370_v24 = vsel %vm1651_vm10, %v3338_v58, %v5161_v9  ;;  %v3371_v28 = vsel %vm1651_vm10, %v3339_v4, %v5162_v35  ;;  %v5062_v4 = vunpack.i.h.bf16 %v8348_v50 }
 0x356   : > { %v5170_v21 = vpop.permute.xlu1 %5169  ;;  %v5157_v29 = vunpack.i.h.bf16 %v5155_v51  ;;  %v5156_v38 = vunpack.i.l.bf16 %v5155_v51  ;;  %v5061_v51 = vunpack.i.l.bf16 %v8348_v50 }
 0x357   : > { %v5172_v6 = vunpack.i.h.bf16 %v5170_v21  ;;  %v5171_v15 = vunpack.i.l.bf16 %v5170_v21 }
 0x358   : > { %v3340_v34 = vsel %vm1618_vm9, %v3308_v12, %v5156_v38  ;;  %v3341_v54 = vsel %vm1618_vm9, %v3309_v47, %v5157_v29  ;;  %v3216_v0 = vsel %vm1486_vm5, %v3186_v22, %v5061_v51 }
 0x359   : > { %v3402_v16 = vsel %vm1684_vm11, %v3370_v24, %v5171_v15  ;;  %v3403_v14 = vsel %vm1684_vm11, %v3371_v28, %v5172_v6  ;;  %v5165_v45 = vpop.permute.xlu0 %5164  ;;  %v3217_v28 = vsel %vm1486_vm5, %v3187_v7, %v5062_v4 }
 0x35a   : > { %v3426_v11 = vpack.c.bf16 %v3403_v14, %v3402_v16  ;;  %v5180_v19 = vpop.permute.xlu1 %5179  ;;  %v5167_v52 = vunpack.i.h.bf16 %v5165_v45  ;;  %v5166_v57 = vunpack.i.l.bf16 %v5165_v45 }
 0x35b   : > { %v5182_v21 = vunpack.i.h.bf16 %v5180_v19  ;;  %v5181_v58 = vunpack.i.l.bf16 %v5180_v19 }
 0x35c   : > { %4048 = vmatprep.mubr.msk.bf16.mxu1 %vm1753_vm12, %v3426_v11  ;;  %v3372_v42 = vsel %vm1651_vm10, %v3340_v34, %v5166_v57  ;;  %v3373_v27 = vsel %vm1651_vm10, %v3341_v54, %v5167_v52 }
 0x35d   : > { %v5175_v18 = vpop.permute.xlu0 %5174  ;;  %v3249_v16 = vsel %vm1519_vm6, %v3217_v28, %v5182_v21  ;;  %v3248_v14 = vsel %vm1519_vm6, %v3216_v0, %v5181_v58 }
 0x35e   : > { %v5190_v61 = vpop.permute.xlu1 %5189  ;;  %v5177_v49 = vunpack.i.h.bf16 %v5175_v18  ;;  %v5176_v41 = vunpack.i.l.bf16 %v5175_v18 }
 0x35f   : > { %v5192_v6 = vunpack.i.h.bf16 %v5190_v61  ;;  %v5191_v15 = vunpack.i.l.bf16 %v5190_v61 }
 0x360   : > { %v3404_v3 = vsel %vm1684_vm11, %v3372_v42, %v5176_v41  ;;  %v3405_v35 = vsel %vm1684_vm11, %v3373_v27, %v5177_v49 }
 0x361   : > { %v3427_v36 = vpack.c.bf16 %v3405_v35, %v3404_v3  ;;  %v5185_v20 = vpop.permute.xlu0 %5184  ;;  %v3280_v53 = vsel %vm1552_vm7, %v3248_v14, %v5191_v15  ;;  %v3281_v11 = vsel %vm1552_vm7, %v3249_v16, %v5192_v6 }
 0x362   : > { %v5200_v9 = vpop.permute.xlu1 %5199  ;;  %v5187_v19 = vunpack.i.h.bf16 %v5185_v20  ;;  %v5186_v50 = vunpack.i.l.bf16 %v5185_v20 }
 0x363   : > { %4049 = vmatmul.mubr.msk.bf16.gmra.mxu1 %vm1753_vm12, %v3427_v36  ;;  %v5202_v26 = vunpack.i.h.bf16 %v5200_v9  ;;  %v5201_v63 = vunpack.i.l.bf16 %v5200_v9 }
 0x364   : > { %v3279_v18 = vsel %vm1552_vm7, %v8343_v32, %v5187_v19  ;;  %v3278_v34 = vsel %vm1552_vm7, %v8346_v39, %v5186_v50 }
 0x365   : > { %v5195_v55 = vpop.permute.xlu0 %5194  ;;  %v3312_v31 = vsel %vm1585_vm8, %v3280_v53, %v5201_v63  ;;  %v3313_v52 = vsel %vm1585_vm8, %v3281_v11, %v5202_v26 }
 0x366   : > { %v5210_v8 = vpop.permute.xlu1 %5209  ;;  %v5197_v10 = vunpack.i.h.bf16 %v5195_v55  ;;  %v5196_v45 = vunpack.i.l.bf16 %v5195_v55 }
 0x367   : > { %v5212_v13 = vunpack.i.h.bf16 %v5210_v8  ;;  %v5211_v43 = vunpack.i.l.bf16 %v5210_v8 }
 0x368   : > { %v3310_v42 = vsel %vm1585_vm8, %v3278_v34, %v5196_v45  ;;  %v3311_v27 = vsel %vm1585_vm8, %v3279_v18, %v5197_v10 }
 0x369   : > { %v5205_v23 = vpop.permute.xlu0 %5204  ;;  %v3344_v54 = vsel %vm1618_vm9, %v3312_v31, %v5211_v43  ;;  %v3345_v49 = vsel %vm1618_vm9, %v3313_v52, %v5212_v13 }
 0x36a   : > { %v5220_v24 = vpop.permute.xlu1 %5219  ;;  %v5207_v57 = vunpack.i.h.bf16 %v5205_v23  ;;  %v5206_v44 = vunpack.i.l.bf16 %v5205_v23 }
 0x36b   : > { %v5222_v29 = vunpack.i.h.bf16 %v5220_v24  ;;  %v5221_v38 = vunpack.i.l.bf16 %v5220_v24 }
 0x36c   : > { %v3342_v36 = vsel %vm1618_vm9, %v3310_v42, %v5206_v44  ;;  %v3343_v32 = vsel %vm1618_vm9, %v3311_v27, %v5207_v57 }
 0x36d   : > { %v5215_v60 = vpop.permute.xlu0 %5214  ;;  %v3376_v3 = vsel %vm1651_vm10, %v3344_v54, %v5221_v38  ;;  %v3377_v35 = vsel %vm1651_vm10, %v3345_v49, %v5222_v29 }
 0x36e   : > { %v5230_v5 = vpop.permute.xlu1 %5229  ;;  %v5217_v30 = vunpack.i.h.bf16 %v5215_v60  ;;  %v5216_v61 = vunpack.i.l.bf16 %v5215_v60 }
 0x36f   : > { %v5232_v12 = vunpack.i.h.bf16 %v5230_v5  ;;  %v5231_v47 = vunpack.i.l.bf16 %v5230_v5 }
 0x370   : > { %v3374_v59 = vsel %vm1651_vm10, %v3342_v36, %v5216_v61  ;;  %v3375_v2 = vsel %vm1651_vm10, %v3343_v32, %v5217_v30 }
 0x371   : > { %v5225_v9 = vpop.permute.xlu0 %5224  ;;  %v3408_v8 = vsel %vm1684_vm11, %v3376_v3, %v5231_v47  ;;  %v3409_v55 = vsel %vm1684_vm11, %v3377_v35, %v5232_v12 }
 0x372   : > { %v5240_v41 = vpop.permute.xlu1 %5239  ;;  %v5227_v20 = vunpack.i.h.bf16 %v5225_v9  ;;  %v5226_v39 = vunpack.i.l.bf16 %v5225_v9  ;;  %v3429_v58 = vpack.c.bf16 %v3409_v55, %v3408_v8 }
 0x373   : > { %v5242_v15 = vunpack.i.h.bf16 %v5240_v41  ;;  %v5241_v24 = vunpack.i.l.bf16 %v5240_v41 }
 0x374   : > { %v3406_v17 = vsel %vm1684_vm11, %v3374_v59, %v5226_v39  ;;  %v3407_v7 = vsel %vm1684_vm11, %v3375_v2, %v5227_v20 }
 0x375   : > { %v3428_v22 = vpack.c.bf16 %v3407_v7, %v3406_v17  ;;  %v5235_v21 = vpop.permute.xlu0 %5234  ;;  %v3253_v11 = vsel %vm1519_vm6, %v8390_v25, %v5242_v15  ;;  %v3252_v19 = vsel %vm1519_vm6, %v8387_v62, %v5241_v24 }
 0x376   : > { %v5250_v56 = vpop.permute.xlu1 %5249  ;;  %v5237_v16 = vunpack.i.h.bf16 %v5235_v21  ;;  %v5236_v14 = vunpack.i.l.bf16 %v5235_v21 }
 0x377   : > { %4052 = vmatprep.mubr.msk.bf16.mxu1 %vm1753_vm12, %v3428_v22  ;;  %v5252_v28 = vunpack.i.h.bf16 %v5250_v56  ;;  %v5251_v23 = vunpack.i.l.bf16 %v5250_v56 }
 0x378   : > { %4053 = vmatmul.mubr.msk.bf16.gmra.mxu1 %vm1753_vm12, %v3429_v58  ;;  %v3251_v38 = vsel %vm1519_vm6, %v8357_v46, %v5237_v16  ;;  %v3250_v60 = vsel %vm1519_vm6, %v8360_v48, %v5236_v14 }
 0x379   : > { %v5245_v51 = vpop.permute.xlu0 %5244  ;;  %v3284_v5 = vsel %vm1552_vm7, %v3252_v19, %v5251_v23  ;;  %v3285_v10 = vsel %vm1552_vm7, %v3253_v11, %v5252_v28 }
 0x37a   : > { %v5260_v4 = vpop.permute.xlu1 %5259  ;;  %v5247_v31 = vunpack.i.h.bf16 %v5245_v51  ;;  %v5246_v25 = vunpack.i.l.bf16 %v5245_v51 }
 0x37b   : > { %v5262_v26 = vunpack.i.h.bf16 %v5260_v4  ;;  %v5261_v63 = vunpack.i.l.bf16 %v5260_v4 }
 0x37c   : > { %v3282_v35 = vsel %vm1552_vm7, %v3250_v60, %v5246_v25  ;;  %v3283_v9 = vsel %vm1552_vm7, %v3251_v38, %v5247_v31  ;;  %v9218_v38 = vld [vmem:[#allocation27_spill] sm:$0xff] }
 0x37d   : > { %v5255_v0 = vpop.permute.xlu0 %5254  ;;  %v3316_v52 = vsel %vm1585_vm8, %v3284_v5, %v5261_v63  ;;  %v3317_v62 = vsel %vm1585_vm8, %v3285_v10, %v5262_v26  ;;  %v9219_v60 = vunpack.i.l.bf16 %v9218_v38  ;;  %v9220_v25 = vunpack.i.h.bf16 %v9218_v38 }
 0x37e   : > { %v5270_v6 = vpop.permute.xlu1 %5269  ;;  %v5257_v57 = vunpack.i.h.bf16 %v5255_v0  ;;  %v5256_v44 = vunpack.i.l.bf16 %v5255_v0 }
 0x37f   : > { %v5272_v50 = vunpack.i.h.bf16 %v5270_v6  ;;  %v5271_v13 = vunpack.i.l.bf16 %v5270_v6 }
 0x380   : > { %v3314_v20 = vsel %vm1585_vm8, %v3282_v35, %v5256_v44  ;;  %v3315_v39 = vsel %vm1585_vm8, %v3283_v9, %v5257_v57  ;;  %v9221_v44 = vld [vmem:[#allocation30_spill] sm:$0xff] }
 0x381   : > { %v5265_v43 = vpop.permute.xlu0 %5264  ;;  %v3348_v61 = vsel %vm1618_vm9, %v3316_v52, %v5271_v13  ;;  %v3349_v12 = vsel %vm1618_vm9, %v3317_v62, %v5272_v50  ;;  %v9215_v13 = vld [vmem:[#allocation25_spill] sm:$0xff] }
 0x382   : > { %v5280_v53 = vpop.permute.xlu1 %5279  ;;  %v5267_v46 = vunpack.i.h.bf16 %v5265_v43  ;;  %v5266_v54 = vunpack.i.l.bf16 %v5265_v43  ;;  %v9216_v43 = vunpack.i.l.bf16 %v9215_v13 }
 0x383   : > { %v5282_v45 = vunpack.i.h.bf16 %v5280_v53  ;;  %v5281_v29 = vunpack.i.l.bf16 %v5280_v53 }
 0x384   : > { %v3346_v2 = vsel %vm1618_vm9, %v3314_v20, %v5266_v54  ;;  %v3347_v8 = vsel %vm1618_vm9, %v3315_v39, %v5267_v46 }
 0x385   : > { %v5275_v47 = vpop.permute.xlu0 %5274  ;;  %v3381_v48 = vsel %vm1651_vm10, %v3349_v12, %v5282_v45  ;;  %v3380_v49 = vsel %vm1651_vm10, %v3348_v61, %v5281_v29  ;;  %v9223_v12 = vunpack.i.h.bf16 %v9221_v44 }
 0x386   : > { %v5290_v30 = vpop.permute.xlu1 %5289  ;;  %v5277_v41 = vunpack.i.h.bf16 %v5275_v47  ;;  %v5276_v42 = vunpack.i.l.bf16 %v5275_v47 }
 0x387   : > { %v5292_v18 = vunpack.i.h.bf16 %v5290_v30  ;;  %v5291_v34 = vunpack.i.l.bf16 %v5290_v30  ;;  %v9222_v30 = vunpack.i.l.bf16 %v9221_v44 }
 0x388   : > { %v3378_v7 = vsel %vm1651_vm10, %v3346_v2, %v5276_v42  ;;  %v3379_v56 = vsel %vm1651_vm10, %v3347_v8, %v5277_v41 }
 0x389   : > { %v3412_v27 = vsel %vm1684_vm11, %v3380_v49, %v5291_v34  ;;  %v3413_v3 = vsel %vm1684_vm11, %v3381_v48, %v5292_v18  ;;  %v5285_v59 = vpop.permute.xlu0 %5284 }
 0x38a   : > { %v3431_v36 = vpack.c.bf16 %v3413_v3, %v3412_v27  ;;  %v5300_v32 = vpop.permute.xlu1 %5299  ;;  %v5287_v55 = vunpack.i.h.bf16 %v5285_v59  ;;  %v5286_v17 = vunpack.i.l.bf16 %v5285_v59 }
 0x38b   : > { %v5302_v51 = vunpack.i.h.bf16 %v5300_v32  ;;  %v5301_v6 = vunpack.i.l.bf16 %v5300_v32 }
 0x38c   : > { %v3410_v22 = vsel %vm1684_vm11, %v3378_v7, %v5286_v17  ;;  %v3411_v21 = vsel %vm1684_vm11, %v3379_v56, %v5287_v55  ;;  %v8600_v56 = vld [vmem:[%s8782_s6] ss:$0 sm:$0xff] }
 0x38d   : > { %v3430_v4 = vpack.c.bf16 %v3411_v21, %v3410_v22  ;;  %v5295_v15 = vpop.permute.xlu0 %5294  ;;  %v3256_v23 = vsel %vm1519_vm6, %v8415_v1, %v5301_v6  ;;  %v3257_v16 = vsel %vm1519_vm6, %v8418_v33, %v5302_v51  ;;  %v9217_v1 = vunpack.i.h.bf16 %v9215_v13  ;;  %v5346_v13 = vld [vmem:[%s5461_s29 + $0x18] sm:$0xff] }
 0x38e   : > { %v5310_v58 = vpop.permute.xlu1 %5309  ;;  %v5297_v33 = vunpack.i.h.bf16 %v5295_v15  ;;  %v5296_v45 = vunpack.i.l.bf16 %v5295_v15 }
 0x38f   : > { %v5312_v24 = vunpack.i.h.bf16 %v5310_v58  ;;  %v5311_v0 = vunpack.i.l.bf16 %v5310_v58  ;;  %4056 = vmatprep.mubr.msk.bf16.mxu1 %vm1753_vm12, %v3430_v4 }
 0x390   : > { %4057 = vmatmul.mubr.msk.bf16.gmra.mxu1 %vm1753_vm12, %v3431_v36  ;;  %v3255_v54 = vsel %vm1519_vm6, %v8372_v40, %v5297_v33  ;;  %v3254_v48 = vsel %vm1519_vm6, %v8369_v37, %v5296_v45  ;;  %v8593_v37 = vld [vmem:[%s8781_s5] ss:$0 sm:$0xff] }
 0x391   : > { %v5305_v14 = vpop.permute.xlu0 %5304  ;;  %v3288_v53 = vsel %vm1552_vm7, %v3256_v23, %v5311_v0  ;;  %v3289_v11 = vsel %vm1552_vm7, %v3257_v16, %v5312_v24  ;;  %v5344_v0 = vld [vmem:[%s5461_s29 + $0x10] sm:$0xff] }
 0x392   : > { %v5320_v28 = vpop.permute.xlu1 %5319  ;;  %v5307_v62 = vunpack.i.h.bf16 %v5305_v14  ;;  %v5306_v57 = vunpack.i.l.bf16 %v5305_v14 }
 0x393   : > { %v5322_v26 = vunpack.i.h.bf16 %v5320_v28  ;;  %v5321_v63 = vunpack.i.l.bf16 %v5320_v28 }
 0x394   : > { %v3286_v41 = vsel %vm1552_vm7, %v3254_v48, %v5306_v57  ;;  %v3287_v42 = vsel %vm1552_vm7, %v3255_v54, %v5307_v62  ;;  %v5348_v62 = vld [vmem:[%s5461_s29 + $0x30] sm:$0xff]  ;;  %v5350_v48 = vld [vmem:[%s5461_s29 + $0x38] sm:$0xff] }
 0x395   : > { %v3320_v19 = vsel %vm1585_vm8, %v3288_v53, %v5321_v63  ;;  %v3321_v50 = vsel %vm1585_vm8, %v3289_v11, %v5322_v26  ;;  %v5315_v29 = vpop.permute.xlu0 %5314  ;;  %v5345_v63 = vld [vmem:[%s5461_s29] sm:$0xff] }
 0x396   : > { %v3352_v5 = vsel %vm1618_vm9, %v3320_v19, %v9216_v43  ;;  %v3353_v10 = vsel %vm1618_vm9, %v3321_v50, %v9217_v1  ;;  %v5317_v18 = vunpack.i.h.bf16 %v5315_v29  ;;  %v5316_v34 = vunpack.i.l.bf16 %v5315_v29  ;;  %v5330_v27 = vpop.permute.xlu1 %5329 }
 0x397   : > { %v3384_v31 = vsel %vm1651_vm10, %v3352_v5, %v9219_v60  ;;  %v3385_v52 = vsel %vm1651_vm10, %v3353_v10, %v9220_v25  ;;  %v5332_v40 = vunpack.i.h.bf16 %v5330_v27  ;;  %v5331_v39 = vunpack.i.l.bf16 %v5330_v27  ;;  %v5347_v10 = vld [vmem:[%s5461_s29 + $0x8] sm:$0xff] }
 0x398   : > { %v3416_v61 = vsel %vm1684_vm11, %v3384_v31, %v9222_v30  ;;  %v3417_v47 = vsel %vm1684_vm11, %v3385_v52, %v9223_v12  ;;  %v3318_v9 = vsel %vm1585_vm8, %v3286_v41, %v5316_v34  ;;  %v3319_v36 = vsel %vm1585_vm8, %v3287_v42, %v5317_v18  ;;  %v5351_v27 = vld [vmem:[%s5461_s29 + $0x28] sm:$0xff] }
 0x399   : > { %v3433_v46 = vpack.c.bf16 %v3417_v47, %v3416_v61  ;;  %v5325_v49 = vpop.permute.xlu0 %5324  ;;  %v5349_v47 = vld [vmem:[%s5461_s29 + $0x20] sm:$0xff] }
 0x39a   : > { %v5327_v3 = vunpack.i.h.bf16 %v5325_v49  ;;  %v5326_v35 = vunpack.i.l.bf16 %v5325_v49 }
 0x39c   : > { %v3350_v32 = vsel %vm1618_vm9, %v3318_v9, %v5326_v35  ;;  %v3351_v20 = vsel %vm1618_vm9, %v3319_v36, %v5327_v3 }
 0x39d   : > { %v5335_v59 = vpop.permute.xlu0 %5334  ;;  %v3382_v55 = vsel %vm1651_vm10, %v3350_v32, %v5331_v39  ;;  %v3383_v17 = vsel %vm1651_vm10, %v3351_v20, %v5332_v40 }
 0x39e   : > { %v5337_v2 = vunpack.i.h.bf16 %v5335_v59  ;;  %v5336_v8 = vunpack.i.l.bf16 %v5335_v59  ;;  %v5352_v59 = vld [vmem:[%s5461_s29 + $0x50] sm:$0xff] }
 0x39f   : > { %v4034_v7 = vpop.f32.mrf.mxu1 }
 0x3a0   : > { %v3414_v22 = vsel %vm1684_vm11, %v3382_v55, %v5336_v8  ;;  %v3415_v21 = vsel %vm1684_vm11, %v3383_v17, %v5337_v2  ;;  %v3675_v58 = vmul.f32 %v4034_v7, %v8593_v37 }
 0x3a1   : > { %v3432_v4 = vpack.c.bf16 %v3415_v21, %v3414_v22  ;;  %v3539_v51 = vpop.f32.mrf.mxu1  ;;  %v5353_v22 = vld [vmem:[%s5461_s29 + $0x40] sm:$0xff] }
 0x3a2   : > { %v3714_v6 = vadd.f32 %v8600_v56, %v3675_v58  ;;  %v3673_v15 = vmul.f32 %v8593_v37, %v3539_v51 }
 0x3a3   : > { %v4035_v24 = vpop.f32.mrf.mxu1  ;;  %4060 = vmatprep.mubr.msk.bf16.mxu1 %vm1753_vm12, %v3432_v4 }
 0x3a4   : > { %v3746_v28 = vadd.f32 %v5344_v0, %v3714_v6  ;;  %v3712_v23 = vadd.f32 %v8600_v56, %v3673_v15  ;;  %v3676_v16 = vmul.f32 %v4035_v24, %v8593_v37  ;;  %4061 = vmatmul.mubr.msk.bf16.gmra.mxu1 %vm1753_vm12, %v3433_v46  ;;  %v5354_v6 = vld [vmem:[%s5461_s29 + $0x58] sm:$0xff] }
 0x3a5   : > { %v3542_v14 = vpop.f32.mrf.mxu1 }
 0x3a6   : > { %v3778_v26 = vmax.f32 %v3746_v28, 0.0  ;;  %v3744_v53 = vadd.f32 %v5345_v63, %v3712_v23  ;;  %v3715_v11 = vadd.f32 %v8600_v56, %v3676_v16  ;;  %v3674_v19 = vmul.f32 %v8593_v37, %v3542_v14  ;;  %v5355_v28 = vld [vmem:[%s5461_s29 + $0x48] sm:$0xff] }
 0x3a8   : > { %3810 = vst.msk [vmem:[%s8617_s18 + $0x10] sm:$0xff] %vm1453_vm4, %v3778_v26  ;;  %v3776_v50 = vmax.f32 %v3744_v53, 0.0  ;;  %v3747_v43 = vadd.f32 %v5346_v13, %v3715_v11  ;;  %v3713_v5 = vadd.f32 %v8600_v56, %v3674_v19 }
 0x3aa   : > { %3808 = vst.msk [vmem:[%s8617_s18] sm:$0xff] %vm1453_vm4, %v3776_v50  ;;  %v3779_v1 = vmax.f32 %v3747_v43, 0.0  ;;  %v3745_v33 = vadd.f32 %v5347_v10, %v3713_v5  ;;  %v5356_v50 = vld [vmem:[%s5461_s29 + $0x70] sm:$0xff] }
 0x3ac   : > { %3811 = vst.msk [vmem:[%s8617_s18 + $0x18] sm:$0xff] %vm1453_vm4, %v3779_v1  ;;  %v3777_v45 = vmax.f32 %v3745_v33, 0.0  ;;  %v5357_v33 = vld [vmem:[%s5461_s29 + $0x60] sm:$0xff] }
 0x3ae   : > { %3809 = vst.msk [vmem:[%s8617_s18 + $0x8] sm:$0xff] %vm1453_vm4, %v3777_v45 }
 0x3bf   : > { %v4038_v29 = vpop.f32.mrf.mxu1 }
 0x3c0   : > { %v3679_v38 = vmul.f32 %v4038_v29, %v8593_v37 }
 0x3c1   : > { %v3555_v60 = vpop.f32.mrf.mxu1 }
 0x3c2   : > { %v3718_v31 = vadd.f32 %v8600_v56, %v3679_v38  ;;  %v3677_v25 = vmul.f32 %v8593_v37, %v3555_v60 }
 0x3c3   : > { %v4039_v52 = vpop.f32.mrf.mxu1 }
 0x3c4   : > { %v3750_v57 = vadd.f32 %v5348_v62, %v3718_v31  ;;  %v3716_v44 = vadd.f32 %v8600_v56, %v3677_v25  ;;  %v3680_v30 = vmul.f32 %v4039_v52, %v8593_v37  ;;  %v5358_v31 = vld [vmem:[%s5461_s29 + $0x78] sm:$0xff] }
 0x3c5   : > { %v3558_v61 = vpop.f32.mrf.mxu1 }
 0x3c6   : > { %v3782_v12 = vmax.f32 %v3750_v57, 0.0  ;;  %v3748_v18 = vadd.f32 %v5349_v47, %v3716_v44  ;;  %v3719_v34 = vadd.f32 %v8600_v56, %v3680_v30  ;;  %v3678_v46 = vmul.f32 %v8593_v37, %v3558_v61  ;;  %v5359_v57 = vld [vmem:[%s5461_s29 + $0x68] sm:$0xff] }
 0x3c8   : > { %3814 = vst.msk [vmem:[%s8617_s18 + $0x30] sm:$0xff] %vm1453_vm4, %v3782_v12  ;;  %v3780_v54 = vmax.f32 %v3748_v18, 0.0  ;;  %v3751_v49 = vadd.f32 %v5350_v48, %v3719_v34  ;;  %v3717_v41 = vadd.f32 %v8600_v56, %v3678_v46 }
 0x3ca   : > { %3812 = vst.msk [vmem:[%s8617_s18 + $0x20] sm:$0xff] %vm1453_vm4, %v3780_v54  ;;  %v3783_v42 = vmax.f32 %v3751_v49, 0.0  ;;  %v3749_v3 = vadd.f32 %v5351_v27, %v3717_v41  ;;  %v5360_v54 = vld [vmem:[%s5461_s29 + $0x90] sm:$0xff] }
 0x3cc   : > { %3815 = vst.msk [vmem:[%s8617_s18 + $0x38] sm:$0xff] %vm1453_vm4, %v3783_v42  ;;  %v3781_v35 = vmax.f32 %v3749_v3, 0.0  ;;  %v5361_v3 = vld [vmem:[%s5461_s29 + $0x80] sm:$0xff] }
 0x3ce   : > { %3813 = vst.msk [vmem:[%s8617_s18 + $0x28] sm:$0xff] %vm1453_vm4, %v3781_v35 }
 0x3db   : > { %v4042_v9 = vpop.f32.mrf.mxu1 }
 0x3dc   : > { %v3683_v36 = vmul.f32 %v4042_v9, %v8593_v37 }
 0x3dd   : > { %v3571_v32 = vpop.f32.mrf.mxu1 }
 0x3de   : > { %v3722_v20 = vadd.f32 %v8600_v56, %v3683_v36  ;;  %v3681_v40 = vmul.f32 %v8593_v37, %v3571_v32 }
 0x3df   : > { %v4043_v39 = vpop.f32.mrf.mxu1 }
 0x3e0   : > { %v3754_v2 = vadd.f32 %v5352_v59, %v3722_v20  ;;  %v3720_v8 = vadd.f32 %v8600_v56, %v3681_v40  ;;  %v3684_v55 = vmul.f32 %v4043_v39, %v8593_v37  ;;  %v5362_v20 = vld [vmem:[%s5461_s29 + $0x98] sm:$0xff] }
 0x3e1   : > { %v3574_v17 = vpop.f32.mrf.mxu1 }
 0x3e2   : > { %v3786_v7 = vmax.f32 %v3754_v2, 0.0  ;;  %v3752_v21 = vadd.f32 %v5353_v22, %v3720_v8  ;;  %v3723_v58 = vadd.f32 %v8600_v56, %v3684_v55  ;;  %v3682_v4 = vmul.f32 %v8593_v37, %v3574_v17  ;;  %v5363_v2 = vld [vmem:[%s5461_s29 + $0x88] sm:$0xff] }
 0x3e4   : > { %3818 = vst.msk [vmem:[%s8617_s18 + $0x50] sm:$0xff] %vm1453_vm4, %v3786_v7  ;;  %v3784_v51 = vmax.f32 %v3752_v21, 0.0  ;;  %v3755_v15 = vadd.f32 %v5354_v6, %v3723_v58  ;;  %v3721_v24 = vadd.f32 %v8600_v56, %v3682_v4 }
 0x3e6   : > { %3816 = vst.msk [vmem:[%s8617_s18 + $0x40] sm:$0xff] %vm1453_vm4, %v3784_v51  ;;  %v3787_v0 = vmax.f32 %v3755_v15, 0.0  ;;  %v3753_v23 = vadd.f32 %v5355_v28, %v3721_v24  ;;  %v5364_v51 = vld [vmem:[%s5461_s29 + $0xb0] sm:$0xff] }
 0x3e8   : > { %3819 = vst.msk [vmem:[%s8617_s18 + $0x58] sm:$0xff] %vm1453_vm4, %v3787_v0  ;;  %v3785_v16 = vmax.f32 %v3753_v23, 0.0  ;;  %v5365_v23 = vld [vmem:[%s5461_s29 + $0xa0] sm:$0xff] }
 0x3ea   : > { %3817 = vst.msk [vmem:[%s8617_s18 + $0x48] sm:$0xff] %vm1453_vm4, %v3785_v16 }
 0x40f   : > { %v4046_v14 = vpop.f32.mrf.mxu1 }
 0x410   : > { %v3687_v26 = vmul.f32 %v4046_v14, %v8593_v37 }
 0x411   : > { %v3587_v63 = vpop.f32.mrf.mxu1 }
 0x412   : > { %v3726_v53 = vadd.f32 %v8600_v56, %v3687_v26  ;;  %v3685_v11 = vmul.f32 %v8593_v37, %v3587_v63 }
 0x413   : > { %v4047_v19 = vpop.f32.mrf.mxu1 }
 0x414   : > { %v3758_v13 = vadd.f32 %v5356_v50, %v3726_v53  ;;  %v3724_v43 = vadd.f32 %v8600_v56, %v3685_v11  ;;  %v3688_v5 = vmul.f32 %v4047_v19, %v8593_v37  ;;  %v5366_v53 = vld [vmem:[%s5461_s29 + $0xb8] sm:$0xff] }
 0x415   : > { %v3590_v1 = vpop.f32.mrf.mxu1 }
 0x416   : > { %v3790_v10 = vmax.f32 %v3758_v13, 0.0  ;;  %v3756_v45 = vadd.f32 %v5357_v33, %v3724_v43  ;;  %v3727_v29 = vadd.f32 %v8600_v56, %v3688_v5  ;;  %v3686_v38 = vmul.f32 %v8593_v37, %v3590_v1  ;;  %v5367_v13 = vld [vmem:[%s5461_s29 + $0xa8] sm:$0xff] }
 0x418   : > { %3822 = vst.msk [vmem:[%s8617_s18 + $0x70] sm:$0xff] %vm1453_vm4, %v3790_v10  ;;  %v3788_v60 = vmax.f32 %v3756_v45, 0.0  ;;  %v3759_v25 = vadd.f32 %v5358_v31, %v3727_v29  ;;  %v3725_v52 = vadd.f32 %v8600_v56, %v3686_v38 }
 0x41a   : > { %3820 = vst.msk [vmem:[%s8617_s18 + $0x60] sm:$0xff] %vm1453_vm4, %v3788_v60  ;;  %v3791_v62 = vmax.f32 %v3759_v25, 0.0  ;;  %v3757_v44 = vadd.f32 %v5359_v57, %v3725_v52  ;;  %v5368_v60 = vld [vmem:[%s5461_s29 + $0xd0] sm:$0xff] }
 0x41c   : > { %3823 = vst.msk [vmem:[%s8617_s18 + $0x78] sm:$0xff] %vm1453_vm4, %v3791_v62  ;;  %v3789_v30 = vmax.f32 %v3757_v44, 0.0  ;;  %v5369_v44 = vld [vmem:[%s5461_s29 + $0xc0] sm:$0xff] }
 0x41e   : > { %3821 = vst.msk [vmem:[%s8617_s18 + $0x68] sm:$0xff] %vm1453_vm4, %v3789_v30 }
 0x423   : > { %v4050_v61 = vpop.f32.mrf.mxu1 }
 0x424   : > { %v3691_v12 = vmul.f32 %v4050_v61, %v8593_v37 }
 0x425   : > { %v3603_v47 = vpop.f32.mrf.mxu1 }
 0x426   : > { %v3730_v18 = vadd.f32 %v8600_v56, %v3691_v12  ;;  %v3689_v34 = vmul.f32 %v8593_v37, %v3603_v47 }
 0x427   : > { %v4051_v46 = vpop.f32.mrf.mxu1 }
 0x428   : > { %v3762_v48 = vadd.f32 %v5360_v54, %v3730_v18  ;;  %v3728_v49 = vadd.f32 %v8600_v56, %v3689_v34  ;;  %v3692_v41 = vmul.f32 %v4051_v46, %v8593_v37  ;;  %v5370_v18 = vld [vmem:[%s5461_s29 + $0xd8] sm:$0xff] }
 0x429   : > { %v3606_v42 = vpop.f32.mrf.mxu1 }
 0x42a   : > { %v3794_v27 = vmax.f32 %v3762_v48, 0.0  ;;  %v3760_v35 = vadd.f32 %v5361_v3, %v3728_v49  ;;  %v3731_v9 = vadd.f32 %v8600_v56, %v3692_v41  ;;  %v3690_v36 = vmul.f32 %v8593_v37, %v3606_v42  ;;  %v5371_v48 = vld [vmem:[%s5461_s29 + $0xc8] sm:$0xff] }
 0x42c   : > { %3826 = vst.msk [vmem:[%s8617_s18 + $0x90] sm:$0xff] %vm1453_vm4, %v3794_v27  ;;  %v3792_v32 = vmax.f32 %v3760_v35, 0.0  ;;  %v3763_v40 = vadd.f32 %v5362_v20, %v3731_v9  ;;  %v3729_v39 = vadd.f32 %v8600_v56, %v3690_v36 }
 0x42e   : > { %3824 = vst.msk [vmem:[%s8617_s18 + $0x80] sm:$0xff] %vm1453_vm4, %v3792_v32  ;;  %v3795_v59 = vmax.f32 %v3763_v40, 0.0  ;;  %v3761_v8 = vadd.f32 %v5363_v2, %v3729_v39  ;;  %v5372_v32 = vld [vmem:[%s5461_s29 + $0xf0] sm:$0xff] }
 0x430   : > { %3827 = vst.msk [vmem:[%s8617_s18 + $0x98] sm:$0xff] %vm1453_vm4, %v3795_v59  ;;  %v3793_v55 = vmax.f32 %v3761_v8, 0.0  ;;  %v5373_v8 = vld [vmem:[%s5461_s29 + $0xe0] sm:$0xff] }
 0x432   : > { %3825 = vst.msk [vmem:[%s8617_s18 + $0x88] sm:$0xff] %vm1453_vm4, %v3793_v55 }
 0x438   : > { %v4054_v17 = vpop.f32.mrf.mxu1 }
 0x439   : > { %v3695_v7 = vmul.f32 %v4054_v17, %v8593_v37 }
 0x43a   : > { %v3619_v22 = vpop.f32.mrf.mxu1 }
 0x43b   : > { %v3734_v21 = vadd.f32 %v8600_v56, %v3695_v7  ;;  %v3693_v58 = vmul.f32 %v8593_v37, %v3619_v22 }
 0x43c   : > { %v4055_v4 = vpop.f32.mrf.mxu1 }
 0x43d   : > { %v3766_v6 = vadd.f32 %v5364_v51, %v3734_v21  ;;  %v3732_v15 = vadd.f32 %v8600_v56, %v3693_v58  ;;  %v3696_v24 = vmul.f32 %v4055_v4, %v8593_v37  ;;  %v5374_v21 = vld [vmem:[%s5461_s29 + $0xf8] sm:$0xff] }
 0x43e   : > { %v3622_v0 = vpop.f32.mrf.mxu1 }
 0x43f   : > { %v3798_v28 = vmax.f32 %v3766_v6, 0.0  ;;  %v3764_v16 = vadd.f32 %v5365_v23, %v3732_v15  ;;  %v3735_v14 = vadd.f32 %v8600_v56, %v3696_v24  ;;  %v3694_v26 = vmul.f32 %v8593_v37, %v3622_v0  ;;  %v5375_v6 = vld [vmem:[%s5461_s29 + $0xe8] sm:$0xff] }
 0x441   : > { %3830 = vst.msk [vmem:[%s8617_s18 + $0xb0] sm:$0xff] %vm1453_vm4, %v3798_v28  ;;  %v3796_v63 = vmax.f32 %v3764_v16, 0.0  ;;  %v3767_v11 = vadd.f32 %v5366_v53, %v3735_v14  ;;  %v3733_v19 = vadd.f32 %v8600_v56, %v3694_v26 }
 0x443   : > { %3828 = vst.msk [vmem:[%s8617_s18 + $0xa0] sm:$0xff] %vm1453_vm4, %v3796_v63  ;;  %v3799_v50 = vmax.f32 %v3767_v11, 0.0  ;;  %v3765_v43 = vadd.f32 %v5367_v13, %v3733_v19 }
 0x445   : > { %3831 = vst.msk [vmem:[%s8617_s18 + $0xb8] sm:$0xff] %vm1453_vm4, %v3799_v50  ;;  %v3797_v5 = vmax.f32 %v3765_v43, 0.0 }
 0x447   : > { %3829 = vst.msk [vmem:[%s8617_s18 + $0xa8] sm:$0xff] %vm1453_vm4, %v3797_v5 }
 0x450   : > { %v4058_v1 = vpop.f32.mrf.mxu1 }
 0x451   : > { %v3699_v10 = vmul.f32 %v4058_v1, %v8593_v37 }
 0x452   : > { %v3635_v33 = vpop.f32.mrf.mxu1 }
 0x453   : > { %v3738_v45 = vadd.f32 %v8600_v56, %v3699_v10  ;;  %v3697_v29 = vmul.f32 %v8593_v37, %v3635_v33 }
 0x454   : > { %v4059_v38 = vpop.f32.mrf.mxu1 }
 0x455   : > { %v3770_v31 = vadd.f32 %v5368_v60, %v3738_v45  ;;  %v3736_v25 = vadd.f32 %v8600_v56, %v3697_v29  ;;  %v3700_v52 = vmul.f32 %v4059_v38, %v8593_v37 }
 0x456   : > { %v3638_v62 = vpop.f32.mrf.mxu1 }
 0x457   : > { %v3802_v57 = vmax.f32 %v3770_v31, 0.0  ;;  %v3768_v30 = vadd.f32 %v5369_v44, %v3736_v25  ;;  %v3739_v61 = vadd.f32 %v8600_v56, %v3700_v52  ;;  %v3698_v12 = vmul.f32 %v8593_v37, %v3638_v62 }
 0x459   : > { %3834 = vst.msk [vmem:[%s8617_s18 + $0xd0] sm:$0xff] %vm1453_vm4, %v3802_v57  ;;  %v3800_v47 = vmax.f32 %v3768_v30, 0.0  ;;  %v3771_v34 = vadd.f32 %v5370_v18, %v3739_v61  ;;  %v3737_v46 = vadd.f32 %v8600_v56, %v3698_v12 }
 0x45b   : > { %3832 = vst.msk [vmem:[%s8617_s18 + $0xc0] sm:$0xff] %vm1453_vm4, %v3800_v47  ;;  %v3803_v54 = vmax.f32 %v3771_v34, 0.0  ;;  %v3769_v49 = vadd.f32 %v5371_v48, %v3737_v46 }
 0x45d   : > { %3835 = vst.msk [vmem:[%s8617_s18 + $0xd8] sm:$0xff] %vm1453_vm4, %v3803_v54  ;;  %v3801_v41 = vmax.f32 %v3769_v49, 0.0 }
 0x45f   : > { %3833 = vst.msk [vmem:[%s8617_s18 + $0xc8] sm:$0xff] %vm1453_vm4, %v3801_v41 }
 0x464   : > { %v4062_v42 = vpop.f32.mrf.mxu1 }
 0x465   : > { %v3703_v27 = vmul.f32 %v4062_v42, %v8593_v37 }
 0x466   : > { %v3651_v3 = vpop.f32.mrf.mxu1 }
 0x467   : > { %v3742_v35 = vadd.f32 %v8600_v56, %v3703_v27  ;;  %v3701_v9 = vmul.f32 %v8593_v37, %v3651_v3 }
 0x468   : > { %v4063_v36 = vpop.f32.mrf.mxu1 }
 0x469   : > { %v3774_v20 = vadd.f32 %v5372_v32, %v3742_v35  ;;  %v3740_v40 = vadd.f32 %v8600_v56, %v3701_v9  ;;  %v3704_v39 = vmul.f32 %v4063_v36, %v8593_v37 }
 0x46a   : > { %v3654_v59 = vpop.f32.mrf.mxu1 }
 0x46b   : > { %v3806_v2 = vmax.f32 %v3774_v20, 0.0  ;;  %v3772_v55 = vadd.f32 %v5373_v8, %v3740_v40  ;;  %v3743_v17 = vadd.f32 %v8600_v56, %v3704_v39  ;;  %v3702_v7 = vmul.f32 %v8593_v37, %v3654_v59 }
 0x46d   : > { %3838 = vst.msk [vmem:[%s8617_s18 + $0xf0] sm:$0xff] %vm1453_vm4, %v3806_v2  ;;  %v3804_v22 = vmax.f32 %v3772_v55, 0.0  ;;  %v3775_v58 = vadd.f32 %v5374_v21, %v3743_v17  ;;  %v3741_v4 = vadd.f32 %v8600_v56, %v3702_v7 }
 0x46f   : > { %3836 = vst.msk [vmem:[%s8617_s18 + $0xe0] sm:$0xff] %vm1453_vm4, %v3804_v22  ;;  %v3807_v51 = vmax.f32 %v3775_v58, 0.0  ;;  %v3773_v15 = vadd.f32 %v5375_v6, %v3741_v4 }
 0x471   : > { %3839 = vst.msk [vmem:[%s8617_s18 + $0xf8] sm:$0xff] %vm1453_vm4, %v3807_v51  ;;  %v3805_v24 = vmax.f32 %v3773_v15, 0.0 }
 0x473   : > { %3837 = vst.msk [vmem:[%s8617_s18 + $0xe8] sm:$0xff] %vm1453_vm4, %v3805_v24 }
 0x474 PF: > { %s17_s24 = sadd.s32 1, %s5382_s24  }
 0x475   : > { %p14_p4 = scmp.ge.s32.totalorder %s17_s24, 4  }
 0x477   :  { %16 = sbr.rel (!%p14_p4) target bundleno = 1 (0x1), region = 78 }

</bundles_post_ra>
